<compile_context>
chip_gen: v5e
topology: v5e:2x2
jax: 0.10.0
libtpu: 0.0.40
codegen_flags: <defaults>
</compile_context>

<pallas_src>
import jax
import jax.numpy as jnp
from jax.experimental import pallas as pl
from jax.experimental.pallas import tpu as pltpu

_K = 3            # every ConvTranspose1d has kernel_size=3
_DROP_P = 0.4     # F.dropout(p=0.4), training=True (functional default)
_KEEP = 1.0 - _DROP_P


def _pad8(c):
    return ((c + 7) // 8) * 8


# ============================================================================ in-kernel helpers
def _guarded(h_st, nb):
    """(nb*Cp, L) batch-sublane-stacked -> (Cp, nb*L + 2*(nb+1)) lane-concatenated
    with the K-1=2 zero guard columns the next ConvTranspose needs."""
    cp = h_st.shape[0] // nb
    z = jnp.zeros((cp, 2), jnp.float32)
    parts = [z]
    for b in range(nb):
        parts.extend([h_st[b * cp:(b + 1) * cp, :], z])
    return jnp.concatenate(parts, axis=1)


def _reguard(y, nb):
    """(Cp, nb*M) abutting conv output -> (Cp, nb*M + 2*(nb+1)) guarded conv input."""
    cp = y.shape[0]
    m = y.shape[1] // nb
    z = jnp.zeros((cp, 2), jnp.float32)
    parts = [z]
    for b in range(nb):
        parts.extend([y[:, b * m:(b + 1) * m], z])
    return jnp.concatenate(parts, axis=1)


def _unpool(y, r, gate, nb):
    """MaxUnpool1d for all batches at once.
    y: (Cp, nb*L) abutting conv output.  One MXU matmul (upsample by R) gated by a
    precomputed {0,1} scatter mask, returned in the guarded layout for the next conv."""
    cp = y.shape[0]
    L = y.shape[1] // nb
    h_st = jnp.concatenate([y[:, b * L:(b + 1) * L] for b in range(nb)], axis=0)  # (nb*Cp, L)
    up = jnp.dot(h_st, r, preferred_element_type=jnp.float32) * gate              # (nb*Cp, OL)
    return _guarded(up, nb)


def _convT(xp, w, b):
    """ConvTranspose1d (stride 1, K=3) for ALL batches as ONE MXU matmul.
    xp: guarded lane-concatenated input (Cin_p, nb*L + 2*(nb+1)).
    Output: abutting (Cout_p, nb*(L+2)); batch b occupies columns [b*(L+2), (b+1)*(L+2))."""
    wout = xp.shape[1] - 2
    xs = jnp.concatenate(
        [xp[:, 0:wout], xp[:, 1:wout + 1], xp[:, 2:wout + 2]], axis=0)   # (3*Cin_p, Wout)
    return jnp.dot(w, xs, preferred_element_type=jnp.float32) + b


# ============================================================================ fused kernel
def _generator_kernel(
    x_ref,
    lw2_ref, lb2_ref, lw1_ref, lb1_ref,
    u_ref, vr5_ref, gate5_ref,
    r4_ref, gate4_ref, r3_ref, gate3_ref, r2_ref, gate2_ref, r1_ref, gate1_ref,
    cw8_ref, cb8_ref, cw7_ref, cb7_ref, cw6_ref, cb6_ref, cw5_ref, cb5_ref,
    cw4_ref, cb4_ref, cw3_ref, cb3_ref, cw2_ref, cb2_ref, cw1_ref, cb1_ref,
    mlin2_ref, mlin1_ref, m8_ref, m7_ref, m6_ref, m5_ref, m4_ref, m3_ref, m2_ref,
    out_ref,
):
    nb = out_ref.shape[0]                                   # static batch (2)

    # ---- Linear(64->200) + relu + dropout, batch-major (lane dense) ----
    h1 = jnp.dot(x_ref[...], lw2_ref[...], preferred_element_type=jnp.float32)
    h1 = jnp.maximum(h1 + lb2_ref[...], 0.0) * mlin2_ref[...]            # (B, 200)

    # ---- Linear(200->240) + relu + dropout ----
    g = jnp.dot(h1, lw1_ref[...], preferred_element_type=jnp.float32)
    g = jnp.maximum(g + lb1_ref[...], 0.0) * mlin1_ref[...]              # (B, 240)

    # ---- .view(-1,48,5) + MaxUnpool(k=2 -> 11) folded into ONE matmul ----
    # row (b*48+c), col m of up5  =  g[b, 5c + m//2] * gate5  (U picks c = f//5,
    # VR5 = V @ R5 picks l = f%5 and upsamples by 2).
    u = u_ref[...]
    xg = jnp.concatenate([u * g[b:b + 1, :] for b in range(nb)], axis=0)  # (nb*48, 240)
    up5 = jnp.dot(xg, vr5_ref[...], preferred_element_type=jnp.float32) * gate5_ref[...]
    h = _guarded(up5, nb)                                                 # (48, nb*11+2nb+2)

    # ---- decoder: 8 ConvTranspose1d + 4 more MaxUnpool1d, all batch-fused ----
    h = jnp.maximum(_convT(h, cw8_ref[...], cb8_ref[...]), 0.0) * m8_ref[...]   # (48, nb*13)
    h = _unpool(h, r4_ref[...], gate4_ref[...], nb)                             # (48, ...)
    h = jnp.maximum(_convT(h, cw7_ref[...], cb7_ref[...]), 0.0) * m7_ref[...]   # (32, nb*29)
    h = _unpool(h, r3_ref[...], gate3_ref[...], nb)
    h = jnp.maximum(_convT(h, cw6_ref[...], cb6_ref[...]), 0.0) * m6_ref[...]   # (32, nb*120)
    h = jnp.maximum(_convT(_reguard(h, nb), cw5_ref[...], cb5_ref[...]), 0.0) * m5_ref[...]
    h = _unpool(h, r2_ref[...], gate2_ref[...], nb)
    h = jnp.maximum(_convT(h, cw4_ref[...], cb4_ref[...]), 0.0) * m4_ref[...]   # (24, nb*246)
    h = jnp.maximum(_convT(_reguard(h, nb), cw3_ref[...], cb3_ref[...]), 0.0) * m3_ref[...]
    h = _unpool(h, r1_ref[...], gate1_ref[...], nb)
    h = jnp.maximum(_convT(h, cw2_ref[...], cb2_ref[...]), 0.0) * m2_ref[...]   # (16, nb*498)
    y = _convT(_reguard(h, nb), cw1_ref[...], cb1_ref[...])                     # (8, nb*500)
    y = 1.0 / (1.0 + jnp.exp(-y))                                               # sigmoid

    for b in range(nb):                                   # squeeze(dim=1): real channel is row 0
        out_ref[b:b + 1, :] = y[0:1, b * 500:(b + 1) * 500]


# ============================================================================ wrapper-side constants
def _upsample_R(L, k, OL):
    """(L, OL) upsample-by-k matrix: R[l, m] = 1 iff m // k == l (zero past k*L)."""
    l = jnp.arange(L, dtype=jnp.int32)[:, None]
    m = jnp.arange(OL, dtype=jnp.int32)[None, :]
    return ((m // k) == l).astype(jnp.float32)


def _scatter_gate(idx, cp, k, OL):
    """{0,1} MaxUnpool scatter gate in the batch-sublane-stacked layout (B*cp, OL).
    Padded channel rows and positions >= k*L are explicitly zero."""
    # TODO(synk): assumes MaxPool-produced indices (each index lies inside its own
    # pooling window), which is exactly what torch.nn.MaxUnpool1d receives from MaxPool1d.
    B, C, L = idx.shape
    idx = idx.astype(jnp.int32)
    m = jnp.arange(OL, dtype=jnp.int32)
    win = jnp.clip(m // k, 0, L - 1)
    idx_up = jnp.take(idx, win, axis=2)                                    # (B, C, OL)
    g = (idx_up == m[None, None, :]) & (m[None, None, :] < k * L)
    g = g.astype(jnp.float32)
    if cp > C:
        g = jnp.concatenate([g, jnp.zeros((B, cp - C, OL), jnp.float32)], axis=1)
    return g.reshape(B * cp, OL)


# ============================================================================ wrapper
@jax.jit
def generator_forward(params, x, id1, id2, id3, id4, id5, key):
    B = x.shape[0]

    # constant layout matrices (precomputed; DMA'd once, overlaps with nothing heavy)
    u_mat = (jnp.arange(240, dtype=jnp.int32)[None, :] // 5
             == jnp.arange(48, dtype=jnp.int32)[:, None]).astype(jnp.float32)   # (48, 240)
    f = jnp.arange(240, dtype=jnp.int32)[:, None]
    m = jnp.arange(11, dtype=jnp.int32)[None, :]
    vr5 = (((f % 5) == (m // 2)) & (m < 10)).astype(jnp.float32)                # (240, 11)
    r4 = _upsample_R(13, 2, 27)
    r3 = _upsample_R(29, 4, 118)
    r2 = _upsample_R(122, 2, 244)
    r1 = _upsample_R(248, 2, 496)

    # MaxUnpool scatter gates from the integer indices (exact, no float arithmetic)
    gate5 = _scatter_gate(id5, 48, 2, 11)
    gate4 = _scatter_gate(id4, 48, 2, 27)
    gate3 = _scatter_gate(id3, 32, 4, 118)
    gate2 = _scatter_gate(id2, 24, 2, 244)
    gate1 = _scatter_gate(id1, 16, 2, 496)

    # inverted-dropout masks (0 or 1/keep), drawn outside the kernel
    # TODO(synk): will not bit-match PyTorch's dropout RNG stream (statistically equivalent).
    shapes = [(B, 200), (B, 240), (48, B * 13), (32, B * 29), (32, B * 120),
              (24, B * 122), (24, B * 246), (16, B * 248), (16, B * 498)]
    mkeys = jax.random.split(key, len(shapes))
    masks = [jax.random.bernoulli(k, _KEEP, s).astype(jnp.float32) * (1.0 / _KEEP)
             for k, s in zip(mkeys, shapes)]

    args = [
        x.astype(jnp.float32),
        params["lin2_wT"], params["lin2_b"], params["lin1_wT"], params["lin1_b"],
        u_mat, vr5, gate5, r4, gate4, r3, gate3, r2, gate2, r1, gate1,
        params["c8_w"], params["c8_b"], params["c7_w"], params["c7_b"],
        params["c6_w"], params["c6_b"], params["c5_w"], params["c5_b"],
        params["c4_w"], params["c4_b"], params["c3_w"], params["c3_b"],
        params["c2_w"], params["c2_b"], params["c1_w"], params["c1_b"],
    ] + masks

    in_specs = [pl.BlockSpec(memory_space=pltpu.MemorySpace.VMEM)] * len(args)
    return pl.pallas_call(
        _generator_kernel,
        out_shape=jax.ShapeDtypeStruct((B, 500), jnp.float32),
        in_specs=in_specs,
        out_specs=pl.BlockSpec(memory_space=pltpu.MemorySpace.VMEM),
        # single grid step, defaults for VMEM limit / pipelining: working set < 2 MiB.
    )(*args)


# ============================================================================ params
def init_params(key):
    keys = jax.random.split(key, 10)

    def linear(k, dout, din):
        kw, kb = jax.random.split(k)
        s = 1.0 / (din ** 0.5)
        w = jax.random.uniform(kw, (dout, din), jnp.float32, -s, s)      # torch layout (out, in)
        b = jax.random.uniform(kb, (dout,), jnp.float32, -s, s)
        return w, b

    def convt(k, cin, cout):
        kw, kb = jax.random.split(k)
        s = 1.0 / ((cin * _K) ** 0.5)
        w = jax.random.uniform(kw, (cin, cout, _K), jnp.float32, -s, s)  # torch (Cin, Cout, K)
        b = jax.random.uniform(kb, (cout,), jnp.float32, -s, s)
        cinp, coutp = _pad8(cin), _pad8(cout)
        # stacked flipped taps: W[co, kk*cinp + ci] = w[ci, co, K-1-kk]; zero-padded rows/cols.
        w_stack = jnp.zeros((coutp, _K * cinp), jnp.float32)
        for kk in range(_K):
            w_stack = w_stack.at[:cout, kk * cinp:kk * cinp + cin].set(w[:, :, _K - 1 - kk].T)
        b_col = jnp.zeros((coutp, 1), jnp.float32).at[:cout, 0].set(b)
        return w_stack, b_col

    p = {}
    w2, b2 = linear(keys[0], 200, 64)                      # Linear(z=64 -> 200)
    p["lin2_wT"], p["lin2_b"] = jnp.transpose(w2), b2.reshape(1, 200)
    w1, b1 = linear(keys[1], 240, 200)                     # Linear(200 -> 5*48)
    p["lin1_wT"], p["lin1_b"] = jnp.transpose(w1), b1.reshape(1, 240)
    p["c1_w"], p["c1_b"] = convt(keys[2], 12, 1)
    p["c2_w"], p["c2_b"] = convt(keys[3], 12, 12)
    p["c3_w"], p["c3_b"] = convt(keys[4], 24, 12)
    p["c4_w"], p["c4_b"] = convt(keys[5], 24, 24)
    p["c5_w"], p["c5_b"] = convt(keys[6], 32, 24)
    p["c6_w"], p["c6_b"] = convt(keys[7], 32, 32)
    p["c7_w"], p["c7_b"] = convt(keys[8], 48, 32)
    p["c8_w"], p["c8_b"] = convt(keys[9], 48, 48)
    return p


# ============================================================================ main
if __name__ == "__main__":
    B = 2
    key = jax.random.PRNGKey(0)
    pkey, xkey, ikey, dkey = jax.random.split(key, 4)

    params = init_params(pkey)
    x = jax.random.normal(xkey, (B, 64), jnp.float32)

    def make_idx(k, shape, kernel, out_len):
        # Valid MaxPool1d-style indices: one per non-overlapping window, inside its window.
        off = jax.random.randint(k, shape, 0, kernel)
        base = kernel * jnp.arange(shape[-1], dtype=jnp.int32)
        return jnp.minimum(base + off, out_len - 1).astype(jnp.int32)

    ik = jax.random.split(ikey, 5)
    id5 = make_idx(ik[0], (B, 48, 5), 2, 11)
    id4 = make_idx(ik[1], (B, 48, 13), 2, 27)
    id3 = make_idx(ik[2], (B, 32, 29), 4, 118)
    id2 = make_idx(ik[3], (B, 24, 122), 2, 244)
    id1 = make_idx(ik[4], (B, 12, 248), 2, 496)

    out = generator_forward(params, x, id1, id2, id3, id4, id5, dkey)
    out = jax.block_until_ready(out)

    assert out.shape == (B, 500), out.shape
    assert bool(jnp.all(jnp.isfinite(out)))
    assert bool(jnp.all((out >= 0.0) & (out <= 1.0)))  # sigmoid output
    print("KERNEL_OK")
</pallas_src>

<mosaic_0001>
module attributes {stable_mosaic.version = 11 : i64} {
  func.func @_generator_kernel(%arg0: memref<2x64xf32, #tpu.memory_space<vmem>>, %arg1: memref<64x200xf32, #tpu.memory_space<vmem>>, %arg2: memref<1x200xf32, #tpu.memory_space<vmem>>, %arg3: memref<200x240xf32, #tpu.memory_space<vmem>>, %arg4: memref<1x240xf32, #tpu.memory_space<vmem>>, %arg5: memref<48x240xf32, #tpu.memory_space<vmem>>, %arg6: memref<240x11xf32, #tpu.memory_space<vmem>>, %arg7: memref<96x11xf32, #tpu.memory_space<vmem>>, %arg8: memref<13x27xf32, #tpu.memory_space<vmem>>, %arg9: memref<96x27xf32, #tpu.memory_space<vmem>>, %arg10: memref<29x118xf32, #tpu.memory_space<vmem>>, %arg11: memref<64x118xf32, #tpu.memory_space<vmem>>, %arg12: memref<122x244xf32, #tpu.memory_space<vmem>>, %arg13: memref<48x244xf32, #tpu.memory_space<vmem>>, %arg14: memref<248x496xf32, #tpu.memory_space<vmem>>, %arg15: memref<32x496xf32, #tpu.memory_space<vmem>>, %arg16: memref<48x144xf32, #tpu.memory_space<vmem>>, %arg17: memref<48x1xf32, #tpu.memory_space<vmem>>, %arg18: memref<32x144xf32, #tpu.memory_space<vmem>>, %arg19: memref<32x1xf32, #tpu.memory_space<vmem>>, %arg20: memref<32x96xf32, #tpu.memory_space<vmem>>, %arg21: memref<32x1xf32, #tpu.memory_space<vmem>>, %arg22: memref<24x96xf32, #tpu.memory_space<vmem>>, %arg23: memref<24x1xf32, #tpu.memory_space<vmem>>, %arg24: memref<24x72xf32, #tpu.memory_space<vmem>>, %arg25: memref<24x1xf32, #tpu.memory_space<vmem>>, %arg26: memref<16x72xf32, #tpu.memory_space<vmem>>, %arg27: memref<16x1xf32, #tpu.memory_space<vmem>>, %arg28: memref<16x48xf32, #tpu.memory_space<vmem>>, %arg29: memref<16x1xf32, #tpu.memory_space<vmem>>, %arg30: memref<8x48xf32, #tpu.memory_space<vmem>>, %arg31: memref<8x1xf32, #tpu.memory_space<vmem>>, %arg32: memref<2x200xf32, #tpu.memory_space<vmem>>, %arg33: memref<2x240xf32, #tpu.memory_space<vmem>>, %arg34: memref<48x26xf32, #tpu.memory_space<vmem>>, %arg35: memref<32x58xf32, #tpu.memory_space<vmem>>, %arg36: memref<32x240xf32, #tpu.memory_space<vmem>>, %arg37: memref<24x244xf32, #tpu.memory_space<vmem>>, %arg38: memref<24x492xf32, #tpu.memory_space<vmem>>, %arg39: memref<16x496xf32, #tpu.memory_space<vmem>>, %arg40: memref<16x996xf32, #tpu.memory_space<vmem>>, %arg41: memref<2x500xf32, #tpu.memory_space<vmem>>) attributes {dimension_semantics = [], scalar_prefetch = 0 : i64, scratch_operands = 0 : i64, tpu.core_type = #tpu.core_type<tc>} {
    %c0 = arith.constant 0 : index
    %c0_0 = arith.constant 0 : index
    %0 = vector.load %arg0[%c0, %c0_0] : memref<2x64xf32, #tpu.memory_space<vmem>>, vector<2x64xf32>
    %c0_1 = arith.constant 0 : index
    %c0_2 = arith.constant 0 : index
    %1 = vector.load %arg1[%c0_1, %c0_2] : memref<64x200xf32, #tpu.memory_space<vmem>>, vector<64x200xf32>
    %cst = arith.constant dense<0.000000e+00> : vector<2x200xf32>
    %2 = tpu.matmul %0, %1, %cst {dimension_numbers = #tpu.dot_dimension_numbers<[1], [0], [0], [1], [0, 0, 1, 1], [], []>} : vector<2x64xf32>, vector<64x200xf32>, vector<2x200xf32> -> vector<2x200xf32>
    %c0_3 = arith.constant 0 : index
    %c0_4 = arith.constant 0 : index
    %3 = vector.load %arg2[%c0_3, %c0_4] : memref<1x200xf32, #tpu.memory_space<vmem>>, vector<1x200xf32>
    %4 = vector.broadcast %3 : vector<1x200xf32> to vector<2x200xf32>
    %5 = arith.addf %2, %4 : vector<2x200xf32>
    %cst_5 = arith.constant 0.000000e+00 : f32
    %6 = vector.broadcast %cst_5 : f32 to vector<2x200xf32>
    %7 = arith.maximumf %5, %6 : vector<2x200xf32>
    %c0_6 = arith.constant 0 : index
    %c0_7 = arith.constant 0 : index
    %8 = vector.load %arg32[%c0_6, %c0_7] : memref<2x200xf32, #tpu.memory_space<vmem>>, vector<2x200xf32>
    %9 = arith.mulf %7, %8 : vector<2x200xf32>
    %c0_8 = arith.constant 0 : index
    %c0_9 = arith.constant 0 : index
    %10 = vector.load %arg3[%c0_8, %c0_9] : memref<200x240xf32, #tpu.memory_space<vmem>>, vector<200x240xf32>
    %cst_10 = arith.constant dense<0.000000e+00> : vector<2x240xf32>
    %11 = tpu.matmul %9, %10, %cst_10 {dimension_numbers = #tpu.dot_dimension_numbers<[1], [0], [0], [1], [0, 0, 1, 1], [], []>} : vector<2x200xf32>, vector<200x240xf32>, vector<2x240xf32> -> vector<2x240xf32>
    %c0_11 = arith.constant 0 : index
    %c0_12 = arith.constant 0 : index
    %12 = vector.load %arg4[%c0_11, %c0_12] : memref<1x240xf32, #tpu.memory_space<vmem>>, vector<1x240xf32>
    %13 = vector.broadcast %12 : vector<1x240xf32> to vector<2x240xf32>
    %14 = arith.addf %11, %13 : vector<2x240xf32>
    %cst_13 = arith.constant 0.000000e+00 : f32
    %15 = vector.broadcast %cst_13 : f32 to vector<2x240xf32>
    %16 = arith.maximumf %14, %15 : vector<2x240xf32>
    %c0_14 = arith.constant 0 : index
    %c0_15 = arith.constant 0 : index
    %17 = vector.load %arg33[%c0_14, %c0_15] : memref<2x240xf32, #tpu.memory_space<vmem>>, vector<2x240xf32>
    %18 = arith.mulf %16, %17 : vector<2x240xf32>
    %c0_16 = arith.constant 0 : index
    %c0_17 = arith.constant 0 : index
    %19 = vector.load %arg5[%c0_16, %c0_17] : memref<48x240xf32, #tpu.memory_space<vmem>>, vector<48x240xf32>
    %20 = vector.extract_strided_slice %18 {offsets = [0, 0], sizes = [1, 240], strides = [1, 1]} : vector<2x240xf32> to vector<1x240xf32>
    %21 = vector.broadcast %20 : vector<1x240xf32> to vector<48x240xf32>
    %22 = arith.mulf %19, %21 : vector<48x240xf32>
    %23 = vector.extract_strided_slice %18 {offsets = [1, 0], sizes = [1, 240], strides = [1, 1]} : vector<2x240xf32> to vector<1x240xf32>
    %24 = vector.broadcast %23 : vector<1x240xf32> to vector<48x240xf32>
    %25 = arith.mulf %19, %24 : vector<48x240xf32>
    %26 = tpu.concatenate %22, %25 in 0 : vector<48x240xf32>, vector<48x240xf32> -> vector<96x240xf32>
    %c0_18 = arith.constant 0 : index
    %c0_19 = arith.constant 0 : index
    %27 = vector.load %arg6[%c0_18, %c0_19] : memref<240x11xf32, #tpu.memory_space<vmem>>, vector<240x11xf32>
    %cst_20 = arith.constant dense<0.000000e+00> : vector<96x11xf32>
    %28 = tpu.matmul %26, %27, %cst_20 {dimension_numbers = #tpu.dot_dimension_numbers<[1], [0], [0], [1], [0, 0, 1, 1], [], []>} : vector<96x240xf32>, vector<240x11xf32>, vector<96x11xf32> -> vector<96x11xf32>
    %c0_21 = arith.constant 0 : index
    %c0_22 = arith.constant 0 : index
    %29 = vector.load %arg7[%c0_21, %c0_22] : memref<96x11xf32, #tpu.memory_space<vmem>>, vector<96x11xf32>
    %30 = arith.mulf %28, %29 : vector<96x11xf32>
    %cst_23 = arith.constant 0.000000e+00 : f32
    %31 = vector.broadcast %cst_23 : f32 to vector<48x2xf32>
    %32 = vector.extract_strided_slice %30 {offsets = [0, 0], sizes = [48, 11], strides = [1, 1]} : vector<96x11xf32> to vector<48x11xf32>
    %33 = vector.extract_strided_slice %30 {offsets = [48, 0], sizes = [48, 11], strides = [1, 1]} : vector<96x11xf32> to vector<48x11xf32>
    %34 = tpu.concatenate %31, %32, %31, %33, %31 in 1 : vector<48x2xf32>, vector<48x11xf32>, vector<48x2xf32>, vector<48x11xf32>, vector<48x2xf32> -> vector<48x28xf32>
    %c0_24 = arith.constant 0 : index
    %c0_25 = arith.constant 0 : index
    %35 = vector.load %arg16[%c0_24, %c0_25] : memref<48x144xf32, #tpu.memory_space<vmem>>, vector<48x144xf32>
    %c0_26 = arith.constant 0 : index
    %c0_27 = arith.constant 0 : index
    %36 = vector.load %arg17[%c0_26, %c0_27] : memref<48x1xf32, #tpu.memory_space<vmem>>, vector<48x1xf32>
    %37 = vector.extract_strided_slice %34 {offsets = [0, 0], sizes = [48, 26], strides = [1, 1]} : vector<48x28xf32> to vector<48x26xf32>
    %38 = vector.extract_strided_slice %34 {offsets = [0, 1], sizes = [48, 26], strides = [1, 1]} : vector<48x28xf32> to vector<48x26xf32>
    %39 = vector.extract_strided_slice %34 {offsets = [0, 2], sizes = [48, 26], strides = [1, 1]} : vector<48x28xf32> to vector<48x26xf32>
    %40 = tpu.concatenate %37, %38, %39 in 0 : vector<48x26xf32>, vector<48x26xf32>, vector<48x26xf32> -> vector<144x26xf32>
    %cst_28 = arith.constant dense<0.000000e+00> : vector<48x26xf32>
    %41 = tpu.matmul %35, %40, %cst_28 {dimension_numbers = #tpu.dot_dimension_numbers<[1], [0], [0], [1], [0, 0, 1, 1], [], []>} : vector<48x144xf32>, vector<144x26xf32>, vector<48x26xf32> -> vector<48x26xf32>
    %42 = vector.broadcast %36 : vector<48x1xf32> to vector<48x26xf32>
    %43 = arith.addf %41, %42 : vector<48x26xf32>
    %cst_29 = arith.constant 0.000000e+00 : f32
    %44 = vector.broadcast %cst_29 : f32 to vector<48x26xf32>
    %45 = arith.maximumf %43, %44 : vector<48x26xf32>
    %c0_30 = arith.constant 0 : index
    %c0_31 = arith.constant 0 : index
    %46 = vector.load %arg34[%c0_30, %c0_31] : memref<48x26xf32, #tpu.memory_space<vmem>>, vector<48x26xf32>
    %47 = arith.mulf %45, %46 : vector<48x26xf32>
    %c0_32 = arith.constant 0 : index
    %c0_33 = arith.constant 0 : index
    %48 = vector.load %arg8[%c0_32, %c0_33] : memref<13x27xf32, #tpu.memory_space<vmem>>, vector<13x27xf32>
    %c0_34 = arith.constant 0 : index
    %c0_35 = arith.constant 0 : index
    %49 = vector.load %arg9[%c0_34, %c0_35] : memref<96x27xf32, #tpu.memory_space<vmem>>, vector<96x27xf32>
    %50 = vector.extract_strided_slice %47 {offsets = [0, 0], sizes = [48, 13], strides = [1, 1]} : vector<48x26xf32> to vector<48x13xf32>
    %51 = vector.extract_strided_slice %47 {offsets = [0, 13], sizes = [48, 13], strides = [1, 1]} : vector<48x26xf32> to vector<48x13xf32>
    %52 = tpu.concatenate %50, %51 in 0 : vector<48x13xf32>, vector<48x13xf32> -> vector<96x13xf32>
    %cst_36 = arith.constant dense<0.000000e+00> : vector<96x27xf32>
    %53 = tpu.matmul %52, %48, %cst_36 {dimension_numbers = #tpu.dot_dimension_numbers<[1], [0], [0], [1], [0, 0, 1, 1], [], []>} : vector<96x13xf32>, vector<13x27xf32>, vector<96x27xf32> -> vector<96x27xf32>
    %54 = arith.mulf %53, %49 : vector<96x27xf32>
    %cst_37 = arith.constant 0.000000e+00 : f32
    %55 = vector.broadcast %cst_37 : f32 to vector<48x2xf32>
    %56 = vector.extract_strided_slice %54 {offsets = [0, 0], sizes = [48, 27], strides = [1, 1]} : vector<96x27xf32> to vector<48x27xf32>
    %57 = vector.extract_strided_slice %54 {offsets = [48, 0], sizes = [48, 27], strides = [1, 1]} : vector<96x27xf32> to vector<48x27xf32>
    %58 = tpu.concatenate %55, %56, %55, %57, %55 in 1 : vector<48x2xf32>, vector<48x27xf32>, vector<48x2xf32>, vector<48x27xf32>, vector<48x2xf32> -> vector<48x60xf32>
    %c0_38 = arith.constant 0 : index
    %c0_39 = arith.constant 0 : index
    %59 = vector.load %arg18[%c0_38, %c0_39] : memref<32x144xf32, #tpu.memory_space<vmem>>, vector<32x144xf32>
    %c0_40 = arith.constant 0 : index
    %c0_41 = arith.constant 0 : index
    %60 = vector.load %arg19[%c0_40, %c0_41] : memref<32x1xf32, #tpu.memory_space<vmem>>, vector<32x1xf32>
    %61 = vector.extract_strided_slice %58 {offsets = [0, 0], sizes = [48, 58], strides = [1, 1]} : vector<48x60xf32> to vector<48x58xf32>
    %62 = vector.extract_strided_slice %58 {offsets = [0, 1], sizes = [48, 58], strides = [1, 1]} : vector<48x60xf32> to vector<48x58xf32>
    %63 = vector.extract_strided_slice %58 {offsets = [0, 2], sizes = [48, 58], strides = [1, 1]} : vector<48x60xf32> to vector<48x58xf32>
    %64 = tpu.concatenate %61, %62, %63 in 0 : vector<48x58xf32>, vector<48x58xf32>, vector<48x58xf32> -> vector<144x58xf32>
    %cst_42 = arith.constant dense<0.000000e+00> : vector<32x58xf32>
    %65 = tpu.matmul %59, %64, %cst_42 {dimension_numbers = #tpu.dot_dimension_numbers<[1], [0], [0], [1], [0, 0, 1, 1], [], []>} : vector<32x144xf32>, vector<144x58xf32>, vector<32x58xf32> -> vector<32x58xf32>
    %66 = vector.broadcast %60 : vector<32x1xf32> to vector<32x58xf32>
    %67 = arith.addf %65, %66 : vector<32x58xf32>
    %cst_43 = arith.constant 0.000000e+00 : f32
    %68 = vector.broadcast %cst_43 : f32 to vector<32x58xf32>
    %69 = arith.maximumf %67, %68 : vector<32x58xf32>
    %c0_44 = arith.constant 0 : index
    %c0_45 = arith.constant 0 : index
    %70 = vector.load %arg35[%c0_44, %c0_45] : memref<32x58xf32, #tpu.memory_space<vmem>>, vector<32x58xf32>
    %71 = arith.mulf %69, %70 : vector<32x58xf32>
    %c0_46 = arith.constant 0 : index
    %c0_47 = arith.constant 0 : index
    %72 = vector.load %arg10[%c0_46, %c0_47] : memref<29x118xf32, #tpu.memory_space<vmem>>, vector<29x118xf32>
    %c0_48 = arith.constant 0 : index
    %c0_49 = arith.constant 0 : index
    %73 = vector.load %arg11[%c0_48, %c0_49] : memref<64x118xf32, #tpu.memory_space<vmem>>, vector<64x118xf32>
    %74 = vector.extract_strided_slice %71 {offsets = [0, 0], sizes = [32, 29], strides = [1, 1]} : vector<32x58xf32> to vector<32x29xf32>
    %75 = vector.extract_strided_slice %71 {offsets = [0, 29], sizes = [32, 29], strides = [1, 1]} : vector<32x58xf32> to vector<32x29xf32>
    %76 = tpu.concatenate %74, %75 in 0 : vector<32x29xf32>, vector<32x29xf32> -> vector<64x29xf32>
    %cst_50 = arith.constant dense<0.000000e+00> : vector<64x118xf32>
    %77 = tpu.matmul %76, %72, %cst_50 {dimension_numbers = #tpu.dot_dimension_numbers<[1], [0], [0], [1], [0, 0, 1, 1], [], []>} : vector<64x29xf32>, vector<29x118xf32>, vector<64x118xf32> -> vector<64x118xf32>
    %78 = arith.mulf %77, %73 : vector<64x118xf32>
    %cst_51 = arith.constant 0.000000e+00 : f32
    %79 = vector.broadcast %cst_51 : f32 to vector<32x2xf32>
    %80 = vector.extract_strided_slice %78 {offsets = [0, 0], sizes = [32, 118], strides = [1, 1]} : vector<64x118xf32> to vector<32x118xf32>
    %81 = vector.extract_strided_slice %78 {offsets = [32, 0], sizes = [32, 118], strides = [1, 1]} : vector<64x118xf32> to vector<32x118xf32>
    %82 = tpu.concatenate %79, %80, %79, %81, %79 in 1 : vector<32x2xf32>, vector<32x118xf32>, vector<32x2xf32>, vector<32x118xf32>, vector<32x2xf32> -> vector<32x242xf32>
    %c0_52 = arith.constant 0 : index
    %c0_53 = arith.constant 0 : index
    %83 = vector.load %arg20[%c0_52, %c0_53] : memref<32x96xf32, #tpu.memory_space<vmem>>, vector<32x96xf32>
    %c0_54 = arith.constant 0 : index
    %c0_55 = arith.constant 0 : index
    %84 = vector.load %arg21[%c0_54, %c0_55] : memref<32x1xf32, #tpu.memory_space<vmem>>, vector<32x1xf32>
    %85 = vector.extract_strided_slice %82 {offsets = [0, 0], sizes = [32, 240], strides = [1, 1]} : vector<32x242xf32> to vector<32x240xf32>
    %86 = vector.extract_strided_slice %82 {offsets = [0, 1], sizes = [32, 240], strides = [1, 1]} : vector<32x242xf32> to vector<32x240xf32>
    %87 = vector.extract_strided_slice %82 {offsets = [0, 2], sizes = [32, 240], strides = [1, 1]} : vector<32x242xf32> to vector<32x240xf32>
    %88 = tpu.concatenate %85, %86, %87 in 0 : vector<32x240xf32>, vector<32x240xf32>, vector<32x240xf32> -> vector<96x240xf32>
    %cst_56 = arith.constant dense<0.000000e+00> : vector<32x240xf32>
    %89 = tpu.matmul %83, %88, %cst_56 {dimension_numbers = #tpu.dot_dimension_numbers<[1], [0], [0], [1], [0, 0, 1, 1], [], []>} : vector<32x96xf32>, vector<96x240xf32>, vector<32x240xf32> -> vector<32x240xf32>
    %90 = vector.broadcast %84 : vector<32x1xf32> to vector<32x240xf32>
    %91 = arith.addf %89, %90 : vector<32x240xf32>
    %cst_57 = arith.constant 0.000000e+00 : f32
    %92 = vector.broadcast %cst_57 : f32 to vector<32x240xf32>
    %93 = arith.maximumf %91, %92 : vector<32x240xf32>
    %c0_58 = arith.constant 0 : index
    %c0_59 = arith.constant 0 : index
    %94 = vector.load %arg36[%c0_58, %c0_59] : memref<32x240xf32, #tpu.memory_space<vmem>>, vector<32x240xf32>
    %95 = arith.mulf %93, %94 : vector<32x240xf32>
    %cst_60 = arith.constant 0.000000e+00 : f32
    %96 = vector.broadcast %cst_60 : f32 to vector<32x2xf32>
    %97 = vector.extract_strided_slice %95 {offsets = [0, 0], sizes = [32, 120], strides = [1, 1]} : vector<32x240xf32> to vector<32x120xf32>
    %98 = vector.extract_strided_slice %95 {offsets = [0, 120], sizes = [32, 120], strides = [1, 1]} : vector<32x240xf32> to vector<32x120xf32>
    %99 = tpu.concatenate %96, %97, %96, %98, %96 in 1 : vector<32x2xf32>, vector<32x120xf32>, vector<32x2xf32>, vector<32x120xf32>, vector<32x2xf32> -> vector<32x246xf32>
    %c0_61 = arith.constant 0 : index
    %c0_62 = arith.constant 0 : index
    %100 = vector.load %arg22[%c0_61, %c0_62] : memref<24x96xf32, #tpu.memory_space<vmem>>, vector<24x96xf32>
    %c0_63 = arith.constant 0 : index
    %c0_64 = arith.constant 0 : index
    %101 = vector.load %arg23[%c0_63, %c0_64] : memref<24x1xf32, #tpu.memory_space<vmem>>, vector<24x1xf32>
    %102 = vector.extract_strided_slice %99 {offsets = [0, 0], sizes = [32, 244], strides = [1, 1]} : vector<32x246xf32> to vector<32x244xf32>
    %103 = vector.extract_strided_slice %99 {offsets = [0, 1], sizes = [32, 244], strides = [1, 1]} : vector<32x246xf32> to vector<32x244xf32>
    %104 = vector.extract_strided_slice %99 {offsets = [0, 2], sizes = [32, 244], strides = [1, 1]} : vector<32x246xf32> to vector<32x244xf32>
    %105 = tpu.concatenate %102, %103, %104 in 0 : vector<32x244xf32>, vector<32x244xf32>, vector<32x244xf32> -> vector<96x244xf32>
    %cst_65 = arith.constant dense<0.000000e+00> : vector<24x244xf32>
    %106 = tpu.matmul %100, %105, %cst_65 {dimension_numbers = #tpu.dot_dimension_numbers<[1], [0], [0], [1], [0, 0, 1, 1], [], []>} : vector<24x96xf32>, vector<96x244xf32>, vector<24x244xf32> -> vector<24x244xf32>
    %107 = vector.broadcast %101 : vector<24x1xf32> to vector<24x244xf32>
    %108 = arith.addf %106, %107 : vector<24x244xf32>
    %cst_66 = arith.constant 0.000000e+00 : f32
    %109 = vector.broadcast %cst_66 : f32 to vector<24x244xf32>
    %110 = arith.maximumf %108, %109 : vector<24x244xf32>
    %c0_67 = arith.constant 0 : index
    %c0_68 = arith.constant 0 : index
    %111 = vector.load %arg37[%c0_67, %c0_68] : memref<24x244xf32, #tpu.memory_space<vmem>>, vector<24x244xf32>
    %112 = arith.mulf %110, %111 : vector<24x244xf32>
    %c0_69 = arith.constant 0 : index
    %c0_70 = arith.constant 0 : index
    %113 = vector.load %arg12[%c0_69, %c0_70] : memref<122x244xf32, #tpu.memory_space<vmem>>, vector<122x244xf32>
    %c0_71 = arith.constant 0 : index
    %c0_72 = arith.constant 0 : index
    %114 = vector.load %arg13[%c0_71, %c0_72] : memref<48x244xf32, #tpu.memory_space<vmem>>, vector<48x244xf32>
    %115 = vector.extract_strided_slice %112 {offsets = [0, 0], sizes = [24, 122], strides = [1, 1]} : vector<24x244xf32> to vector<24x122xf32>
    %116 = vector.extract_strided_slice %112 {offsets = [0, 122], sizes = [24, 122], strides = [1, 1]} : vector<24x244xf32> to vector<24x122xf32>
    %117 = tpu.concatenate %115, %116 in 0 : vector<24x122xf32>, vector<24x122xf32> -> vector<48x122xf32>
    %cst_73 = arith.constant dense<0.000000e+00> : vector<48x244xf32>
    %118 = tpu.matmul %117, %113, %cst_73 {dimension_numbers = #tpu.dot_dimension_numbers<[1], [0], [0], [1], [0, 0, 1, 1], [], []>} : vector<48x122xf32>, vector<122x244xf32>, vector<48x244xf32> -> vector<48x244xf32>
    %119 = arith.mulf %118, %114 : vector<48x244xf32>
    %cst_74 = arith.constant 0.000000e+00 : f32
    %120 = vector.broadcast %cst_74 : f32 to vector<24x2xf32>
    %121 = vector.extract_strided_slice %119 {offsets = [0, 0], sizes = [24, 244], strides = [1, 1]} : vector<48x244xf32> to vector<24x244xf32>
    %122 = vector.extract_strided_slice %119 {offsets = [24, 0], sizes = [24, 244], strides = [1, 1]} : vector<48x244xf32> to vector<24x244xf32>
    %123 = tpu.concatenate %120, %121, %120, %122, %120 in 1 : vector<24x2xf32>, vector<24x244xf32>, vector<24x2xf32>, vector<24x244xf32>, vector<24x2xf32> -> vector<24x494xf32>
    %c0_75 = arith.constant 0 : index
    %c0_76 = arith.constant 0 : index
    %124 = vector.load %arg24[%c0_75, %c0_76] : memref<24x72xf32, #tpu.memory_space<vmem>>, vector<24x72xf32>
    %c0_77 = arith.constant 0 : index
    %c0_78 = arith.constant 0 : index
    %125 = vector.load %arg25[%c0_77, %c0_78] : memref<24x1xf32, #tpu.memory_space<vmem>>, vector<24x1xf32>
    %126 = vector.extract_strided_slice %123 {offsets = [0, 0], sizes = [24, 492], strides = [1, 1]} : vector<24x494xf32> to vector<24x492xf32>
    %127 = vector.extract_strided_slice %123 {offsets = [0, 1], sizes = [24, 492], strides = [1, 1]} : vector<24x494xf32> to vector<24x492xf32>
    %128 = vector.extract_strided_slice %123 {offsets = [0, 2], sizes = [24, 492], strides = [1, 1]} : vector<24x494xf32> to vector<24x492xf32>
    %129 = tpu.concatenate %126, %127, %128 in 0 : vector<24x492xf32>, vector<24x492xf32>, vector<24x492xf32> -> vector<72x492xf32>
    %cst_79 = arith.constant dense<0.000000e+00> : vector<24x492xf32>
    %130 = tpu.matmul %124, %129, %cst_79 {dimension_numbers = #tpu.dot_dimension_numbers<[1], [0], [0], [1], [0, 0, 1, 1], [], []>} : vector<24x72xf32>, vector<72x492xf32>, vector<24x492xf32> -> vector<24x492xf32>
    %131 = vector.broadcast %125 : vector<24x1xf32> to vector<24x492xf32>
    %132 = arith.addf %130, %131 : vector<24x492xf32>
    %cst_80 = arith.constant 0.000000e+00 : f32
    %133 = vector.broadcast %cst_80 : f32 to vector<24x492xf32>
    %134 = arith.maximumf %132, %133 : vector<24x492xf32>
    %c0_81 = arith.constant 0 : index
    %c0_82 = arith.constant 0 : index
    %135 = vector.load %arg38[%c0_81, %c0_82] : memref<24x492xf32, #tpu.memory_space<vmem>>, vector<24x492xf32>
    %136 = arith.mulf %134, %135 : vector<24x492xf32>
    %cst_83 = arith.constant 0.000000e+00 : f32
    %137 = vector.broadcast %cst_83 : f32 to vector<24x2xf32>
    %138 = vector.extract_strided_slice %136 {offsets = [0, 0], sizes = [24, 246], strides = [1, 1]} : vector<24x492xf32> to vector<24x246xf32>
    %139 = vector.extract_strided_slice %136 {offsets = [0, 246], sizes = [24, 246], strides = [1, 1]} : vector<24x492xf32> to vector<24x246xf32>
    %140 = tpu.concatenate %137, %138, %137, %139, %137 in 1 : vector<24x2xf32>, vector<24x246xf32>, vector<24x2xf32>, vector<24x246xf32>, vector<24x2xf32> -> vector<24x498xf32>
    %c0_84 = arith.constant 0 : index
    %c0_85 = arith.constant 0 : index
    %141 = vector.load %arg26[%c0_84, %c0_85] : memref<16x72xf32, #tpu.memory_space<vmem>>, vector<16x72xf32>
    %c0_86 = arith.constant 0 : index
    %c0_87 = arith.constant 0 : index
    %142 = vector.load %arg27[%c0_86, %c0_87] : memref<16x1xf32, #tpu.memory_space<vmem>>, vector<16x1xf32>
    %143 = vector.extract_strided_slice %140 {offsets = [0, 0], sizes = [24, 496], strides = [1, 1]} : vector<24x498xf32> to vector<24x496xf32>
    %144 = vector.extract_strided_slice %140 {offsets = [0, 1], sizes = [24, 496], strides = [1, 1]} : vector<24x498xf32> to vector<24x496xf32>
    %145 = vector.extract_strided_slice %140 {offsets = [0, 2], sizes = [24, 496], strides = [1, 1]} : vector<24x498xf32> to vector<24x496xf32>
    %146 = tpu.concatenate %143, %144, %145 in 0 : vector<24x496xf32>, vector<24x496xf32>, vector<24x496xf32> -> vector<72x496xf32>
    %cst_88 = arith.constant dense<0.000000e+00> : vector<16x496xf32>
    %147 = tpu.matmul %141, %146, %cst_88 {dimension_numbers = #tpu.dot_dimension_numbers<[1], [0], [0], [1], [0, 0, 1, 1], [], []>} : vector<16x72xf32>, vector<72x496xf32>, vector<16x496xf32> -> vector<16x496xf32>
    %148 = vector.broadcast %142 : vector<16x1xf32> to vector<16x496xf32>
    %149 = arith.addf %147, %148 : vector<16x496xf32>
    %cst_89 = arith.constant 0.000000e+00 : f32
    %150 = vector.broadcast %cst_89 : f32 to vector<16x496xf32>
    %151 = arith.maximumf %149, %150 : vector<16x496xf32>
    %c0_90 = arith.constant 0 : index
    %c0_91 = arith.constant 0 : index
    %152 = vector.load %arg39[%c0_90, %c0_91] : memref<16x496xf32, #tpu.memory_space<vmem>>, vector<16x496xf32>
    %153 = arith.mulf %151, %152 : vector<16x496xf32>
    %c0_92 = arith.constant 0 : index
    %c0_93 = arith.constant 0 : index
    %154 = vector.load %arg14[%c0_92, %c0_93] : memref<248x496xf32, #tpu.memory_space<vmem>>, vector<248x496xf32>
    %c0_94 = arith.constant 0 : index
    %c0_95 = arith.constant 0 : index
    %155 = vector.load %arg15[%c0_94, %c0_95] : memref<32x496xf32, #tpu.memory_space<vmem>>, vector<32x496xf32>
    %156 = vector.extract_strided_slice %153 {offsets = [0, 0], sizes = [16, 248], strides = [1, 1]} : vector<16x496xf32> to vector<16x248xf32>
    %157 = vector.extract_strided_slice %153 {offsets = [0, 248], sizes = [16, 248], strides = [1, 1]} : vector<16x496xf32> to vector<16x248xf32>
    %158 = tpu.concatenate %156, %157 in 0 : vector<16x248xf32>, vector<16x248xf32> -> vector<32x248xf32>
    %cst_96 = arith.constant dense<0.000000e+00> : vector<32x496xf32>
    %159 = tpu.matmul %158, %154, %cst_96 {dimension_numbers = #tpu.dot_dimension_numbers<[1], [0], [0], [1], [0, 0, 1, 1], [], []>} : vector<32x248xf32>, vector<248x496xf32>, vector<32x496xf32> -> vector<32x496xf32>
    %160 = arith.mulf %159, %155 : vector<32x496xf32>
    %cst_97 = arith.constant 0.000000e+00 : f32
    %161 = vector.broadcast %cst_97 : f32 to vector<16x2xf32>
    %162 = vector.extract_strided_slice %160 {offsets = [0, 0], sizes = [16, 496], strides = [1, 1]} : vector<32x496xf32> to vector<16x496xf32>
    %163 = vector.extract_strided_slice %160 {offsets = [16, 0], sizes = [16, 496], strides = [1, 1]} : vector<32x496xf32> to vector<16x496xf32>
    %164 = tpu.concatenate %161, %162, %161, %163, %161 in 1 : vector<16x2xf32>, vector<16x496xf32>, vector<16x2xf32>, vector<16x496xf32>, vector<16x2xf32> -> vector<16x998xf32>
    %c0_98 = arith.constant 0 : index
    %c0_99 = arith.constant 0 : index
    %165 = vector.load %arg28[%c0_98, %c0_99] : memref<16x48xf32, #tpu.memory_space<vmem>>, vector<16x48xf32>
    %c0_100 = arith.constant 0 : index
    %c0_101 = arith.constant 0 : index
    %166 = vector.load %arg29[%c0_100, %c0_101] : memref<16x1xf32, #tpu.memory_space<vmem>>, vector<16x1xf32>
    %167 = vector.extract_strided_slice %164 {offsets = [0, 0], sizes = [16, 996], strides = [1, 1]} : vector<16x998xf32> to vector<16x996xf32>
    %168 = vector.extract_strided_slice %164 {offsets = [0, 1], sizes = [16, 996], strides = [1, 1]} : vector<16x998xf32> to vector<16x996xf32>
    %169 = vector.extract_strided_slice %164 {offsets = [0, 2], sizes = [16, 996], strides = [1, 1]} : vector<16x998xf32> to vector<16x996xf32>
    %170 = tpu.concatenate %167, %168, %169 in 0 : vector<16x996xf32>, vector<16x996xf32>, vector<16x996xf32> -> vector<48x996xf32>
    %cst_102 = arith.constant dense<0.000000e+00> : vector<16x996xf32>
    %171 = tpu.matmul %165, %170, %cst_102 {dimension_numbers = #tpu.dot_dimension_numbers<[1], [0], [0], [1], [0, 0, 1, 1], [], []>} : vector<16x48xf32>, vector<48x996xf32>, vector<16x996xf32> -> vector<16x996xf32>
    %172 = vector.broadcast %166 : vector<16x1xf32> to vector<16x996xf32>
    %173 = arith.addf %171, %172 : vector<16x996xf32>
    %cst_103 = arith.constant 0.000000e+00 : f32
    %174 = vector.broadcast %cst_103 : f32 to vector<16x996xf32>
    %175 = arith.maximumf %173, %174 : vector<16x996xf32>
    %c0_104 = arith.constant 0 : index
    %c0_105 = arith.constant 0 : index
    %176 = vector.load %arg40[%c0_104, %c0_105] : memref<16x996xf32, #tpu.memory_space<vmem>>, vector<16x996xf32>
    %177 = arith.mulf %175, %176 : vector<16x996xf32>
    %cst_106 = arith.constant 0.000000e+00 : f32
    %178 = vector.broadcast %cst_106 : f32 to vector<16x2xf32>
    %179 = vector.extract_strided_slice %177 {offsets = [0, 0], sizes = [16, 498], strides = [1, 1]} : vector<16x996xf32> to vector<16x498xf32>
    %180 = vector.extract_strided_slice %177 {offsets = [0, 498], sizes = [16, 498], strides = [1, 1]} : vector<16x996xf32> to vector<16x498xf32>
    %181 = tpu.concatenate %178, %179, %178, %180, %178 in 1 : vector<16x2xf32>, vector<16x498xf32>, vector<16x2xf32>, vector<16x498xf32>, vector<16x2xf32> -> vector<16x1002xf32>
    %c0_107 = arith.constant 0 : index
    %c0_108 = arith.constant 0 : index
    %182 = vector.load %arg30[%c0_107, %c0_108] : memref<8x48xf32, #tpu.memory_space<vmem>>, vector<8x48xf32>
    %c0_109 = arith.constant 0 : index
    %c0_110 = arith.constant 0 : index
    %183 = vector.load %arg31[%c0_109, %c0_110] : memref<8x1xf32, #tpu.memory_space<vmem>>, vector<8x1xf32>
    %184 = vector.extract_strided_slice %181 {offsets = [0, 0], sizes = [16, 1000], strides = [1, 1]} : vector<16x1002xf32> to vector<16x1000xf32>
    %185 = vector.extract_strided_slice %181 {offsets = [0, 1], sizes = [16, 1000], strides = [1, 1]} : vector<16x1002xf32> to vector<16x1000xf32>
    %186 = vector.extract_strided_slice %181 {offsets = [0, 2], sizes = [16, 1000], strides = [1, 1]} : vector<16x1002xf32> to vector<16x1000xf32>
    %187 = tpu.concatenate %184, %185, %186 in 0 : vector<16x1000xf32>, vector<16x1000xf32>, vector<16x1000xf32> -> vector<48x1000xf32>
    %cst_111 = arith.constant dense<0.000000e+00> : vector<8x1000xf32>
    %188 = tpu.matmul %182, %187, %cst_111 {dimension_numbers = #tpu.dot_dimension_numbers<[1], [0], [0], [1], [0, 0, 1, 1], [], []>} : vector<8x48xf32>, vector<48x1000xf32>, vector<8x1000xf32> -> vector<8x1000xf32>
    %189 = vector.broadcast %183 : vector<8x1xf32> to vector<8x1000xf32>
    %190 = arith.addf %188, %189 : vector<8x1000xf32>
    %cst_112 = arith.constant 0.000000e+00 : f32
    %191 = vector.broadcast %cst_112 : f32 to vector<8x1000xf32>
    %192 = arith.subf %191, %190 : vector<8x1000xf32>
    %193 = math.exp %192 : vector<8x1000xf32>
    %cst_113 = arith.constant 1.000000e+00 : f32
    %194 = vector.broadcast %cst_113 : f32 to vector<8x1000xf32>
    %195 = arith.addf %194, %193 : vector<8x1000xf32>
    %cst_114 = arith.constant 1.000000e+00 : f32
    %196 = vector.broadcast %cst_114 : f32 to vector<8x1000xf32>
    %197 = arith.divf %196, %195 : vector<8x1000xf32>
    %198 = vector.extract_strided_slice %197 {offsets = [0, 0], sizes = [1, 500], strides = [1, 1]} : vector<8x1000xf32> to vector<1x500xf32>
    %c0_115 = arith.constant 0 : index
    %c0_116 = arith.constant 0 : index
    %199 = vector.load %arg41[%c0_115, %c0_116] : memref<2x500xf32, #tpu.memory_space<vmem>>, vector<1x500xf32>
    tpu.vector_store %arg41[%c0_115, %c0_116], %198 {strides = array<i32>} : memref<2x500xf32, #tpu.memory_space<vmem>>, vector<1x500xf32>,
    %200 = vector.extract_strided_slice %197 {offsets = [0, 500], sizes = [1, 500], strides = [1, 1]} : vector<8x1000xf32> to vector<1x500xf32>
    %c1 = arith.constant 1 : index
    %c0_117 = arith.constant 0 : index
    %201 = vector.load %arg41[%c1, %c0_117] : memref<2x500xf32, #tpu.memory_space<vmem>>, vector<1x500xf32>
    tpu.vector_store %arg41[%c1, %c0_117], %200 {strides = array<i32>} : memref<2x500xf32, #tpu.memory_space<vmem>>, vector<1x500xf32>,
    return
  }
}

</mosaic_0001>

<bundles_post_ra>
// kernel: generator_forward.3
= control target key start
LH: loop header
LB: loop body
LE: loop exit
PB: predicated region body
PF: predicated region fallthrough
CT: control target
= control target key end

     0   :  { %s4986_s6 = smov 1   ;;  %s4987_s10 = smov 2   ;;  %s6971_s0 = inlined_call_operand.smem [shape: u32[42], index: -1, kind: input, shape index: {}] }
   0x1   :  { %s5051_s5 = sld [smem:[%s6971_s0]]   ;;  %s4988_s14 = smov 3  }
   0x2   :  { %s5056_s9 = sld [smem:[%s6971_s0 + %s4986_s6]]   ;;  %s4989_s18 = smov 4  }
   0x3   :  { %s5061_s13 = sld [smem:[%s6971_s0 + %s4987_s10]]   ;;  %s4990_s22 = smov 5  }
   0x4   :  { %s5066_s17 = sld [smem:[%s6971_s0 + %s4988_s14]]   ;;  %s4991_s26 = smov 6  }
   0x5   :  { %s5071_s21 = sld [smem:[%s6971_s0 + %s4989_s18]]   ;;  %s4992_s30 = smov 7  }
   0x6   :  { %s5076_s25 = sld [smem:[%s6971_s0 + %s4990_s22]]   ;;  %s4993_s4 = smov 8  }
   0x7   :  { %s5081_s29 = sld [smem:[%s6971_s0 + %s4991_s26]]   ;;  %s4994_s10 = smov 9  }
   0x8   :  { %s5086_s3 = sld [smem:[%s6971_s0 + %s4992_s30]]   ;;  %s4995_s15 = smov 10  }
   0x9   :  { %s5091_s8 = sld [smem:[%s6971_s0 + %s4993_s4]]   ;;  %s4996_s20 = smov 11  }
   0xa   :  { %s5096_s14 = sld [smem:[%s6971_s0 + %s4994_s10]]   ;;  %s4997_s26 = smov 12  }
   0xb   :  { %s5101_s19 = sld [smem:[%s6971_s0 + %s4995_s15]]   ;;  %s4998_s1 = smov 13  }
   0xc   :  { %s5106_s24 = sld [smem:[%s6971_s0 + %s4996_s20]]   ;;  %s4999_s7 = smov 14  }
   0xd   :  { %s5111_s30 = sld [smem:[%s6971_s0 + %s4997_s26]]   ;;  %s5000_s15 = smov 15  }
   0xe   :  { %s5116_s6 = sld [smem:[%s6971_s0 + %s4998_s1]]   ;;  %s5001_s22 = smov 16  }
   0xf   :  { %s5121_s12 = sld [smem:[%s6971_s0 + %s4999_s7]]   ;;  %s5002_s28 = smov 17  }
  0x10   :  { %6994 = sst [smem:[#allocation5_spill]] %s5096_s14  ;;  %s5003_s7 = smov 18  }
  0x11   :  { %6995 = sst [smem:[#allocation6_spill]] %s5101_s19 }
  0x12   :  { %6996 = sst [smem:[#allocation7_spill]] %s5106_s24 }
  0x13   :  { %6997 = sst [smem:[#allocation8_spill]] %s5111_s30 }
  0x14   :  { %6998 = sst [smem:[#allocation9_spill]] %s5116_s6 }
  0x15   :  { %6999 = sst [smem:[#allocation10_spill]] %s5121_s12 }
  0x16   :  { %s5126_s20 = sld [smem:[%s6971_s0 + %s5000_s15]]   ;;  %s5004_s15 = smov 19  }
  0x17   :  { %s5131_s27 = sld [smem:[%s6971_s0 + %s5001_s22]]   ;;  %s5005_s22 = smov 20  }
  0x18   :  { %s5136_s4 = sld [smem:[%s6971_s0 + %s5002_s28]]   ;;  %s5006_s28 = smov 21  }
  0x19   :  { %s5141_s12 = sld [smem:[%s6971_s0 + %s5003_s7]]   ;;  %s5007_s7 = smov 22  }
  0x1a   :  { %s5151_s6 = sld [smem:[%s6971_s0 + %s5005_s22]]   ;;  %s5009_s22 = smov 24  }
  0x1b   :  { %s5156_s30 = sld [smem:[%s6971_s0 + %s5006_s28]]   ;;  %s5010_s28 = smov 25  }
  0x1c   :  { %7000 = sst [smem:[#allocation11_spill]] %s5126_s20 }
  0x1d   :  { %s5146_s20 = sld [smem:[%s6971_s0 + %s5004_s15]]   ;;  %s5008_s15 = smov 23  }
  0x1e   :  { %s5161_s24 = sld [smem:[%s6971_s0 + %s5007_s7]]   ;;  %s5011_s7 = smov 26  }
  0x1f   :  { %7001 = sst [smem:[#allocation12_spill]] %s5141_s12 }
  0x20   :  { %7003 = sst [smem:[#allocation14_spill]] %s5151_s6 }
  0x21   :  { %7004 = sst [smem:[#allocation15_spill]] %s5156_s30 }
  0x22   :  { %s5166_s19 = sld [smem:[%s6971_s0 + %s5008_s15]]   ;;  %s5012_s15 = smov 27  }
  0x23   :  { %7002 = sst [smem:[#allocation13_spill]] %s5146_s20 }
  0x24   :  { %7005 = sst [smem:[#allocation16_spill]] %s5161_s24 }
  0x25   :  { %s5171_s6 = sld [smem:[%s6971_s0 + %s5009_s22]]   ;;  %s5013_s22 = smov 28  }
  0x26   :  { %s5176_s30 = sld [smem:[%s6971_s0 + %s5010_s28]]   ;;  %s5014_s28 = smov 29  }
  0x27   :  { %s5181_s24 = sld [smem:[%s6971_s0 + %s5011_s7]]   ;;  %s5015_s7 = smov 30  }
  0x28   :  { %7006 = sst [smem:[#allocation17_spill]] %s5166_s19 }
  0x29   :  { %s5186_s19 = sld [smem:[%s6971_s0 + %s5012_s15]]   ;;  %s5016_s15 = smov 31  }
  0x2b   :  { %7007 = sst [smem:[#allocation18_spill]] %s5171_s6 }
  0x2c   :  { %7008 = sst [smem:[#allocation19_spill]] %s5176_s30 }
  0x2d   :  { %7009 = sst [smem:[#allocation20_spill]] %s5181_s24 }
  0x2e   :  { %s5191_s6 = sld [smem:[%s6971_s0 + %s5013_s22]]   ;;  %s5017_s22 = smov 32  }
  0x2f   :  { %7010 = sst [smem:[#allocation21_spill]] %s5186_s19 }
  0x30   :  { %s5196_s30 = sld [smem:[%s6971_s0 + %s5014_s28]]   ;;  %s5018_s28 = smov 33  }
  0x31   :  { %s5201_s24 = sld [smem:[%s6971_s0 + %s5015_s7]]   ;;  %s5019_s7 = smov 34  }
  0x32   :  { %s5206_s19 = sld [smem:[%s6971_s0 + %s5016_s15]]   ;;  %s5020_s15 = smov 35  }
  0x34   :  { %7011 = sst [smem:[#allocation22_spill]] %s5191_s6 }
  0x35   :  { %s5211_s6 = sld [smem:[%s6971_s0 + %s5017_s22]]   ;;  %s5021_s22 = smov 36  }
  0x36   :  { %7012 = sst [smem:[#allocation23_spill]] %s5196_s30 }
  0x37   :  { %7013 = sst [smem:[#allocation24_spill]] %s5201_s24 }
  0x38   :  { %7014 = sst [smem:[#allocation25_spill]] %s5206_s19 }
  0x39   :  { %s5216_s30 = sld [smem:[%s6971_s0 + %s5018_s28]]   ;;  %s5022_s28 = smov 37  }
  0x3a   :  { %s5221_s24 = sld [smem:[%s6971_s0 + %s5019_s7]]   ;;  %s5023_s7 = smov 38  }
  0x3b   :  { %s5226_s19 = sld [smem:[%s6971_s0 + %s5020_s15]]   ;;  %s5024_s15 = smov 39  }
  0x3c   :  { %s5231_s12 = sld [smem:[%s6971_s0 + %s5021_s22]]   ;;  %s5025_s22 = smov 40  }
  0x3d   :  { %s5236_s20 = sld [smem:[%s6971_s0 + %s5022_s28]]   ;;  %s5026_s28 = smov 41  }
  0x3e   :  { %s5241_s14 = sld [smem:[%s6971_s0 + %s5023_s7]]  }
  0x41   :  { %7015 = sst [smem:[#allocation26_spill]] %s5226_s19 }
  0x42   :  { %7016 = sst [smem:[#allocation27_spill]] %s5231_s12 }
  0x43   :  { %7017 = sst [smem:[#allocation28_spill]] %s5236_s20 }
  0x44   :  { %s5246_s19 = sld [smem:[%s6971_s0 + %s5024_s15]]  }
  0x45   :  { %s5251_s12 = sld [smem:[%s6971_s0 + %s5025_s22]]  }
  0x46   :  { %s5256_s20 = sld [smem:[%s6971_s0 + %s5026_s28]]  }
  0x47   :  { %v186_v0 = vld [vmem:[%s5056_s9 + $0x70] sm:$0xff]  ;;  %v184_v1 = vld [vmem:[%s5056_s9 + $0x60] sm:$0xff]  ;;  %v187_v2 = vld [vmem:[%s5056_s9 + $0x78] sm:$0xff]  ;;  %vm194_vm0 = vcmask 523264  }
  0x48   :  { %206 = vmatpush.msra.mxu0 %v186_v0  ;;  %226 = vmatpush.msra.mxu1 %v187_v2  ;;  %v185_v3 = vld [vmem:[%s5056_s9 + $0x68] sm:$0xff]  ;;  %v182_v4 = vld [vmem:[%s5056_s9 + $0x50] sm:$0xff]  ;;  %v183_v5 = vld [vmem:[%s5056_s9 + $0x58] sm:$0xff] }
  0x49   :  { %v180_v6 = vld [vmem:[%s5056_s9 + $0x40] sm:$0xff]  ;;  %v181_v7 = vld [vmem:[%s5056_s9 + $0x48] sm:$0xff]  ;;  %v279_v8 = vld [vmem:[%s5066_s17 + $0xf0] sm:$0xff] }
  0x4a   :  { %207 = vmatpush.msra.mxu0 %v184_v1  ;;  %227 = vmatpush.msra.mxu1 %v185_v3  ;;  %v178_v9 = vld [vmem:[%s5056_s9 + $0x30] sm:$0xff]  ;;  %v179_v10 = vld [vmem:[%s5056_s9 + $0x38] sm:$0xff]  ;;  %v277_v11 = vld [vmem:[%s5066_s17 + $0xe0] sm:$0xff] }
  0x4b   :  { %309 = vmatpush.msra.mxu2 %v279_v8  ;;  %v275_v12 = vld [vmem:[%s5066_s17 + $0xd0] sm:$0xff]  ;;  %v176_v13 = vld [vmem:[%s5056_s9 + $0x20] sm:$0xff]  ;;  %v177_v14 = vld [vmem:[%s5056_s9 + $0x28] sm:$0xff] }
  0x4c   :  { %208 = vmatpush.msra.mxu0 %v182_v4  ;;  %228 = vmatpush.msra.mxu1 %v183_v5  ;;  %v273_v15 = vld [vmem:[%s5066_s17 + $0xc0] sm:$0xff]  ;;  %v174_v16 = vld [vmem:[%s5056_s9 + $0x10] sm:$0xff]  ;;  %v175_v17 = vld [vmem:[%s5056_s9 + $0x18] sm:$0xff] }
  0x4d   :  { %310 = vmatpush.msra.mxu2 %v277_v11  ;;  %v271_v18 = vld [vmem:[%s5066_s17 + $0xb0] sm:$0xff]  ;;  %v297_v19 = vld [vmem:[%s5066_s17 + $0x180] sm:$0xff]  ;;  %v173_v21 = vld [vmem:[%s5056_s9 + $0x8] sm:$0xff] }
  0x4e   :  { %209 = vmatpush.msra.mxu0 %v180_v6  ;;  %229 = vmatpush.msra.mxu1 %v181_v7  ;;  %v172_v20 = vld [vmem:[%s5056_s9] sm:$0xff]  ;;  %v295_v22 = vld [vmem:[%s5066_s17 + $0x170] sm:$0xff]  ;;  %v280_v24 = vld [vmem:[%s5066_s17 + $0xf8] sm:$0xff] }
  0x4f   :  { %311 = vmatpush.msra.mxu2 %v275_v12  ;;  %336 = vmatpush.msra.mxu3 %v297_v19  ;;  %v171_v23 = vld [vmem:[%s5051_s5] sm:$0x3]  ;;  %v298_v26 = vld [vmem:[%s5066_s17 + $0x188] sm:$0xff]  ;;  %v267_v29 = vld [vmem:[%s5066_s17 + $0x90] sm:$0xff] }
  0x50   :  { %210 = vmatpush.msra.mxu0 %v178_v9  ;;  %230 = vmatpush.msra.mxu1 %v179_v10  ;;  %v269_v25 = vld [vmem:[%s5066_s17 + $0xa0] sm:$0xff]  ;;  %v278_v28 = vld [vmem:[%s5066_s17 + $0xe8] sm:$0xff] }
  0x51   :  { %312 = vmatpush.msra.mxu2 %v273_v15  ;;  %337 = vmatpush.msra.mxu3 %v295_v22  ;;  %v293_v27 = vld [vmem:[%s5066_s17 + $0x160] sm:$0xff] }
  0x52   :  { %211 = vmatpush.msra.mxu0 %v176_v13  ;;  %231 = vmatpush.msra.mxu1 %v177_v14 }
  0x53   :  { %313 = vmatpush.msra.mxu2 %v271_v18 }
  0x54   :  { %212 = vmatpush.msra.mxu0 %v174_v16  ;;  %232 = vmatpush.msra.mxu1 %v175_v17 }
  0x56   :  { %213 = vmatpush.msra.mxu0 %v172_v20  ;;  %233 = vmatpush.msra.mxu1 %v173_v21 }
  0x57   :  { %4182 = vmatmul.msk.f32.vlgmr.msra.gmra.mxu0 %vm194_vm0, %v171_v23  ;;  %4183 = vmatmul.msk.f32.vlgmr.msra.gmra.mxu1 %vm194_vm0, %v171_v23 }
  0x58   :  { %88 = vsyncpa [#allocation3], 0  ;;  %349 = vmatpush.msrb.mxu0 %v280_v24  ;;  %314 = vmatpush.msra.mxu2 %v269_v25  ;;  %v296_v30 = vld [vmem:[%s5066_s17 + $0x178] sm:$0xff]  ;;  %v291_v31 = vld [vmem:[%s5066_s17 + $0x150] sm:$0xff]  ;;  %vm305_vm1 = vcmask 588800   ;;  %vm470_vm2 = vcmask 916480  }
  0x59   :  { %v276_v32 = vld [vmem:[%s5066_s17 + $0xd8] sm:$0xff]  ;;  %v265_v33 = vld [vmem:[%s5066_s17 + $0x80] sm:$0xff]  ;;  %376 = vmatpush.msrb.mxu1 %v298_v26  ;;  %338 = vmatpush.msra.mxu3 %v293_v27  ;;  %v294_v34 = vld [vmem:[%s5066_s17 + $0x168] sm:$0xff]  ;;  %s5027_s0 = smov 2   ;;  %s5028_s5 = smov 15   ;;  %vm685_vm3 = vcmask 15360  }
  0x5a   :  { %350 = vmatpush.msrb.mxu0 %v278_v28  ;;  %315 = vmatpush.msra.mxu2 %v267_v29  ;;  %v274_v35 = vld [vmem:[%s5066_s17 + $0xc8] sm:$0xff]  ;;  %v263_v36 = vld [vmem:[%s5066_s17 + $0x70] sm:$0xff]  ;;  %v292_v37 = vld [vmem:[%s5066_s17 + $0x158] sm:$0xff]  ;;  %vm692_vm4 = vcmask 105472   ;;  %vm699_vm5 = vcmask 121856   ;;  %vm706_vm6 = vcmask 211968  }
  0x5b   :  { %377 = vmatpush.msrb.mxu1 %v296_v30  ;;  %339 = vmatpush.msra.mxu3 %v291_v31  ;;  %v272_v38 = vld [vmem:[%s5066_s17 + $0xb8] sm:$0xff]  ;;  %v261_v39 = vld [vmem:[%s5066_s17 + $0x60] sm:$0xff]  ;;  %v270_v40 = vld [vmem:[%s5066_s17 + $0xa8] sm:$0xff]  ;;  %s5029_s9 = smov 126   ;;  %vm803_vm7 = vcmask 130048   ;;  %vm966_vm8 = vcmask 1044480  }
  0x5c   :  { %351 = vmatpush.msrb.mxu0 %v276_v32  ;;  %316 = vmatpush.msra.mxu2 %v265_v33  ;;  %v259_v41 = vld [vmem:[%s5066_s17 + $0x50] sm:$0xff]  ;;  %v268_v42 = vld [vmem:[%s5066_s17 + $0x98] sm:$0xff]  ;;  %v257_v43 = vld [vmem:[%s5066_s17 + $0x40] sm:$0xff]  ;;  %vm1089_vm9 = vcmask 236544   ;;  %vm1096_vm10 = vcmask 252928   ;;  %vm1103_vm11 = vcmask 474112  }
  0x5d   :  { %378 = vmatpush.msrb.mxu1 %v294_v34  ;;  %v266_v44 = vld [vmem:[%s5066_s17 + $0x88] sm:$0xff]  ;;  %v264_v45 = vld [vmem:[%s5066_s17 + $0x78] sm:$0xff]  ;;  %v240_v49 = vld [vmem:[%s5211_s6] sm:$0xf]  ;;  %s7023_s6 = sld [smem:[#allocation7_spill]]  ;;  %vm1394_vm12 = vcmask 982016  }
  0x5e   :  { %352 = vmatpush.msrb.mxu0 %v274_v35  ;;  %317 = vmatpush.msra.mxu2 %v263_v36  ;;  %v262_v46 = vld [vmem:[%s5066_s17 + $0x68] sm:$0xff]  ;;  %v260_v47 = vld [vmem:[%s5066_s17 + $0x58] sm:$0xff]  ;;  %242 = vst [vmem:[#allocation1] ss:$4 sm:$0xff] %v240_v49  ;;  %v255_v50 = vld [vmem:[%s5066_s17 + $0x30] sm:$0xff]  ;;  %vm1399_vm13 = vcmask 998400  }
  0x5f   :  { %379 = vmatpush.msrb.mxu1 %v292_v37  ;;  %v258_v48 = vld [vmem:[%s5066_s17 + $0x48] sm:$0xff]  ;;  %v289_v51 = vld [vmem:[%s5066_s17 + $0x140] sm:$0xff]  ;;  %v256_v52 = vld [vmem:[%s5066_s17 + $0x38] sm:$0xff]  ;;  %vm1469_vm14 = vcmask 1031168   ;;  %vm1440_vm15 = vcmask 1039360   ;;  %s7025_s7 = sld [smem:[#allocation14_spill]] }
  0x60   :  { %353 = vmatpush.msrb.mxu0 %v272_v38  ;;  %318 = vmatpush.msra.mxu2 %v261_v39  ;;  %v290_v53 = vld [vmem:[%s5066_s17 + $0x148] sm:$0xff]  ;;  %v253_v54 = vld [vmem:[%s5066_s17 + $0x20] sm:$0xff]  ;;  %v287_v55 = vld [vmem:[%s5066_s17 + $0x130] sm:$0xff]  ;;  %vm1502_vm0 = vcmask 785408   ;;  %s7026_s10 = sld [smem:[#allocation27_spill]]  ;;  %s5036_s11 = smov 4  }
  0x61   :  { %340 = vmatpush.msra.mxu3 %v289_v51  ;;  %380 = vmatpush.msrb.mxu1 %v290_v53  ;;  %v254_v56 = vld [vmem:[%s5066_s17 + $0x28] sm:$0xff]  ;;  %v288_v57 = vld [vmem:[%s5066_s17 + $0x138] sm:$0xff]  ;;  %v251_v58 = vld [vmem:[%s5066_s17 + $0x10] sm:$0xff]  ;;  %s7027_s15 = sld [smem:[#allocation17_spill]]  ;;  %s5037_s23 = smov 6  }
  0x62   :  { %354 = vmatpush.msrb.mxu0 %v270_v40  ;;  %319 = vmatpush.msra.mxu2 %v259_v41  ;;  %v285_v59 = vld [vmem:[%s5066_s17 + $0x120] sm:$0xff]  ;;  %v252_v60 = vld [vmem:[%s5066_s17 + $0x18] sm:$0xff]  ;;  %v286_v61 = vld [vmem:[%s5066_s17 + $0x128] sm:$0xff]  ;;  %s7028_s16 = sld [smem:[#allocation8_spill]]  ;;  %s5038_s28 = smov 120  }
  0x63   :  { %341 = vmatpush.msra.mxu3 %v287_v55  ;;  %381 = vmatpush.msrb.mxu1 %v288_v57  ;;  %v249_v62 = vld [vmem:[%s5066_s17] sm:$0xff]  ;;  %v283_v63 = vld [vmem:[%s5066_s17 + $0x110] sm:$0xff]  ;;  %v250_v0 = vld [vmem:[%s5066_s17 + $0x8] sm:$0xff]  ;;  %s7029_s18 = sld [smem:[#allocation16_spill]] }
  0x64   :  { %355 = vmatpush.msrb.mxu0 %v268_v42  ;;  %320 = vmatpush.msra.mxu2 %v257_v43  ;;  %v284_v1 = vld [vmem:[%s5066_s17 + $0x118] sm:$0xff]  ;;  %v281_v3 = vld [vmem:[%s5066_s17 + $0x100] sm:$0xff]  ;;  %v282_v4 = vld [vmem:[%s5066_s17 + $0x108] sm:$0xff]  ;;  %s5032_s17 = smov 115   ;;  %s7030_s22 = sld [smem:[#allocation28_spill]] }
  0x65   :  { %342 = vmatpush.msra.mxu3 %v285_v59  ;;  %382 = vmatpush.msrb.mxu1 %v286_v61  ;;  %v243_v2 = vld.sshfl [vmem:[#allocation1] sm:$0xff pattern:$0x73625140]  ;;  %v244_v5 = vld.sshfl [vmem:[#allocation1 + $0x8] sm:$0xff pattern:$0x73625140] }
  0x66   :  { %356 = vmatpush.msrb.mxu0 %v266_v44  ;;  %321 = vmatpush.msra.mxu2 %v255_v50  ;;  %v391_v6 = vld [vmem:[%s5216_s30] sm:$0xf]  ;;  %v469_v7 = vld [vmem:[%s5081_s29 + $0xe8] sm:$0xff]  ;;  %v455_v8 = vld [vmem:[%s5081_s29 + $0x78] sm:$0xff]  ;;  %s5034_s30 = smov 99   ;;  %s7031_s26 = sld [smem:[#allocation9_spill]] }
  0x67   :  { %343 = vmatpush.msra.mxu3 %v283_v63  ;;  %383 = vmatpush.msrb.mxu1 %v284_v1  ;;  %393 = vst [vmem:[#allocation1] ss:$4 sm:$0xff] %v391_v6  ;;  %v468_v9 = vld [vmem:[%s5081_s29 + $0xe0] sm:$0xff]  ;;  %v454_v10 = vld [vmem:[%s5081_s29 + $0x70] sm:$0xff]  ;;  %v467_v11 = vld [vmem:[%s5081_s29 + $0xd8] sm:$0xff]  ;;  %s7032_s1 = sld [smem:[#allocation19_spill]] }
  0x68   :  { %357 = vmatpush.msrb.mxu0 %v264_v45  ;;  %322 = vmatpush.msra.mxu2 %v253_v54  ;;  %v453_v12 = vld [vmem:[%s5081_s29 + $0x68] sm:$0xff]  ;;  %v466_v13 = vld [vmem:[%s5081_s29 + $0xd0] sm:$0xff]  ;;  %v452_v14 = vld [vmem:[%s5081_s29 + $0x60] sm:$0xff]  ;;  %s7033_s2 = sld [smem:[#allocation18_spill]] }
  0x69   :  { %344 = vmatpush.msra.mxu3 %v281_v3  ;;  %384 = vmatpush.msrb.mxu1 %v282_v4  ;;  %v465_v15 = vld [vmem:[%s5081_s29 + $0xc8] sm:$0xff]  ;;  %v451_v16 = vld [vmem:[%s5081_s29 + $0x58] sm:$0xff]  ;;  %v464_v17 = vld [vmem:[%s5081_s29 + $0xc0] sm:$0xff] }
  0x6a   :  { %358 = vmatpush.msrb.mxu0 %v262_v46  ;;  %323 = vmatpush.msra.mxu2 %v251_v58  ;;  %v450_v18 = vld [vmem:[%s5081_s29 + $0x50] sm:$0xff]  ;;  %v463_v19 = vld [vmem:[%s5081_s29 + $0xb8] sm:$0xff]  ;;  %v188_v20 = vld [vmem:[%s5061_s13] sm:$0x3]  ;;  %s5030_s13 = smov 127  }
  0x6b   :  { %507 = vmatpush.msrb.mxu3 %v455_v8  ;;  %v190_v21 = vperm.slane %v188_v20, 0  ;;  %v191_v22 = vperm.slane %v188_v20, 1  ;;  %v449_v31 = vld [vmem:[%s5081_s29 + $0x48] sm:$0xff]  ;;  %v462_v32 = vld [vmem:[%s5081_s29 + $0xb0] sm:$0xff]  ;;  %v448_v33 = vld [vmem:[%s5081_s29 + $0x40] sm:$0xff] }
  0x6c   :  { %359 = vmatpush.msrb.mxu0 %v260_v47  ;;  %324 = vmatpush.msra.mxu2 %v249_v62  ;;  %v461_v34 = vld [vmem:[%s5081_s29 + $0xa8] sm:$0xff]  ;;  %v447_v35 = vld [vmem:[%s5081_s29 + $0x38] sm:$0xff]  ;;  %v460_v36 = vld [vmem:[%s5081_s29 + $0xa0] sm:$0xff] }
  0x6d   :  { %508 = vmatpush.msrb.mxu3 %v454_v10  ;;  %v446_v37 = vld [vmem:[%s5081_s29 + $0x30] sm:$0xff]  ;;  %v459_v38 = vld [vmem:[%s5081_s29 + $0x98] sm:$0xff]  ;;  %v445_v39 = vld [vmem:[%s5081_s29 + $0x28] sm:$0xff] }
  0x6e   :  { %360 = vmatpush.msrb.mxu0 %v258_v48  ;;  %562 = vmatpush.msrb.mxu2 %v469_v7  ;;  %v458_v40 = vld [vmem:[%s5081_s29 + $0x90] sm:$0xff]  ;;  %v444_v41 = vld [vmem:[%s5081_s29 + $0x20] sm:$0xff]  ;;  %v457_v42 = vld [vmem:[%s5081_s29 + $0x88] sm:$0xff] }
  0x6f   :  { %509 = vmatpush.msrb.mxu3 %v453_v12  ;;  %v443_v43 = vld [vmem:[%s5081_s29 + $0x18] sm:$0xff]  ;;  %v456_v44 = vld [vmem:[%s5081_s29 + $0x80] sm:$0xff]  ;;  %v442_v45 = vld [vmem:[%s5081_s29 + $0x10] sm:$0xff] }
  0x70   :  { %361 = vmatpush.msrb.mxu0 %v256_v52  ;;  %563 = vmatpush.msrb.mxu2 %v468_v9  ;;  %v441_v46 = vld [vmem:[%s5081_s29 + $0x8] sm:$0xff]  ;;  %v440_v47 = vld [vmem:[%s5081_s29] sm:$0xff]  ;;  %v403_v6 = vld [vmem:[%s5076_s25 + $0x18] sm:$0xff]  ;;  %s7019_s29 = sld [smem:[#allocation13_spill]] }
  0x71   :  { %510 = vmatpush.msrb.mxu3 %v452_v14  ;;  %v299_v48 = vld [vmem:[%s5071_s21] sm:$0x3]  ;;  %v395_v55 = vld.sshfl [vmem:[#allocation1 + $0x8] sm:$0xff pattern:$0x73625140]  ;;  %v402_v9 = vld [vmem:[%s5076_s25 + $0x10] sm:$0xff] }
  0x72   :  { %362 = vmatpush.msrb.mxu0 %v254_v56  ;;  %564 = vmatpush.msrb.mxu2 %v467_v11  ;;  %v302_v49 = vperm.slane %v299_v48, 1  ;;  %v301_v54 = vperm.slane %v299_v48, 0  ;;  %v401_v61 = vld [vmem:[%s5076_s25 + $0x8] sm:$0xff]  ;;  %v400_v4 = vld [vmem:[%s5076_s25] sm:$0xff]  ;;  %v407_v14 = vld [vmem:[%s5076_s25 + $0x38] sm:$0xff]  ;;  %s7018_s21 = sld [smem:[#allocation5_spill]] }
  0x73   :  { %511 = vmatpush.msrb.mxu3 %v451_v16  ;;  %v405_v10 = vld [vmem:[%s5076_s25 + $0x28] sm:$0xff] }
  0x74   :  { %363 = vmatpush.msrb.mxu0 %v252_v60  ;;  %565 = vmatpush.msrb.mxu2 %v466_v13  ;;  %v404_v13 = vld [vmem:[%s5076_s25 + $0x20] sm:$0xff]  ;;  %v614_v48 = vld [vmem:[%s5086_s3 + $0x8] sm:$0xff] }
  0x75   :  { %512 = vmatpush.msrb.mxu3 %v450_v18  ;;  %v409_v18 = vld [vmem:[%s5076_s25 + $0x48] sm:$0xff] }
  0x76   :  { %364 = vmatpush.msrb.mxu0 %v250_v0  ;;  %566 = vmatpush.msrb.mxu2 %v465_v15  ;;  %v394_v0 = vld.sshfl [vmem:[#allocation1] sm:$0xff pattern:$0x73625140] }
  0x77   :  { %513 = vmatpush.msrb.mxu3 %v449_v31 }
  0x78   :  { %567 = vmatpush.msrb.mxu2 %v464_v17  ;;  %v406_v17 = vld [vmem:[%s5076_s25 + $0x30] sm:$0xff] }
  0x79   :  { %514 = vmatpush.msrb.mxu3 %v448_v33 }
  0x7a   :  { %568 = vmatpush.msrb.mxu2 %v463_v19 }
  0x7b   :  { %515 = vmatpush.msrb.mxu3 %v447_v35 }
  0x7c   :  { %569 = vmatpush.msrb.mxu2 %v462_v32 }
  0x7d   :  { %516 = vmatpush.msrb.mxu3 %v446_v37 }
  0x7e   :  { %570 = vmatpush.msrb.mxu2 %v461_v34 }
  0x7f   :  { %517 = vmatpush.msrb.mxu3 %v445_v39 }
  0x80   :  { %571 = vmatpush.msrb.mxu2 %v460_v36 }
  0x81   :  { %518 = vmatpush.msrb.mxu3 %v444_v41 }
  0x82   :  { %572 = vmatpush.msrb.mxu2 %v459_v38 }
  0x83   :  { %519 = vmatpush.msrb.mxu3 %v443_v43  ;;  %v613_v43 = vld [vmem:[%s5086_s3] sm:$0xff] }
  0x84   :  { %573 = vmatpush.msrb.mxu2 %v458_v40 }
  0x85   :  { %520 = vmatpush.msrb.mxu3 %v442_v45 }
  0x86   :  { %574 = vmatpush.msrb.mxu2 %v457_v42 }
  0x87   :  { %521 = vmatpush.msrb.mxu3 %v441_v46 }
  0x88   :  { %575 = vmatpush.msrb.mxu2 %v456_v44 }
  0x89   :  { %522 = vmatpush.msrb.mxu3 %v440_v47 }
  0xd4   :  { %v215_v23 = vpop.f32.mrf.mxu0  ;;  %v235_v24 = vpop.f32.mrf.mxu1 }
  0xd5   :  { %v216_v25 = vadd.f32 %v215_v23, %v190_v21  ;;  %v236_v26 = vadd.f32 %v235_v24, %v191_v22  ;;  %v408_v21 = vld [vmem:[%s5076_s25 + $0x40] sm:$0xff]  ;;  %v411_v22 = vld [vmem:[%s5076_s25 + $0x58] sm:$0xff] }
  0xd7   :  { %v238_v27 = vmax.f32 %v216_v25, 0.0  ;;  %v239_v28 = vmax.f32 %v236_v26, 0.0  ;;  %v410_v25 = vld [vmem:[%s5076_s25 + $0x50] sm:$0xff]  ;;  %s5033_s25 = smov 31  }
  0xd9   :  { %v247_v29 = vmul.f32 %v243_v2, %v238_v27  ;;  %v248_v30 = vmul.f32 %v244_v5, %v239_v28 }
  0xdb   :  { %325 = vmatmul.f32.vlgmr.msra.gmra.mxu2 %v247_v29  ;;  %365 = vmatmul.f32.vlgmr.msrb.gmra.mxu0 %v247_v29 }
  0xdc   :  { %4184 = vmatmul.msk.f32.vlgmr.msra.gmra.mxu3 %vm305_vm1, %v248_v30  ;;  %4185 = vmatmul.msk.f32.vlgmr.msrb.gmra.mxu1 %vm305_vm1, %v248_v30 }
 0x158   :  { %v366_v50 = vpop.f32.mrf.mxu0 }
 0x159   :  { %v367_v51 = vadd.f32 %v366_v50, %v302_v49  ;;  %v386_v52 = vpop.f32.mrf.mxu1 }
 0x15b   :  { %v387_v53 = vadd.f32 %v386_v52, %v367_v51 }
 0x15d   :  { %v390_v56 = vmax.f32 %v387_v53, 0.0  ;;  %v615_v53 = vld [vmem:[%s5086_s3 + $0x10] sm:$0xff] }
 0x15e   :  { %v326_v57 = vpop.f32.mrf.mxu2 }
 0x15f   :  { %v399_v58 = vmul.f32 %v395_v55, %v390_v56  ;;  %v327_v59 = vadd.f32 %v326_v57, %v301_v54  ;;  %v346_v60 = vpop.f32.mrf.mxu3 }
 0x161   :  { %v413_v62 = vperm.slane %v399_v58, 0  ;;  %v347_v63 = vadd.f32 %v346_v60, %v327_v59  ;;  %v427_v26 = vperm.slane %v399_v58, 1  ;;  %v616_v58 = vld [vmem:[%s5086_s3 + $0x18] sm:$0xff] }
 0x163   :  { %v389_v1 = vmax.f32 %v347_v63, 0.0  ;;  %v415_v2 = vmul.f32 %v413_v62, %v401_v61  ;;  %v417_v8 = vmul.f32 %v413_v62, %v403_v6  ;;  %v419_v12 = vmul.f32 %v413_v62, %v405_v10 }
 0x164   :  { %v421_v16 = vmul.f32 %v413_v62, %v407_v14  ;;  %v423_v20 = vmul.f32 %v413_v62, %v409_v18  ;;  %v425_v24 = vmul.f32 %v413_v62, %v411_v22  ;;  %v429_v28 = vmul.f32 %v427_v26, %v401_v61 }
 0x165   :  { %v398_v3 = vmul.f32 %v394_v0, %v389_v1  ;;  %4186 = vmatmul.msk.f32.vlgmr.msrb.gmra.mxu2 %vm470_vm2, %v415_v2  ;;  %v431_v31 = vmul.f32 %v427_v26, %v403_v6  ;;  %v433_v33 = vmul.f32 %v427_v26, %v405_v10  ;;  %v435_v35 = vmul.f32 %v427_v26, %v407_v14  ;;  %v618_v1 = vld [vmem:[%s5086_s3 + $0x28] sm:$0xff]  ;;  %v619_v6 = vld [vmem:[%s5086_s3 + $0x30] sm:$0xff] }
 0x166   :  { %v437_v37 = vmul.f32 %v427_v26, %v409_v18  ;;  %v439_v39 = vmul.f32 %v427_v26, %v411_v22  ;;  %v621_v18 = vld [vmem:[%s5086_s3 + $0x40] sm:$0xff] }
 0x167   :  { %v412_v5 = vperm.slane %v398_v3, 0  ;;  %v426_v29 = vperm.slane %v398_v3, 1 }
 0x169   :  { %v414_v7 = vmul.f32 %v412_v5, %v400_v4  ;;  %v416_v11 = vmul.f32 %v412_v5, %v402_v9  ;;  %v418_v15 = vmul.f32 %v412_v5, %v404_v13  ;;  %v420_v19 = vmul.f32 %v412_v5, %v406_v17 }
 0x16a   :  { %v422_v23 = vmul.f32 %v412_v5, %v408_v21  ;;  %v424_v27 = vmul.f32 %v412_v5, %v410_v25  ;;  %v428_v30 = vmul.f32 %v426_v29, %v400_v4  ;;  %v430_v32 = vmul.f32 %v426_v29, %v402_v9 }
 0x16b   :  { %523 = vmatmul.f32.vlgmr.msrb.gmra.mxu3 %v414_v7  ;;  %v432_v34 = vmul.f32 %v426_v29, %v404_v13  ;;  %v434_v36 = vmul.f32 %v426_v29, %v406_v17  ;;  %v436_v38 = vmul.f32 %v426_v29, %v408_v21  ;;  %v438_v40 = vmul.f32 %v426_v29, %v410_v25  ;;  %v623_v29 = vld [vmem:[%s5086_s3 + $0x50] sm:$0xff] }
 0x16d   :  { %4187 = vmatmul.msk.f32.gmra.mxu2 %vm470_vm2, %v417_v8 }
 0x173   :  { %526 = vmatmul.f32.gmra.mxu3 %v416_v11  ;;  %v620_v11 = vld [vmem:[%s5086_s3 + $0x38] sm:$0xff] }
 0x175   :  { %4188 = vmatmul.msk.f32.gmra.mxu2 %vm470_vm2, %v419_v12 }
 0x17b   :  { %529 = vmatmul.f32.gmra.mxu3 %v418_v15 }
 0x17d   :  { %4189 = vmatmul.msk.f32.gmra.mxu2 %vm470_vm2, %v421_v16  ;;  %v617_v16 = vld [vmem:[%s5086_s3 + $0x20] sm:$0xff] }
 0x183   :  { %532 = vmatmul.f32.gmra.mxu3 %v420_v19 }
 0x185   :  { %4190 = vmatmul.msk.f32.gmra.mxu2 %vm470_vm2, %v423_v20 }
 0x18b   :  { %535 = vmatmul.f32.gmra.mxu3 %v422_v23 }
 0x18d   :  { %4191 = vmatmul.msk.f32.gmra.mxu2 %vm470_vm2, %v425_v24  ;;  %v622_v24 = vld [vmem:[%s5086_s3 + $0x48] sm:$0xff] }
 0x193   :  { %538 = vmatmul.f32.gmra.mxu3 %v424_v27 }
 0x195   :  { %4192 = vmatmul.msk.f32.gmra.mxu2 %vm470_vm2, %v429_v28 }
 0x19b   :  { %541 = vmatmul.f32.gmra.mxu3 %v428_v30 }
 0x19d   :  { %4193 = vmatmul.msk.f32.gmra.mxu2 %vm470_vm2, %v431_v31 }
 0x1a3   :  { %544 = vmatmul.f32.gmra.mxu3 %v430_v32 }
 0x1a5   :  { %4194 = vmatmul.msk.f32.gmra.mxu2 %vm470_vm2, %v433_v33 }
 0x1ab   :  { %547 = vmatmul.f32.gmra.mxu3 %v432_v34  ;;  %v624_v34 = vld [vmem:[%s5086_s3 + $0x58] sm:$0xff]  ;;  %s7020_s3 = sld [smem:[#allocation12_spill]] }
 0x1ad   :  { %4195 = vmatmul.msk.f32.gmra.mxu2 %vm470_vm2, %v435_v35 }
 0x1b3   :  { %550 = vmatmul.f32.gmra.mxu3 %v434_v36 }
 0x1b5   :  { %4196 = vmatmul.msk.f32.gmra.mxu2 %vm470_vm2, %v437_v37 }
 0x1bb   :  { %553 = vmatmul.f32.gmra.mxu3 %v436_v38 }
 0x1bd   :  { %4197 = vmatmul.msk.f32.gmra.mxu2 %vm470_vm2, %v439_v39 }
 0x1c3   :  { %556 = vmatmul.f32.gmra.mxu3 %v438_v40 }
 0x1e8   :  { %v577_v41 = vpop.f32.mrf.mxu2 }
 0x1ee   :  { %v524_v42 = vpop.f32.mrf.mxu3 }
 0x1ef   :  { %v578_v44 = vadd.f32 %v577_v41, %v524_v42 }
 0x1f0   :  { %v580_v45 = vpop.f32.mrf.mxu2 }
 0x1f1   :  { %v625_v46 = vmul.f32 %v613_v43, %v578_v44 }
 0x1f3   :  { %643 = vrot.lane.b32.xlu2 %v625_v46, %s5027_s0 }
 0x1f6   :  { %v527_v47 = vpop.f32.mrf.mxu3 }
 0x1f7   :  { %v581_v49 = vadd.f32 %v580_v45, %v527_v47 }
 0x1f8   :  { %v583_v50 = vpop.f32.mrf.mxu2 }
 0x1f9   :  { %v626_v51 = vmul.f32 %v614_v48, %v581_v49 }
 0x1fb   :  { %645 = vrot.lane.b32.xlu1 %v626_v51, %s5027_s0 }
 0x1fe   :  { %v530_v52 = vpop.f32.mrf.mxu3 }
 0x1ff   :  { %v584_v54 = vadd.f32 %v583_v50, %v530_v52 }
 0x200   :  { %v586_v55 = vpop.f32.mrf.mxu2 }
 0x201   :  { %v627_v56 = vmul.f32 %v615_v53, %v584_v54 }
 0x203   :  { %647 = vrot.lane.b32.xlu0 %v627_v56, %s5027_s0 }
 0x206   :  { %v533_v57 = vpop.f32.mrf.mxu3 }
 0x207   :  { %v587_v59 = vadd.f32 %v586_v55, %v533_v57 }
 0x208   :  { %v589_v60 = vpop.f32.mrf.mxu2 }
 0x209   :  { %v628_v61 = vmul.f32 %v616_v58, %v587_v59 }
 0x20b   :  { %649 = vrot.lane.b32.xlu0 %v628_v61, %s5027_s0 }
 0x20e   :  { %v536_v62 = vpop.f32.mrf.mxu3 }
 0x20f   :  { %v590_v15 = vadd.f32 %v589_v60, %v536_v62 }
 0x210   :  { %v592_v63 = vpop.f32.mrf.mxu2 }
 0x211   :  { %v629_v20 = vmul.f32 %v617_v16, %v590_v15 }
 0x216   :  { %v539_v0 = vpop.f32.mrf.mxu3 }
 0x217   :  { %v593_v2 = vadd.f32 %v592_v63, %v539_v0 }
 0x218   :  { %v595_v3 = vpop.f32.mrf.mxu2 }
 0x219   :  { %v630_v4 = vmul.f32 %v618_v1, %v593_v2 }
 0x21b   :  { %653 = vrot.lane.b32.xlu1 %v630_v4, %s5027_s0 }
 0x21e   :  { %v542_v5 = vpop.f32.mrf.mxu3 }
 0x21f   :  { %v596_v7 = vadd.f32 %v595_v3, %v542_v5 }
 0x220   :  { %v598_v8 = vpop.f32.mrf.mxu2 }
 0x221   :  { %v631_v9 = vmul.f32 %v619_v6, %v596_v7 }
 0x223   :  { %667 = vrot.lane.b32.xlu2 %v631_v9, %s5028_s5 }
 0x226   :  { %v545_v10 = vpop.f32.mrf.mxu3 }
 0x227   :  { %v599_v12 = vadd.f32 %v598_v8, %v545_v10 }
 0x228   :  { %v601_v13 = vpop.f32.mrf.mxu2 }
 0x229   :  { %v632_v14 = vmul.f32 %v620_v11, %v599_v12 }
 0x22b   :  { %669 = vrot.lane.b32.xlu0 %v632_v14, %s5028_s5 }
 0x22e   :  { %v548_v17 = vpop.f32.mrf.mxu3 }
 0x22f   :  { %v602_v19 = vadd.f32 %v601_v13, %v548_v17 }
 0x230   :  { %v604_v22 = vpop.f32.mrf.mxu2 }
 0x231   :  { %v633_v21 = vmul.f32 %v621_v18, %v602_v19 }
 0x233   :  { %651 = vrot.lane.b32.xlu0 %v629_v20, %s5027_s0  ;;  %671 = vrot.lane.b32.xlu2 %v633_v21, %s5028_s5  ;;  %v714_v20 = vld [vmem:[%s5131_s27 + $0x8] sm:$0xff]  ;;  %v725_v21 = vld [vmem:[%s5136_s4] sm:$0xff] }
 0x236   :  { %v551_v23 = vpop.f32.mrf.mxu3 }
 0x237   :  { %v605_v25 = vadd.f32 %v604_v22, %v551_v23  ;;  %v5031_v22 = vmov 0  }
 0x238   :  { %v607_v27 = vpop.f32.mrf.mxu2  ;;  %4455 = vset.pattern.permute.xlu0 %v5031_v22  ;;  %4456 = vset.pattern.permute.xlu1 %v5031_v22 }
 0x239   :  { %v634_v26 = vmul.f32 %v622_v24, %v605_v25  ;;  %4457 = vset.pattern.permute.xlu2 %v5031_v22 }
 0x23b   :  { %673 = vrot.lane.b32.xlu1 %v634_v26, %s5028_s5 }
 0x23e   :  { %v554_v28 = vpop.f32.mrf.mxu3 }
 0x23f   :  { %v608_v30 = vadd.f32 %v607_v27, %v554_v28  ;;  %v716_v28 = vld [vmem:[%s5131_s27 + $0x18] sm:$0xff] }
 0x240   :  { %v610_v32 = vpop.f32.mrf.mxu2 }
 0x241   :  { %v635_v31 = vmul.f32 %v623_v29, %v608_v30  ;;  %v730_v29 = vld [vmem:[%s5136_s4 + $0x28] sm:$0xff] }
 0x243   :  { %675 = vrot.lane.b32.xlu2 %v635_v31, %s5028_s5 }
 0x246   :  { %v557_v33 = vpop.f32.mrf.mxu3 }
 0x247   :  { %v611_v35 = vadd.f32 %v610_v32, %v557_v33 }
 0x249   :  { %v636_v36 = vmul.f32 %v624_v34, %v611_v35  ;;  %v726_v34 = vld [vmem:[%s5136_s4 + $0x8] sm:$0xff] }
 0x24b   :  { %677 = vrot.lane.b32.xlu1 %v636_v36, %s5028_s5  ;;  %v718_v36 = vld [vmem:[%s5131_s27 + $0x28] sm:$0xff]  ;;  %s7037_s5 = sld [smem:[#allocation20_spill]] }
 0x24d   :  { %v644_v38 = vpop.permute.xlu2 %643 }
 0x24e   :  { %v686_v41 = vsel %vm685_vm3, 0.0, %v644_v38  ;;  %v720_v38 = vld [vmem:[%s5131_s27 + $0x38] sm:$0xff] }
 0x24f   :  { %v693_v44 = vsel %vm692_vm4, %v686_v41, 0.0  ;;  %v715_v41 = vld [vmem:[%s5131_s27 + $0x10] sm:$0xff] }
 0x26d   :  { %v646_v40 = vpop.permute.xlu1 %645 }
 0x26e   :  { %v687_v43 = vsel %vm685_vm3, 0.0, %v646_v40  ;;  %v722_v40 = vld [vmem:[%s5131_s27 + $0x48] sm:$0xff] }
 0x26f   :  { %v694_v46 = vsel %vm692_vm4, %v687_v43, 0.0  ;;  %v724_v43 = vld [vmem:[%s5131_s27 + $0x58] sm:$0xff] }
 0x275   :  { %v648_v37 = vpop.permute.xlu0 %647 }
 0x276   :  { %v688_v53 = vsel %vm685_vm3, 0.0, %v648_v37  ;;  %v728_v37 = vld [vmem:[%s5136_s4 + $0x18] sm:$0xff] }
 0x277   :  { %v695_v56 = vsel %vm692_vm4, %v688_v53, 0.0 }
 0x27d   :  { %v650_v39 = vpop.permute.xlu0 %649  ;;  %v668_v42 = vpop.permute.xlu2 %667 }
 0x27e   :  { %v5413_v45 = vsel %vm699_vm5, %v693_v44, %v668_v42  ;;  %v689_v55 = vsel %vm685_vm3, 0.0, %v650_v39  ;;  %v713_v39 = vld [vmem:[%s5131_s27] sm:$0xff]  ;;  %v727_v42 = vld [vmem:[%s5136_s4 + $0x10] sm:$0xff] }
 0x27f   :  { %v707_v49 = vsel %vm706_vm6, %v5413_v45, 0.0  ;;  %v696_v58 = vsel %vm692_vm4, %v689_v55, 0.0  ;;  %v717_v44 = vld [vmem:[%s5131_s27 + $0x20] sm:$0xff] }
 0x28d   :  { %v654_v52 = vpop.permute.xlu1 %653  ;;  %v672_v54 = vpop.permute.xlu2 %671 }
 0x28e   :  { %v5429_v57 = vsel %vm699_vm5, %v695_v56, %v672_v54  ;;  %v691_v3 = vsel %vm685_vm3, 0.0, %v654_v52 }
 0x28f   :  { %v709_v61 = vsel %vm706_vm6, %v5429_v57, 0.0  ;;  %v698_v6 = vsel %vm692_vm4, %v691_v3, 0.0 }
 0x29d   :  { %v670_v47 = vpop.permute.xlu0 %669  ;;  %v676_v4 = vpop.permute.xlu2 %675 }
 0x29e   :  { %v5417_v48 = vsel %vm699_vm5, %v694_v46, %v670_v47  ;;  %v729_v46 = vld [vmem:[%s5136_s4 + $0x20] sm:$0xff]  ;;  %s7024_s4 = sld [smem:[#allocation15_spill]] }
 0x29f   :  { %v708_v50 = vsel %vm706_vm6, %v5417_v48, 0.0  ;;  %v721_v47 = vld [vmem:[%s5131_s27 + $0x40] sm:$0xff] }
 0x2a0   :  { %v4430_v51 = vpack.i.bf16 %v707_v49, %v708_v50  ;;  %v911_v49 = vld [vmem:[%s5091_s8 + $0x8] sm:$0x1f]  ;;  %v910_v50 = vld [vmem:[%s5091_s8] sm:$0xff]  ;;  %s7021_s8 = sld [smem:[#allocation6_spill]] }
 0x2a2   :  { %4431 = vrot.lane.b32.xlu1 %v4430_v51, %s5029_s9 }
 0x2a5   :  { %v652_v0 = vpop.permute.xlu0 %651 }
 0x2a6   :  { %v690_v1 = vsel %vm685_vm3, 0.0, %v652_v0 }
 0x2a7   :  { %v697_v2 = vsel %vm692_vm4, %v690_v1, 0.0  ;;  %v899_v1 = vld [vmem:[%s5221_s24 + $0x8] sm:$0xff] }
 0x2a8   :  { %v704_v5 = vsel %vm699_vm5, %v697_v2, %v676_v4 }
 0x2a9   :  { %v711_v9 = vsel %vm706_vm6, %v704_v5, 0.0 }
 0x2aa   :  { %4446 = vrot.lane.b32.xlu1 %v4430_v51, %s5030_s13 }
 0x2ad   :  { %v674_v59 = vpop.permute.xlu1 %673 }
 0x2ae   :  { %v5433_v60 = vsel %vm699_vm5, %v696_v58, %v674_v59 }
 0x2af   :  { %v710_v62 = vsel %vm706_vm6, %v5433_v60, 0.0 }
 0x2b0   :  { %v4425_v63 = vpack.i.bf16 %v709_v61, %v710_v62 }
 0x2b2   :  { %4426 = vrot.lane.b32.xlu0 %v4425_v63, %s5029_s9  ;;  %780 = vperm.xlu1 %4456, %v726_v34  }
 0x2ba   :  { %4441 = vrot.lane.b32.xlu0 %v4425_v63, %s5030_s13  ;;  %790 = vperm.xlu1 %4456, %v728_v37   ;;  %v912_v37 = vld [vmem:[%s7018_s21] sm:$0xff] }
 0x2bd   :  { %v678_v7 = vpop.permute.xlu1 %677 }
 0x2be   :  { %v705_v8 = vsel %vm699_vm5, %v698_v6, %v678_v7  ;;  %vm1659_vm5 = vcmask 949248  }
 0x2bf   :  { %v712_v10 = vsel %vm706_vm6, %v705_v8, 0.0 }
 0x2c0   :  { %v4435_v11 = vpack.i.bf16 %v711_v9, %v712_v10 }
 0x2c2   :  { %4436 = vrot.lane.b32.xlu2 %v4435_v11, %s5030_s13  ;;  %775 = vperm.xlu0 %4455, %v725_v21  }
 0x2ca   :  { %4451 = vrot.lane.b32.xlu2 %v4435_v11, %s5029_s9  ;;  %800 = vperm.xlu0 %4455, %v730_v29  }
 0x2d2   :  { %785 = vperm.xlu2 %4457, %v727_v42  }
 0x2da   :  { %795 = vperm.xlu2 %4457, %v729_v46   ;;  %v914_v46 = vld [vmem:[%s7018_s21 + $0x10] sm:$0xff] }
 0x314   :  { %v4432_v17 = vpop.permute.xlu1 %4431 }
 0x315   :  { %v4433_v23 = vunpack.i.l.bf16 %v4432_v17  ;;  %v4434_v24 = vunpack.i.h.bf16 %v4432_v17 }
 0x31c   :  { %v4437_v12 = vpop.permute.xlu2 %4436  ;;  %v4447_v31 = vpop.permute.xlu1 %4446 }
 0x31d   :  { %v4438_v25 = vunpack.i.l.bf16 %v4437_v12  ;;  %v4439_v27 = vunpack.i.h.bf16 %v4437_v12  ;;  %v4448_v33 = vunpack.i.l.bf16 %v4447_v31  ;;  %v4449_v35 = vunpack.i.h.bf16 %v4447_v31 }
 0x324   :  { %v4427_v13 = vpop.permute.xlu0 %4426  ;;  %v4452_v14 = vpop.permute.xlu2 %4451 }
 0x325   :  { %v4428_v15 = vunpack.i.l.bf16 %v4427_v13  ;;  %v4453_v16 = vunpack.i.l.bf16 %v4452_v14  ;;  %v4429_v18 = vunpack.i.h.bf16 %v4427_v13  ;;  %v4454_v19 = vunpack.i.h.bf16 %v4452_v14  ;;  %v781_v59 = vpop.permute.xlu1 %780 }
 0x327   :  { %822 = vmatpush.msra.mxu1 %v4428_v15  ;;  %871 = vmatpush.msra.mxu0 %v4453_v16  ;;  %v901_v16 = vld [vmem:[%s5221_s24 + $0x18] sm:$0xff] }
 0x329   :  { %823 = vmatpush.msra.mxu1 %v4429_v18  ;;  %872 = vmatpush.msra.mxu0 %v4454_v19 }
 0x32a   :  { %4204 = vmatmul.msk.f32.vlgmr.msra.gmra.mxu0 %vm803_vm7, %v714_v20 }
 0x32b   :  { %824 = vmatpush.msra.mxu1 %v4433_v23  ;;  %4210 = vmatpush.msk.msrb.mxu0 %vm966_vm8, %v911_v49  ;;  %v915_v49 = vld [vmem:[%s7018_s21 + $0x18] sm:$0xff] }
 0x32c   :  { %v4442_v26 = vpop.permute.xlu0 %4441  ;;  %v786_v4 = vpop.permute.xlu2 %785 }
 0x32d   :  { %825 = vmatpush.msra.mxu1 %v4434_v24  ;;  %v4443_v30 = vunpack.i.l.bf16 %v4442_v26  ;;  %v4444_v32 = vunpack.i.h.bf16 %v4442_v26  ;;  %985 = vmatpush.msrb.mxu0 %v910_v50  ;;  %v791_v12 = vpop.permute.xlu1 %790  ;;  %v902_v24 = vld [vmem:[%s5221_s24 + $0x20] sm:$0xff] }
 0x32f   :  { %826 = vmatpush.msra.mxu1 %v4438_v25 }
 0x331   :  { %827 = vmatpush.msra.mxu1 %v4439_v27 }
 0x332   :  { %4205 = vmatmul.msk.f32.gmra.mxu0 %vm803_vm7, %v716_v28 }
 0x333   :  { %828 = vmatpush.msra.mxu1 %v4443_v30 }
 0x334   :  { %v776_v52 = vpop.permute.xlu0 %775  ;;  %v796_v20 = vpop.permute.xlu2 %795 }
 0x335   :  { %829 = vmatpush.msra.mxu1 %v4444_v32  ;;  %v903_v32 = vld [vmem:[%s5221_s24 + $0x28] sm:$0xff] }
 0x337   :  { %830 = vmatpush.msra.mxu1 %v4448_v33 }
 0x339   :  { %831 = vmatpush.msra.mxu1 %v4449_v35 }
 0x33a   :  { %4206 = vmatmul.msk.f32.gmra.mxu0 %vm803_vm7, %v718_v36 }
 0x33b   :  { %4198 = vmatpush.msk.msra.mxu1 %vm706_vm6, %v705_v8  ;;  %v900_v8 = vld [vmem:[%s5221_s24 + $0x10] sm:$0xff] }
 0x33c   :  { %v801_v26 = vpop.permute.xlu0 %800 }
 0x33d   :  { %4199 = vmatpush.msk.msra.mxu1 %vm706_vm6, %v704_v5 }
 0x33f   :  { %4200 = vmatpush.msk.msra.mxu1 %vm706_vm6, %v5433_v60 }
 0x341   :  { %4201 = vmatpush.msk.msra.mxu1 %vm706_vm6, %v5429_v57  ;;  %v898_v57 = vld [vmem:[%s5221_s24] sm:$0xff]  ;;  %s7022_s24 = sld [smem:[#allocation26_spill]] }
 0x342   :  { %4207 = vmatmul.msk.f32.gmra.mxu0 %vm803_vm7, %v720_v38 }
 0x343   :  { %4202 = vmatpush.msk.msra.mxu1 %vm706_vm6, %v5417_v48  ;;  %v723_v48 = vld [vmem:[%s5131_s27 + $0x50] sm:$0xff] }
 0x345   :  { %4203 = vmatpush.msk.msra.mxu1 %vm706_vm6, %v5413_v45  ;;  %v719_v45 = vld [vmem:[%s5131_s27 + $0x30] sm:$0xff]  ;;  %s5035_s27 = smov 122   ;;  %vm1654_vm6 = vcmask 1014784  }
 0x346   :  { %838 = vmatmul.f32.vlgmr.msra.gmra.mxu1 %v713_v39 }
 0x34a   :  { %4208 = vmatmul.msk.f32.gmra.mxu0 %vm803_vm7, %v722_v40 }
 0x34e   :  { %841 = vmatmul.f32.gmra.mxu1 %v715_v41  ;;  %v913_v41 = vld [vmem:[%s7018_s21 + $0x8] sm:$0xff] }
 0x352   :  { %4209 = vmatmul.msk.f32.gmra.mxu0 %vm803_vm7, %v724_v43 }
 0x356   :  { %844 = vmatmul.f32.gmra.mxu1 %v717_v44 }
 0x35e   :  { %847 = vmatmul.f32.gmra.mxu1 %v719_v45 }
 0x366   :  { %850 = vmatmul.f32.gmra.mxu1 %v721_v47 }
 0x36e   :  { %853 = vmatmul.f32.gmra.mxu1 %v723_v48 }
 0x3a7   :  { %v874_v51 = vpop.f32.mrf.mxu0 }
 0x3af   :  { %v877_v54 = vpop.f32.mrf.mxu0 }
 0x3b7   :  { %v880_v63 = vpop.f32.mrf.mxu0 }
 0x3bf   :  { %v883_v9 = vpop.f32.mrf.mxu0 }
 0x3c3   :  { %v839_v53 = vpop.f32.mrf.mxu1 }
 0x3c4   :  { %v840_v55 = vadd.f32 %v839_v53, %v776_v52 }
 0x3c6   :  { %v875_v56 = vadd.f32 %v874_v51, %v840_v55 }
 0x3c7   :  { %v886_v18 = vpop.f32.mrf.mxu0 }
 0x3c8   :  { %v892_v58 = vmax.f32 %v875_v56, 0.0 }
 0x3ca   :  { %v904_v60 = vmul.f32 %v898_v57, %v892_v58  ;;  %v919_v58 = vld [vmem:[%s7018_s21 + $0x38] sm:$0xff] }
 0x3cb   :  { %v842_v61 = vpop.f32.mrf.mxu1 }
 0x3cc   :  { %v843_v62 = vadd.f32 %v842_v61, %v781_v59  ;;  %930 = vrot.lane.b32.xlu1 %v904_v60, %s5032_s17  ;;  %4211 = vmatmul.msk.f32.vlgmr.msrb.gmra.mxu0 %vm692_vm4, %v904_v60  ;;  %v916_v61 = vld [vmem:[%s7018_s21 + $0x20] sm:$0xff] }
 0x3ce   :  { %v878_v0 = vadd.f32 %v877_v54, %v843_v62  ;;  %v917_v54 = vld [vmem:[%s7018_s21 + $0x28] sm:$0xff]  ;;  %v920_v62 = vld [vmem:[%s7018_s21 + $0x40] sm:$0xff] }
 0x3cf   :  { %v889_v29 = vpop.f32.mrf.mxu0 }
 0x3d0   :  { %v893_v2 = vmax.f32 %v878_v0, 0.0 }
 0x3d2   :  { %v905_v3 = vmul.f32 %v899_v1, %v893_v2  ;;  %v921_v2 = vld [vmem:[%s7018_s21 + $0x48] sm:$0xff] }
 0x3d3   :  { %v845_v5 = vpop.f32.mrf.mxu1 }
 0x3d4   :  { %v846_v6 = vadd.f32 %v845_v5, %v786_v4  ;;  %932 = vrot.lane.b32.xlu2 %v905_v3, %s5032_s17  ;;  %4212 = vmatmul.msk.f32.gmra.mxu0 %vm692_vm4, %v905_v3  ;;  %v918_v5 = vld [vmem:[%s7018_s21 + $0x30] sm:$0xff] }
 0x3d6   :  { %v881_v7 = vadd.f32 %v880_v63, %v846_v6 }
 0x3d8   :  { %v894_v10 = vmax.f32 %v881_v7, 0.0 }
 0x3da   :  { %v906_v11 = vmul.f32 %v900_v8, %v894_v10  ;;  %v922_v8 = vld [vmem:[%s7018_s21 + $0x50] sm:$0xff] }
 0x3db   :  { %v848_v13 = vpop.f32.mrf.mxu1 }
 0x3dc   :  { %v849_v14 = vadd.f32 %v848_v13, %v791_v12  ;;  %934 = vrot.lane.b32.xlu0 %v906_v11, %s5032_s17  ;;  %4213 = vmatmul.msk.f32.gmra.mxu0 %vm692_vm4, %v906_v11 }
 0x3de   :  { %v884_v15 = vadd.f32 %v883_v9, %v849_v14  ;;  %v923_v9 = vld [vmem:[%s7018_s21 + $0x58] sm:$0xff]  ;;  %s5039_s21 = smov 8  }
 0x3e0   :  { %v895_v17 = vmax.f32 %v884_v15, 0.0 }
 0x3e2   :  { %v907_v19 = vmul.f32 %v901_v16, %v895_v17 }
 0x3e3   :  { %v851_v21 = vpop.f32.mrf.mxu1 }
 0x3e4   :  { %v852_v22 = vadd.f32 %v851_v21, %v796_v20  ;;  %936 = vrot.lane.b32.xlu1 %v907_v19, %s5032_s17  ;;  %4214 = vmatmul.msk.f32.gmra.mxu0 %vm692_vm4, %v907_v19 }
 0x3e6   :  { %v887_v23 = vadd.f32 %v886_v18, %v852_v22 }
 0x3e8   :  { %v896_v25 = vmax.f32 %v887_v23, 0.0 }
 0x3ea   :  { %v908_v27 = vmul.f32 %v902_v24, %v896_v25 }
 0x3eb   :  { %v854_v28 = vpop.f32.mrf.mxu1 }
 0x3ec   :  { %v855_v30 = vadd.f32 %v854_v28, %v801_v26  ;;  %938 = vrot.lane.b32.xlu2 %v908_v27, %s5032_s17  ;;  %4215 = vmatmul.msk.f32.gmra.mxu0 %vm692_vm4, %v908_v27 }
 0x3ee   :  { %v890_v31 = vadd.f32 %v889_v29, %v855_v30 }
 0x3f0   :  { %v897_v33 = vmax.f32 %v890_v31, 0.0 }
 0x3f2   :  { %v909_v34 = vmul.f32 %v903_v32, %v897_v33 }
 0x3f4   :  { %940 = vrot.lane.b32.xlu0 %v909_v34, %s5032_s17  ;;  %4216 = vmatmul.msk.f32.gmra.mxu0 %vm692_vm4, %v909_v34  ;;  %s7038_s17 = sld [smem:[#allocation10_spill]] }
 0x42e   :  { %v933_v36 = vpop.permute.xlu2 %932 }
 0x43e   :  { %v931_v35 = vpop.permute.xlu1 %930 }
 0x43f   :  { %4217 = vmatmul.msk.f32.gmra.mxu0 %vm692_vm4, %v931_v35 }
 0x446   :  { %v939_v48 = vpop.permute.xlu2 %938 }
 0x447   :  { %4218 = vmatmul.msk.f32.gmra.mxu0 %vm692_vm4, %v933_v36 }
 0x449   :  { %v987_v38 = vpop.f32.mrf.mxu0 }
 0x44a   :  { %v1023_v39 = vmul.f32 %v987_v38, %v912_v37 }
 0x44c   :  { %1041 = vrot.lane.b32.xlu0 %v1023_v39, %s5027_s0 }
 0x44e   :  { %v935_v40 = vpop.permute.xlu0 %934 }
 0x44f   :  { %4219 = vmatmul.msk.f32.gmra.mxu0 %vm692_vm4, %v935_v40 }
 0x451   :  { %v990_v42 = vpop.f32.mrf.mxu0 }
 0x452   :  { %v1024_v43 = vmul.f32 %v990_v42, %v913_v41 }
 0x454   :  { %1043 = vrot.lane.b32.xlu1 %v1024_v43, %s5027_s0 }
 0x456   :  { %v937_v44 = vpop.permute.xlu1 %936 }
 0x457   :  { %4220 = vmatmul.msk.f32.gmra.mxu0 %vm692_vm4, %v937_v44 }
 0x459   :  { %v993_v45 = vpop.f32.mrf.mxu0 }
 0x45a   :  { %v1025_v47 = vmul.f32 %v993_v45, %v914_v46 }
 0x45c   :  { %1045 = vrot.lane.b32.xlu2 %v1025_v47, %s5027_s0 }
 0x45f   :  { %4221 = vmatmul.msk.f32.gmra.mxu0 %vm692_vm4, %v939_v48 }
 0x461   :  { %v996_v50 = vpop.f32.mrf.mxu0 }
 0x462   :  { %v1026_v51 = vmul.f32 %v996_v50, %v915_v49 }
 0x464   :  { %1047 = vrot.lane.b32.xlu1 %v1026_v51, %s5027_s0  ;;  %v1118_v51 = vld [vmem:[%s7019_s29] sm:$0xff] }
 0x466   :  { %v941_v52 = vpop.permute.xlu0 %940 }
 0x467   :  { %4222 = vmatmul.msk.f32.gmra.mxu0 %vm692_vm4, %v941_v52  ;;  %vm1633_vm4 = vcmask 31744  }
 0x469   :  { %v999_v53 = vpop.f32.mrf.mxu0 }
 0x46a   :  { %v1027_v0 = vmul.f32 %v999_v53, %v916_v61  ;;  %v1121_v53 = vld [vmem:[%s7019_s29 + $0x18] sm:$0xff] }
 0x471   :  { %v1002_v55 = vpop.f32.mrf.mxu0 }
 0x472   :  { %v1028_v56 = vmul.f32 %v1002_v55, %v917_v54  ;;  %v1119_v54 = vld [vmem:[%s7019_s29 + $0x8] sm:$0xff]  ;;  %v1120_v55 = vld [vmem:[%s7019_s29 + $0x10] sm:$0xff]  ;;  %s7040_s29 = sld [smem:[#allocation23_spill]] }
 0x474   :  { %1051 = vrot.lane.b32.xlu2 %v1028_v56, %s5027_s0 }
 0x4b6   :  { %v1046_v13 = vpop.permute.xlu2 %1045 }
 0x4b7   :  { %v1085_v18 = vsel %vm685_vm3, 0.0, %v1046_v13  ;;  %v1116_v13 = vld [vmem:[%s7020_s3 + $0x30] sm:$0xff] }
 0x4b8   :  { %v1092_v21 = vsel %vm1089_vm9, %v1085_v18, 0.0 }
 0x4bc   :  { %v1005_v57 = vpop.f32.mrf.mxu0 }
 0x4bd   :  { %v1029_v7 = vmul.f32 %v1005_v57, %v918_v5 }
 0x4be   :  { %v1042_v16 = vpop.permute.xlu0 %1041 }
 0x4bf   :  { %v1083_v31 = vsel %vm685_vm3, 0.0, %v1042_v16  ;;  %v1115_v16 = vld [vmem:[%s7020_s3 + $0x28] sm:$0xff] }
 0x4c0   :  { %v1090_v34 = vsel %vm1089_vm9, %v1083_v31, 0.0 }
 0x4c4   :  { %v1008_v59 = vpop.f32.mrf.mxu0 }
 0x4c5   :  { %v1030_v60 = vmul.f32 %v1008_v59, %v919_v58 }
 0x4c6   :  { %v1044_v14 = vpop.permute.xlu1 %1043 }
 0x4c7   :  { %1067 = vrot.lane.b32.xlu1 %v1030_v60, %s5033_s25  ;;  %v1084_v29 = vsel %vm685_vm3, 0.0, %v1044_v14  ;;  %v1111_v14 = vld [vmem:[%s7020_s3 + $0x8] sm:$0xff] }
 0x4c8   :  { %v1091_v32 = vsel %vm1089_vm9, %v1084_v29, 0.0 }
 0x4cc   :  { %v1011_v63 = vpop.f32.mrf.mxu0 }
 0x4cd   :  { %v1031_v1 = vmul.f32 %v1011_v63, %v920_v62 }
 0x4ce   :  { %v1052_v15 = vpop.permute.xlu2 %1051 }
 0x4cf   :  { %1049 = vrot.lane.b32.xlu1 %v1027_v0, %s5027_s0  ;;  %1069 = vrot.lane.b32.xlu2 %v1031_v1, %s5033_s25  ;;  %v1088_v40 = vsel %vm685_vm3, 0.0, %v1052_v15  ;;  %v1113_v15 = vld [vmem:[%s7020_s3 + $0x18] sm:$0xff] }
 0x4d0   :  { %v1095_v44 = vsel %vm1089_vm9, %v1088_v40, 0.0 }
 0x4d4   :  { %v1014_v3 = vpop.f32.mrf.mxu0 }
 0x4d5   :  { %v1032_v4 = vmul.f32 %v1014_v3, %v921_v2 }
 0x4d6   :  { %v1048_v17 = vpop.permute.xlu1 %1047 }
 0x4d7   :  { %1071 = vrot.lane.b32.xlu0 %v1032_v4, %s5033_s25  ;;  %v1086_v20 = vsel %vm685_vm3, 0.0, %v1048_v17  ;;  %v1117_v17 = vld [vmem:[%s7020_s3 + $0x38] sm:$0xff] }
 0x4d8   :  { %v1093_v23 = vsel %vm1089_vm9, %v1086_v20, 0.0  ;;  %v1268_v20 = vld [vmem:[%s7021_s8 + $0x10] sm:$0xff] }
 0x4dc   :  { %v1017_v6 = vpop.f32.mrf.mxu0 }
 0x4dd   :  { %v1033_v11 = vmul.f32 %v1017_v6, %v922_v8  ;;  %v1110_v8 = vld [vmem:[%s7020_s3] sm:$0xff] }
 0x4df   :  { %1065 = vrot.lane.b32.xlu0 %v1029_v7, %s5033_s25 }
 0x4e4   :  { %v1020_v10 = vpop.f32.mrf.mxu0 }
 0x4e5   :  { %v1034_v12 = vmul.f32 %v1020_v10, %v923_v9 }
 0x4e7   :  { %1073 = vrot.lane.b32.xlu0 %v1033_v11, %s5033_s25  ;;  %1075 = vrot.lane.b32.xlu2 %v1034_v12, %s5033_s25  ;;  %v1112_v11 = vld [vmem:[%s7020_s3 + $0x10] sm:$0xff]  ;;  %v1114_v12 = vld [vmem:[%s7020_s3 + $0x20] sm:$0xff]  ;;  %s5040_s25 = smov 116   ;;  %s7041_s3 = sld [smem:[#allocation22_spill]] }
 0x529   :  { %v1070_v19 = vpop.permute.xlu2 %1069 }
 0x52a   :  { %v5534_v22 = vsel %vm1096_vm10, %v1092_v21, %v1070_v19  ;;  %v1269_v19 = vld [vmem:[%s7021_s8 + $0x18] sm:$0x1f]  ;;  %v1267_v21 = vld [vmem:[%s7021_s8 + $0x8] sm:$0xff] }
 0x52b   :  { %v1106_v27 = vsel %vm1103_vm11, %v5534_v22, 0.0  ;;  %4233 = vmatpush.msk.msra.mxu3 %vm966_vm8, %v1269_v19  ;;  %vm1890_vm8 = vcmask 48128  }
 0x52d   :  { %1322 = vmatpush.msra.mxu3 %v1268_v20 }
 0x52f   :  { %1323 = vmatpush.msra.mxu3 %v1267_v21 }
 0x539   :  { %v1068_v24 = vpop.permute.xlu1 %1067 }
 0x53a   :  { %v1098_v33 = vsel %vm1096_vm10, %v1091_v32, %v1068_v24 }
 0x53b   :  { %v1105_v37 = vsel %vm1103_vm11, %v1098_v33, 0.0 }
 0x541   :  { %v1050_v38 = vpop.permute.xlu1 %1049  ;;  %v1076_v42 = vpop.permute.xlu2 %1075 }
 0x542   :  { %v1087_v43 = vsel %vm685_vm3, 0.0, %v1050_v38  ;;  %v1102_v46 = vsel %vm1096_vm10, %v1095_v44, %v1076_v42  ;;  %v1260_v44 = vld [vmem:[%s7022_s24 + $0x10] sm:$0xff] }
 0x543   :  { %v1094_v45 = vsel %vm1089_vm9, %v1087_v43, 0.0  ;;  %v1109_v49 = vsel %vm1103_vm11, %v1102_v46, 0.0 }
 0x549   :  { %v1072_v25 = vpop.permute.xlu0 %1071 }
 0x54a   :  { %v5538_v26 = vsel %vm1096_vm10, %v1093_v23, %v1072_v25 }
 0x54b   :  { %v1107_v28 = vsel %vm1103_vm11, %v5538_v26, 0.0 }
 0x54c   :  { %v4458_v30 = vpack.i.bf16 %v1106_v27, %v1107_v28 }
 0x54e   :  { %4459 = vrot.lane.b32.xlu1 %v4458_v30, %s5029_s9 }
 0x551   :  { %v1066_v35 = vpop.permute.xlu0 %1065 }
 0x552   :  { %v1097_v36 = vsel %vm1096_vm10, %v1090_v34, %v1066_v35 }
 0x553   :  { %v1104_v39 = vsel %vm1103_vm11, %v1097_v36, 0.0 }
 0x554   :  { %v4463_v41 = vpack.i.bf16 %v1104_v39, %v1105_v37  ;;  %v1259_v37 = vld [vmem:[%s7022_s24 + $0x8] sm:$0xff] }
 0x556   :  { %4474 = vrot.lane.b32.xlu1 %v4458_v30, %s5030_s13  ;;  %4464 = vrot.lane.b32.xlu2 %v4463_v41, %s5029_s9  ;;  %v1258_v30 = vld [vmem:[%s7022_s24] sm:$0xff] }
 0x559   :  { %v1074_v47 = vpop.permute.xlu0 %1073 }
 0x55a   :  { %v1101_v48 = vsel %vm1096_vm10, %v1094_v45, %v1074_v47  ;;  %vm2062_vm10 = vcmask 883712  }
 0x55b   :  { %v1108_v50 = vsel %vm1103_vm11, %v1101_v48, 0.0 }
 0x55c   :  { %v4468_v52 = vpack.i.bf16 %v1108_v50, %v1109_v49 }
 0x55e   :  { %1166 = vperm.xlu1 %4456, %v1118_v51   ;;  %4479 = vrot.lane.b32.xlu2 %v4463_v41, %s5030_s13  ;;  %v1261_v51 = vld [vmem:[%s7022_s24 + $0x18] sm:$0xff]  ;;  %s4132_s24 = sshll.u32 %s5256_s20, 4  ;;  %s4133_s24 = int_to_ptr.hbm [resolvable:$true] %s4132_s24 }
 0x55f   :  { %4469 = vrot.lane.b32.xlu0 %v4468_v52, %s5030_s13 }
 0x566   :  { %1181 = vperm.xlu1 %4456, %v1121_v53   ;;  %1171 = vperm.xlu2 %4457, %v1119_v54  }
 0x567   :  { %4484 = vrot.lane.b32.xlu0 %v4468_v52, %s5029_s9 }
 0x56f   :  { %1176 = vperm.xlu0 %4455, %v1120_v55  }
 0x5b0   :  { %v4465_v58 = vpop.permute.xlu2 %4464 }
 0x5b1   :  { %v4466_v60 = vunpack.i.l.bf16 %v4465_v58  ;;  %v4467_v61 = vunpack.i.h.bf16 %v4465_v58  ;;  %v1270_v58 = vld [vmem:[%s7023_s6] sm:$0xff] }
 0x5b8   :  { %v4480_v3 = vpop.permute.xlu2 %4479 }
 0x5b9   :  { %v4481_v5 = vunpack.i.l.bf16 %v4480_v3  ;;  %v4482_v6 = vunpack.i.h.bf16 %v4480_v3  ;;  %v1273_v3 = vld [vmem:[%s7023_s6 + $0x18] sm:$0xff] }
 0x5c0   :  { %v4460_v56 = vpop.permute.xlu1 %4459 }
 0x5c1   :  { %v4461_v57 = vunpack.i.l.bf16 %v4460_v56  ;;  %v4462_v59 = vunpack.i.h.bf16 %v4460_v56 }
 0x5c3   :  { %1196 = vmatpush.msrb.mxu1 %v4461_v57 }
 0x5c5   :  { %1197 = vmatpush.msrb.mxu1 %v4462_v59  ;;  %v1271_v59 = vld [vmem:[%s7023_s6 + $0x8] sm:$0xff] }
 0x5c7   :  { %1198 = vmatpush.msrb.mxu1 %v4466_v60 }
 0x5c8   :  { %v4475_v0 = vpop.permute.xlu1 %4474 }
 0x5c9   :  { %1199 = vmatpush.msrb.mxu1 %v4467_v61  ;;  %v4476_v2 = vunpack.i.l.bf16 %v4475_v0  ;;  %v4477_v4 = vunpack.i.h.bf16 %v4475_v0 }
 0x5d1   :  { %v4470_v62 = vpop.permute.xlu0 %4469 }
 0x5d2   :  { %v4471_v63 = vunpack.i.l.bf16 %v4470_v62  ;;  %v4472_v1 = vunpack.i.h.bf16 %v4470_v62 }
 0x5d4   :  { %1200 = vmatpush.msrb.mxu1 %v4471_v63 }
 0x5d6   :  { %1201 = vmatpush.msrb.mxu1 %v4472_v1 }
 0x5d8   :  { %1202 = vmatpush.msrb.mxu1 %v4476_v2  ;;  %v1272_v2 = vld [vmem:[%s7023_s6 + $0x10] sm:$0xff] }
 0x5d9   :  { %v4485_v7 = vpop.permute.xlu0 %4484 }
 0x5da   :  { %1203 = vmatpush.msrb.mxu1 %v4477_v4  ;;  %v4486_v9 = vunpack.i.l.bf16 %v4485_v7  ;;  %v4487_v10 = vunpack.i.h.bf16 %v4485_v7 }
 0x5dc   :  { %1204 = vmatpush.msrb.mxu1 %v4481_v5 }
 0x5de   :  { %1205 = vmatpush.msrb.mxu1 %v4482_v6 }
 0x5e0   :  { %4223 = vmatpush.msk.msrb.mxu1 %vm1103_vm11, %v1102_v46 }
 0x5e1   :  { %v1177_v40 = vpop.permute.xlu0 %1176 }
 0x5e2   :  { %4224 = vmatpush.msk.msrb.mxu1 %vm1103_vm11, %v1101_v48 }
 0x5e4   :  { %4225 = vmatpush.msk.msrb.mxu1 %vm1103_vm11, %v5538_v26  ;;  %v1167_v26 = vpop.permute.xlu1 %1166 }
 0x5e6   :  { %4226 = vmatpush.msk.msrb.mxu1 %vm1103_vm11, %v5534_v22  ;;  %v1266_v22 = vld [vmem:[%s7021_s8] sm:$0xff] }
 0x5e7   :  { %1324 = vmatpush.msra.mxu3 %v1266_v22 }
 0x5e8   :  { %4227 = vmatpush.msk.msrb.mxu1 %vm1103_vm11, %v1098_v33  ;;  %v1172_v33 = vpop.permute.xlu2 %1171 }
 0x5ea   :  { %4228 = vmatpush.msk.msrb.mxu1 %vm1103_vm11, %v1097_v36  ;;  %vm5973_vm11 = vmneg %vm685_vm3 }
 0x5eb   :  { %1212 = vmatmul.f32.vlgmr.msrb.gmra.mxu1 %v1110_v8  ;;  %v1274_v8 = vld [vmem:[%s7023_s6 + $0x20] sm:$0xff] }
 0x5ec   :  { %1239 = vmatpush.msra.mxu1 %v4486_v9  ;;  %v1182_v47 = vpop.permute.xlu1 %1181 }
 0x5ee   :  { %1240 = vmatpush.msra.mxu1 %v4487_v10 }
 0x5f3   :  { %1215 = vmatmul.f32.gmra.mxu1 %v1112_v11 }
 0x5fb   :  { %1218 = vmatmul.f32.gmra.mxu1 %v1114_v12  ;;  %v1276_v12 = vld [vmem:[%s7023_s6 + $0x30] sm:$0xff] }
 0x603   :  { %1221 = vmatmul.f32.gmra.mxu1 %v1116_v13 }
 0x60b   :  { %4229 = vmatmul.msk.f32.vlgmr.msra.gmra.mxu1 %vm803_vm7, %v1111_v14 }
 0x613   :  { %4230 = vmatmul.msk.f32.gmra.mxu1 %vm803_vm7, %v1113_v15  ;;  %v1277_v15 = vld [vmem:[%s7023_s6 + $0x38] sm:$0xff] }
 0x61b   :  { %4231 = vmatmul.msk.f32.gmra.mxu1 %vm803_vm7, %v1115_v16 }
 0x623   :  { %4232 = vmatmul.msk.f32.gmra.mxu1 %vm803_vm7, %v1117_v17  ;;  %vm1906_vm7 = vcmask 1041408  }
 0x668   :  { %v1213_v18 = vpop.f32.mrf.mxu1 }
 0x669   :  { %v1214_v27 = vadd.f32 %v1213_v18, %v1167_v26  ;;  %v1275_v18 = vld [vmem:[%s7023_s6 + $0x28] sm:$0xff] }
 0x670   :  { %v1216_v23 = vpop.f32.mrf.mxu1 }
 0x671   :  { %v1217_v34 = vadd.f32 %v1216_v23, %v1172_v33 }
 0x678   :  { %v1219_v24 = vpop.f32.mrf.mxu1 }
 0x679   :  { %v1220_v41 = vadd.f32 %v1219_v24, %v1177_v40 }
 0x680   :  { %v1222_v25 = vpop.f32.mrf.mxu1 }
 0x681   :  { %v1223_v48 = vadd.f32 %v1222_v25, %v1182_v47 }
 0x688   :  { %v1242_v28 = vpop.f32.mrf.mxu1 }
 0x689   :  { %v1243_v29 = vadd.f32 %v1242_v28, %v1214_v27 }
 0x68b   :  { %v1254_v31 = vmax.f32 %v1243_v29, 0.0 }
 0x68d   :  { %v1262_v32 = vmul.f32 %v1258_v30, %v1254_v31 }
 0x68f   :  { %1282 = vrot.lane.b32.xlu2 %v1262_v32, %s5034_s30  ;;  %4234 = vmatmul.msk.f32.vlgmr.msra.gmra.mxu3 %vm1089_vm9, %v1262_v32 }
 0x690   :  { %v1245_v35 = vpop.f32.mrf.mxu1 }
 0x691   :  { %v1246_v36 = vadd.f32 %v1245_v35, %v1217_v34 }
 0x693   :  { %v1255_v38 = vmax.f32 %v1246_v36, 0.0 }
 0x695   :  { %v1263_v39 = vmul.f32 %v1259_v37, %v1255_v38 }
 0x697   :  { %1284 = vrot.lane.b32.xlu0 %v1263_v39, %s5034_s30  ;;  %4235 = vmatmul.msk.f32.gmra.mxu3 %vm1089_vm9, %v1263_v39 }
 0x698   :  { %v1248_v42 = vpop.f32.mrf.mxu1 }
 0x699   :  { %v1249_v43 = vadd.f32 %v1248_v42, %v1220_v41 }
 0x69b   :  { %v1256_v46 = vmax.f32 %v1249_v43, 0.0 }
 0x69d   :  { %v1264_v45 = vmul.f32 %v1260_v44, %v1256_v46 }
 0x69f   :  { %1286 = vrot.lane.b32.xlu1 %v1264_v45, %s5034_s30  ;;  %4236 = vmatmul.msk.f32.gmra.mxu3 %vm1089_vm9, %v1264_v45 }
 0x6a0   :  { %v1251_v49 = vpop.f32.mrf.mxu1 }
 0x6a1   :  { %v1252_v50 = vadd.f32 %v1251_v49, %v1223_v48 }
 0x6a3   :  { %v1257_v52 = vmax.f32 %v1252_v50, 0.0  ;;  %v1413_v50 = vld [vmem:[%s7024_s4 + $0x8] sm:$0xff] }
 0x6a5   :  { %v1265_v53 = vmul.f32 %v1261_v51, %v1257_v52  ;;  %v1414_v51 = vld [vmem:[%s7024_s4 + $0x10] sm:$0xff]  ;;  %v1415_v52 = vld [vmem:[%s7024_s4 + $0x18] sm:$0xff] }
 0x6a7   :  { %1288 = vrot.lane.b32.xlu2 %v1265_v53, %s5034_s30  ;;  %4237 = vmatmul.msk.f32.gmra.mxu3 %vm1089_vm9, %v1265_v53  ;;  %v1412_v53 = vld [vmem:[%s7024_s4] sm:$0xff]  ;;  %s4972_s30 = sshra.s32 %s4133_s24, 4  ;;  %s4973_s30 = int_to_ptr.hbm [resolvable:$true] %s4972_s30 }
 0x6a8   :  { %s4974_s6 = scalar_lea.hbm %s4973_s30, 8  ;;  %p4977_p1 = scmp.lt.s32.totalorder %s4973_s30, %s5256_s20 }
 0x6a9   :  { %p4975_p0 = scmp.ne.s32.totalorder %s4973_s30, %s4974_s6 }
 0x6e9   :  { %v1283_v54 = vpop.permute.xlu2 %1282 }
 0x6ea   :  { %4238 = vmatmul.msk.f32.gmra.mxu3 %vm1089_vm9, %v1283_v54 }
 0x701   :  { %v1289_v60 = vpop.permute.xlu2 %1288 }
 0x709   :  { %v1285_v55 = vpop.permute.xlu0 %1284 }
 0x70a   :  { %4239 = vmatmul.msk.f32.gmra.mxu3 %vm1089_vm9, %v1285_v55 }
 0x711   :  { %v1287_v56 = vpop.permute.xlu1 %1286 }
 0x712   :  { %v1326_v57 = vpop.f32.mrf.mxu3  ;;  %4240 = vmatmul.msk.f32.gmra.mxu3 %vm1089_vm9, %v1287_v56 }
 0x713   :  { %v1350_v62 = vmul.f32 %v1326_v57, %v1270_v58 }
 0x71a   :  { %v1329_v61 = vpop.f32.mrf.mxu3  ;;  %4241 = vmatmul.msk.f32.gmra.mxu3 %vm1089_vm9, %v1289_v60  ;;  %vm2055_vm9 = vcmask 965632  }
 0x71b   :  { %v1351_v63 = vmul.f32 %v1329_v61, %v1271_v59 }
 0x71d   :  { %v4488_v0 = vpack.i.bf16 %v1350_v62, %v1351_v63 }
 0x71f   :  { %4489 = vrot.lane.b32.xlu2 %v4488_v0, %s5027_s0 }
 0x722   :  { %v1332_v1 = vpop.f32.mrf.mxu3 }
 0x723   :  { %v1352_v5 = vmul.f32 %v1332_v1, %v1272_v2 }
 0x72a   :  { %v1335_v4 = vpop.f32.mrf.mxu3 }
 0x72b   :  { %v1353_v6 = vmul.f32 %v1335_v4, %v1273_v3 }
 0x72d   :  { %v4493_v7 = vpack.i.bf16 %v1352_v5, %v1353_v6 }
 0x72f   :  { %4494 = vrot.lane.b32.xlu0 %v4493_v7, %s5027_s0 }
 0x76d   :  { %v1338_v9 = vpop.f32.mrf.mxu3 }
 0x76e   :  { %v1354_v10 = vmul.f32 %v1338_v9, %v1274_v8 }
 0x770   :  { %1378 = vrot.lane.b32.xlu2 %v1354_v10, %s5035_s27 }
 0x779   :  { %v4490_v29 = vpop.permute.xlu2 %4489 }
 0x77a   :  { %v4492_v31 = vunpack.i.h.bf16 %v4490_v29  ;;  %v4491_v34 = vunpack.i.l.bf16 %v4490_v29 }
 0x77c   :  { %v1390_v38 = vsel %vm685_vm3, 0.0, %v4492_v31  ;;  %v1391_v40 = vsel %vm685_vm3, 0.0, %v4491_v34 }
 0x77d   :  { %v1395_v41 = vsel %vm1394_vm12, %v1390_v38, 0.0  ;;  %v1396_v44 = vsel %vm1394_vm12, %v1391_v40, 0.0  ;;  %v1581_v38 = vld [vmem:[%s7026_s10] sm:$0xff]  ;;  %v1583_v40 = vld [vmem:[%s7026_s10 + $0x10] sm:$0xff] }
 0x78d   :  { %v1341_v11 = vpop.f32.mrf.mxu3 }
 0x78e   :  { %v1355_v19 = vmul.f32 %v1341_v11, %v1275_v18 }
 0x795   :  { %v1344_v13 = vpop.f32.mrf.mxu3 }
 0x796   :  { %v1356_v14 = vmul.f32 %v1344_v13, %v1276_v12 }
 0x798   :  { %1382 = vrot.lane.b32.xlu0 %v1356_v14, %s5035_s27 }
 0x79d   :  { %v1347_v16 = vpop.f32.mrf.mxu3 }
 0x79e   :  { %v1357_v17 = vmul.f32 %v1347_v16, %v1277_v15 }
 0x7a0   :  { %1384 = vrot.lane.b32.xlu1 %v1357_v17, %s5035_s27 }
 0x7a1   :  { %v4495_v20 = vpop.permute.xlu0 %4494 }
 0x7a2   :  { %v4497_v21 = vunpack.i.h.bf16 %v4495_v20  ;;  %v4496_v25 = vunpack.i.l.bf16 %v4495_v20 }
 0x7a4   :  { %v1392_v22 = vsel %vm685_vm3, 0.0, %v4497_v21  ;;  %v1393_v30 = vsel %vm685_vm3, 0.0, %v4496_v25  ;;  %v1411_v25 = vld [vmem:[%s7025_s7 + $0x18] sm:$0xff] }
 0x7a5   :  { %v1397_v23 = vsel %vm1394_vm12, %v1392_v22, 0.0  ;;  %v1398_v32 = vsel %vm1394_vm12, %v1393_v30, 0.0  ;;  %v1408_v22 = vld [vmem:[%s7025_s7] sm:$0xff] }
 0x7a8   :  { %1380 = vrot.lane.b32.xlu1 %v1355_v19, %s5035_s27  ;;  %s4976_s27 = scalar_lea.hbm %s5256_s20, 8 }
 0x7a9   :  { %p4978_p2 = scmp.lt.s32.totalorder %s4976_s27, %s4974_s6 }
 0x7ab   :  { %p4979_p3 = por %p4978_p2, %p4977_p1 }
 0x7ad   :  { %p4980_p4 = pnand %p4979_p3, %p4975_p0 }
 0x7ca   :  { %v5641_v39 = vpop.permute.xlu2 %1378 }
 0x7cb   :  { %v5649_v42 = vsel %vm1399_vm13, %v1395_v41, %v5641_v39  ;;  %v1404_v43 = vsel %vm470_vm2, %v5641_v39, 0.0 }
 0x7cc   :  { %v4533_v48 = vpack.i.bf16 %v1404_v43, %v5649_v42 }
 0x80a   :  { %v5619_v24 = vpop.permute.xlu0 %1382 }
 0x80b   :  { %v5623_v26 = vsel %vm1399_vm13, %v1397_v23, %v5619_v24  ;;  %v1406_v27 = vsel %vm470_vm2, %v5619_v24, 0.0  ;;  %v1409_v23 = vld [vmem:[%s7025_s7 + $0x8] sm:$0xff] }
 0x80c   :  { %v4503_v28 = vpack.i.bf16 %v1406_v27, %v5623_v26 }
 0x80e   :  { %4504 = vrot.lane.b32.xlu1 %v4503_v28, %s5029_s9 }
 0x812   :  { %v5631_v33 = vpop.permute.xlu1 %1384 }
 0x813   :  { %v5635_v35 = vsel %vm1399_vm13, %v1398_v32, %v5631_v33  ;;  %v1407_v36 = vsel %vm470_vm2, %v5631_v33, 0.0 }
 0x814   :  { %v4528_v37 = vpack.i.bf16 %v1407_v36, %v5635_v35 }
 0x816   :  { %4529 = vrot.lane.b32.xlu1 %v4528_v37, %s5030_s13  ;;  %4509 = vrot.lane.b32.xlu0 %v4528_v37, %s5029_s9 }
 0x81a   :  { %v5654_v46 = vpop.permute.xlu1 %1380 }
 0x81b   :  { %v5658_v45 = vsel %vm1399_vm13, %v1396_v44, %v5654_v46  ;;  %v1405_v47 = vsel %vm470_vm2, %v5654_v46, 0.0 }
 0x81c   :  { %v4498_v49 = vpack.i.bf16 %v1405_v47, %v5658_v45 }
 0x81e   :  { %4534 = vrot.lane.b32.xlu1 %v4533_v48, %s5030_s13  ;;  %4514 = vrot.lane.b32.xlu0 %v4533_v48, %s5029_s9 }
 0x81f   :  { %4499 = vrot.lane.b32.xlu2 %v4498_v49, %s5029_s9 }
 0x826   :  { %1489 = vperm.xlu1 %4456, %v1413_v50   ;;  %4524 = vrot.lane.b32.xlu0 %v4498_v49, %s5030_s13 }
 0x827   :  { %4519 = vrot.lane.b32.xlu2 %v4503_v28, %s5030_s13 }
 0x82e   :  { %1494 = vperm.xlu0 %4455, %v1414_v51  }
 0x82f   :  { %1499 = vperm.xlu2 %4457, %v1415_v52   ;;  %v1585_v52 = vld [vmem:[%s7026_s10 + $0x20] sm:$0xff] }
 0x837   :  { %1484 = vperm.xlu2 %4457, %v1412_v53  }
 0x879   :  { %v4500_v55 = vpop.permute.xlu2 %4499 }
 0x87a   :  { %v4502_v61 = vunpack.i.h.bf16 %v4500_v55  ;;  %v4501_v62 = vunpack.i.l.bf16 %v4500_v55 }
 0x87c   :  { %v1471_v2 = vsel %vm1469_vm14, %v4501_v62, %v4502_v61 }
 0x880   :  { %v4505_v54 = vpop.permute.xlu1 %4504 }
 0x881   :  { %v4507_v57 = vunpack.i.h.bf16 %v4505_v54  ;;  %v4506_v58 = vunpack.i.l.bf16 %v4505_v54  ;;  %v4520_v3 = vpop.permute.xlu2 %4519  ;;  %v1588_v54 = vld [vmem:[%s7026_s10 + $0x38] sm:$0xff] }
 0x882   :  { %v4522_v9 = vunpack.i.h.bf16 %v4520_v3  ;;  %v4521_v10 = vunpack.i.l.bf16 %v4520_v3  ;;  %v1584_v3 = vld [vmem:[%s7026_s10 + $0x18] sm:$0xff] }
 0x883   :  { %v1472_v1 = vsel %vm1469_vm14, %v4506_v58, %v4507_v57 }
 0x884   :  { %v1443_v14 = vsel %vm1440_vm15, %v4521_v10, %v4522_v9 }
 0x888   :  { %v4510_v56 = vpop.permute.xlu0 %4509  ;;  %v4530_v0 = vpop.permute.xlu1 %4529 }
 0x889   :  { %v4512_v59 = vunpack.i.h.bf16 %v4510_v56  ;;  %v4511_v60 = vunpack.i.l.bf16 %v4510_v56  ;;  %v4532_v5 = vunpack.i.h.bf16 %v4530_v0  ;;  %v4531_v6 = vunpack.i.l.bf16 %v4530_v0  ;;  %v1500_v27 = vpop.permute.xlu2 %1499 }
 0x88b   :  { %1548 = vmatpush.msrb.mxu1 %v4512_v59  ;;  %v1473_v63 = vsel %vm1469_vm14, %v4511_v60, %v4512_v59  ;;  %v1444_v12 = vsel %vm1440_vm15, %v4531_v6, %v4532_v5  ;;  %v1587_v60 = vld [vmem:[%s7026_s10 + $0x30] sm:$0xff] }
 0x88c   :  { %1519 = vmatpush.msra.mxu2 %v1473_v63 }
 0x88d   :  { %1549 = vmatpush.msrb.mxu1 %v4507_v57 }
 0x88e   :  { %1520 = vmatpush.msra.mxu2 %v1472_v1 }
 0x88f   :  { %1550 = vmatpush.msrb.mxu1 %v4502_v61 }
 0x890   :  { %v4515_v4 = vpop.permute.xlu0 %4514  ;;  %1521 = vmatpush.msra.mxu2 %v1471_v2  ;;  %v4535_v13 = vpop.permute.xlu1 %4534 }
 0x891   :  { %v4517_v7 = vunpack.i.h.bf16 %v4515_v4  ;;  %v4516_v8 = vunpack.i.l.bf16 %v4515_v4  ;;  %v4537_v16 = vunpack.i.h.bf16 %v4535_v13  ;;  %v4536_v17 = vunpack.i.l.bf16 %v4535_v13  ;;  %v1485_v30 = vpop.permute.xlu2 %1484 }
 0x893   :  { %1551 = vmatpush.msrb.mxu1 %v4517_v7  ;;  %v1470_v11 = vsel %vm1469_vm14, %v4516_v8, %v4517_v7  ;;  %v1441_v21 = vsel %vm1440_vm15, %v4536_v17, %v4537_v16 }
 0x894   :  { %1522 = vmatpush.msra.mxu2 %v1470_v11 }
 0x895   :  { %1552 = vmatpush.msrb.mxu1 %v4532_v5  ;;  %v1582_v5 = vld [vmem:[%s7026_s10 + $0x8] sm:$0xff] }
 0x896   :  { %1523 = vmatpush.msra.mxu2 %v1444_v12 }
 0x897   :  { %1553 = vmatpush.msrb.mxu1 %v4522_v9 }
 0x898   :  { %v4525_v15 = vpop.permute.xlu0 %4524  ;;  %1524 = vmatpush.msra.mxu2 %v1443_v14  ;;  %v1490_v32 = vpop.permute.xlu1 %1489 }
 0x899   :  { %v4527_v18 = vunpack.i.h.bf16 %v4525_v15  ;;  %v4526_v19 = vunpack.i.l.bf16 %v4525_v15 }
 0x89b   :  { %1554 = vmatpush.msrb.mxu1 %v4527_v18  ;;  %v1442_v20 = vsel %vm1440_vm15, %v4526_v19, %v4527_v18 }
 0x89c   :  { %1525 = vmatpush.msra.mxu2 %v1442_v20 }
 0x89d   :  { %1555 = vmatpush.msrb.mxu1 %v4537_v16 }
 0x89e   :  { %1526 = vmatpush.msra.mxu2 %v1441_v21 }
 0x89f   :  { %4246 = vmatpush.msk.msrb.mxu1 %vm470_vm2, %v5631_v33 }
 0x8a0   :  { %1527 = vmatpush.msra.mxu2 %v5635_v35  ;;  %v1495_v34 = vpop.permute.xlu0 %1494 }
 0x8a1   :  { %4247 = vmatpush.msk.msrb.mxu1 %vm470_vm2, %v5619_v24  ;;  %v1410_v24 = vld [vmem:[%s7025_s7 + $0x10] sm:$0xff] }
 0x8a2   :  { %1528 = vmatpush.msra.mxu2 %v5623_v26 }
 0x8a3   :  { %4248 = vmatpush.msk.msrb.mxu1 %vm470_vm2, %v5654_v46 }
 0x8a4   :  { %1529 = vmatpush.msra.mxu2 %v5658_v45 }
 0x8a5   :  { %4249 = vmatpush.msk.msrb.mxu1 %vm470_vm2, %v5641_v39 }
 0x8a6   :  { %1530 = vmatpush.msra.mxu2 %v5649_v42  ;;  %4250 = vmatmul.msk.f32.vlgmr.msrb.gmra.mxu1 %vm1502_vm0, %v1408_v22  ;;  %v1586_v42 = vld [vmem:[%s7026_s10 + $0x28] sm:$0xff] }
 0x8a7   :  { %4242 = vmatmul.msk.f32.vlgmr.msra.gmra.mxu2 %vm1502_vm0, %v1408_v22 }
 0x8ae   :  { %4251 = vmatmul.msk.f32.gmra.mxu1 %vm1502_vm0, %v1409_v23 }
 0x8af   :  { %4243 = vmatmul.msk.f32.gmra.mxu2 %vm1502_vm0, %v1409_v23 }
 0x8b6   :  { %4252 = vmatmul.msk.f32.gmra.mxu1 %vm1502_vm0, %v1410_v24 }
 0x8b7   :  { %4244 = vmatmul.msk.f32.gmra.mxu2 %vm1502_vm0, %v1410_v24 }
 0x8be   :  { %4253 = vmatmul.msk.f32.gmra.mxu1 %vm1502_vm0, %v1411_v25 }
 0x8bf   :  { %4245 = vmatmul.msk.f32.gmra.mxu2 %vm1502_vm0, %v1411_v25 }
 0x923   :  { %v1561_v26 = vpop.f32.mrf.mxu1 }
 0x924   :  { %v1562_v0 = vadd.f32 %v1561_v26, %v1485_v30 }
 0x926   :  { %v1574_v4 = vmax.f32 %v1562_v0, 0.0 }
 0x928   :  { %v1590_v7 = vmul.f32 %v1582_v5, %v1574_v4 }
 0x92a   :  { %v1532_v28 = vpop.f32.mrf.mxu2 }
 0x92b   :  { %v1564_v29 = vpop.f32.mrf.mxu1  ;;  %v1533_v31 = vadd.f32 %v1532_v28, %v1485_v30 }
 0x92c   :  { %v1565_v62 = vadd.f32 %v1564_v29, %v1490_v32 }
 0x92d   :  { %v1573_v35 = vmax.f32 %v1533_v31, 0.0 }
 0x92e   :  { %v1576_v2 = vmax.f32 %v1565_v62, 0.0 }
 0x92f   :  { %v1589_v44 = vmul.f32 %v1581_v38, %v1573_v35 }
 0x930   :  { %v1592_v6 = vmul.f32 %v1584_v3, %v1576_v2 }
 0x932   :  { %v1535_v33 = vpop.f32.mrf.mxu2 }
 0x933   :  { %v1536_v36 = vadd.f32 %v1535_v33, %v1490_v32  ;;  %v1567_v37 = vpop.f32.mrf.mxu1 }
 0x934   :  { %v1568_v39 = vadd.f32 %v1567_v37, %v1495_v34 }
 0x935   :  { %v1575_v41 = vmax.f32 %v1536_v36, 0.0 }
 0x936   :  { %v1578_v43 = vmax.f32 %v1568_v39, 0.0 }
 0x937   :  { %v1591_v46 = vmul.f32 %v1583_v40, %v1575_v41 }
 0x938   :  { %v1594_v45 = vmul.f32 %v1586_v42, %v1578_v43 }
 0x939   :  { %1621 = vrot.lane.b32.xlu0 %v1591_v46, %s5036_s11  ;;  %v4538_v47 = vpack.i.bf16 %v1589_v44, %v1591_v46 }
 0x93a   :  { %1627 = vrot.lane.b32.xlu1 %v1594_v45, %s5036_s11  ;;  %v1538_v48 = vpop.f32.mrf.mxu2  ;;  %v1667_v45 = vld [vmem:[%s7027_s15] sm:$0xff] }
 0x93b   :  { %v1539_v49 = vadd.f32 %v1538_v48, %v1495_v34  ;;  %v1570_v50 = vpop.f32.mrf.mxu1  ;;  %4539 = vrot.lane.b32.xlu2 %v4538_v47, %s5027_s0  ;;  %v1669_v47 = vld [vmem:[%s7027_s15 + $0x10] sm:$0xff]  ;;  %v1668_v48 = vld [vmem:[%s7027_s15 + $0x8] sm:$0xff] }
 0x93c   :  { %v1571_v51 = vadd.f32 %v1570_v50, %v1500_v27 }
 0x93d   :  { %v1577_v53 = vmax.f32 %v1539_v49, 0.0 }
 0x93e   :  { %v1580_v55 = vmax.f32 %v1571_v51, 0.0 }
 0x93f   :  { %v1593_v56 = vmul.f32 %v1585_v52, %v1577_v53 }
 0x940   :  { %v1596_v57 = vmul.f32 %v1588_v54, %v1580_v55 }
 0x941   :  { %1625 = vrot.lane.b32.xlu0 %v1593_v56, %s5036_s11 }
 0x942   :  { %v1541_v58 = vpop.f32.mrf.mxu2 }
 0x943   :  { %v1542_v59 = vadd.f32 %v1541_v58, %v1500_v27  ;;  %1631 = vrot.lane.b32.xlu2 %v1596_v57, %s5036_s11 }
 0x945   :  { %v1579_v61 = vmax.f32 %v1542_v59, 0.0 }
 0x947   :  { %v1595_v63 = vmul.f32 %v1587_v60, %v1579_v61 }
 0x949   :  { %1629 = vrot.lane.b32.xlu1 %v1595_v63, %s5036_s11  ;;  %v4543_v1 = vpack.i.bf16 %v1593_v56, %v1595_v63 }
 0x94b   :  { %4544 = vrot.lane.b32.xlu0 %v4543_v1, %s5027_s0  ;;  %1617 = vrot.lane.b32.xlu2 %v1589_v44, %s5036_s11 }
 0x951   :  { %1623 = vrot.lane.b32.xlu1 %v1592_v6, %s5036_s11 }
 0x953   :  { %1619 = vrot.lane.b32.xlu0 %v1590_v7, %s5036_s11 }
 0x995   :  { %v4540_v9 = vpop.permute.xlu2 %4539 }
 0x996   :  { %v4541_v14 = vunpack.i.l.bf16 %v4540_v9  ;;  %v4542_v22 = vunpack.i.h.bf16 %v4540_v9 }
 0x998   :  { %v1647_v23 = vsel %vm685_vm3, 0.0, %v4541_v14  ;;  %v1646_v39 = vsel %vm685_vm3, 0.0, %v4542_v22  ;;  %v1857_v14 = vld [vmem:[%s7028_s16 + $0xe8] sm:$0xff]  ;;  %v1855_v22 = vld [vmem:[%s7028_s16 + $0xd8] sm:$0xff] }
 0x999   :  { %v1651_v33 = vsel %vm1399_vm13, %v1647_v23, 0.0  ;;  %v1650_v43 = vsel %vm1399_vm13, %v1646_v39, 0.0  ;;  %v1841_v39 = vld [vmem:[%s7028_s16 + $0x68] sm:$0xff] }
 0x99d   :  { %v1632_v12 = vpop.permute.xlu2 %1631 }
 0x9a5   :  { %v1618_v35 = vpop.permute.xlu2 %1617 }
 0x9a6   :  { %v5767_v44 = vsel %vm1654_vm6, %v1650_v43, %v1618_v35  ;;  %v1837_v43 = vld [vmem:[%s7028_s16 + $0x48] sm:$0xff] }
 0x9ab   :  { %v1622_v8 = vpop.permute.xlu0 %1621 }
 0x9ac   :  { %v1628_v10 = vpop.permute.xlu1 %1627  ;;  %v5751_v36 = vsel %vm1654_vm6, %v1651_v33, %v1622_v8  ;;  %v1846_v33 = vld [vmem:[%s7028_s16 + $0x90] sm:$0xff] }
 0x9b3   :  { %v1626_v11 = vpop.permute.xlu0 %1625 }
 0x9b4   :  { %v5724_v18 = vsel %vm1633_vm4, %v1626_v11, %v1628_v10  ;;  %v1858_v10 = vld [vmem:[%s7028_s16 + $0xf0] sm:$0x3] }
 0x9b5   :  { %v1662_v26 = vsel %vm1659_vm5, %v5724_v18, 0.0  ;;  %4264 = vmatpush.msk.msra.mxu1 %vm1906_vm7, %v1858_v10 }
 0x9bb   :  { %v1630_v13 = vpop.permute.xlu1 %1629 }
 0x9bc   :  { %v5727_v19 = vsel %vm1633_vm4, %v1630_v13, %v1632_v12  ;;  %v1856_v12 = vld [vmem:[%s7028_s16 + $0xe0] sm:$0xff] }
 0x9bd   :  { %v4545_v15 = vpop.permute.xlu0 %4544  ;;  %v1663_v27 = vsel %vm1659_vm5, %v5727_v19, 0.0  ;;  %1914 = vmatpush.msra.mxu1 %v1856_v12 }
 0x9be   :  { %v4547_v16 = vunpack.i.h.bf16 %v4545_v15  ;;  %v4546_v17 = vunpack.i.l.bf16 %v4545_v15 }
 0x9c0   :  { %v1648_v20 = vsel %vm685_vm3, 0.0, %v4547_v16  ;;  %v1649_v21 = vsel %vm685_vm3, 0.0, %v4546_v17 }
 0x9c1   :  { %v1652_v24 = vsel %vm1399_vm13, %v1648_v20, 0.0  ;;  %v1653_v25 = vsel %vm1399_vm13, %v1649_v21, 0.0  ;;  %v1854_v21 = vld [vmem:[%s7028_s16 + $0xd0] sm:$0xff] }
 0x9c2   :  { %v5739_v28 = vsel %vm1654_vm6, %v1652_v24, %v1626_v11  ;;  %v5742_v29 = vsel %vm1654_vm6, %v1653_v25, %v1630_v13  ;;  %v1859_v11 = vld [vmem:[%s7028_s16 + $0xf8] sm:$0x3]  ;;  %v1852_v24 = vld [vmem:[%s7028_s16 + $0xc0] sm:$0xff]  ;;  %1915 = vmatpush.msra.mxu1 %v1854_v21  ;;  %v1853_v25 = vld [vmem:[%s7028_s16 + $0xc8] sm:$0xff] }
 0x9c3   :  { %v1624_v30 = vpop.permute.xlu1 %1623  ;;  %v4553_v31 = vpack.i.bf16 %v1662_v26, %v5739_v28  ;;  %v4558_v32 = vpack.i.bf16 %v1663_v27, %v5742_v29  ;;  %4271 = vmatpush.msk.msrb.mxu3 %vm1906_vm7, %v1859_v11  ;;  %v1850_v27 = vld [vmem:[%s7028_s16 + $0xb0] sm:$0xff] }
 0x9c4   :  { %v5748_v34 = vsel %vm1633_vm4, %v1622_v8, %v1624_v30  ;;  %1916 = vmatpush.msra.mxu1 %v1852_v24  ;;  %v1851_v30 = vld [vmem:[%s7028_s16 + $0xb8] sm:$0xff] }
 0x9c5   :  { %v1661_v37 = vsel %vm1659_vm5, %v5748_v34, 0.0  ;;  %v1620_v38 = vpop.permute.xlu0 %1619  ;;  %4554 = vrot.lane.b32.xlu2 %v4553_v31, %s5029_s9  ;;  %4559 = vrot.lane.b32.xlu1 %v4558_v32, %s5029_s9 }
 0x9c6   :  { %v4548_v40 = vpack.i.bf16 %v1661_v37, %v5751_v36  ;;  %v5760_v41 = vsel %vm1633_vm4, %v1618_v35, %v1620_v38  ;;  %1949 = vmatpush.msrb.mxu3 %v1857_v14  ;;  %1917 = vmatpush.msra.mxu1 %v1850_v27  ;;  %v1847_v35 = vld [vmem:[%s7028_s16 + $0x98] sm:$0xff]  ;;  %v1666_v37 = vld [vmem:[%s7029_s18 + $0x10] sm:$0xff]  ;;  %v1840_v38 = vld [vmem:[%s7028_s16 + $0x60] sm:$0xff] }
 0x9c7   :  { %v1660_v42 = vsel %vm1659_vm5, %v5760_v41, 0.0 }
 0x9c8   :  { %4549 = vrot.lane.b32.xlu0 %v4548_v40, %s5029_s9  ;;  %v4563_v46 = vpack.i.bf16 %v1660_v42, %v5767_v44  ;;  %1950 = vmatpush.msrb.mxu3 %v1855_v22  ;;  %v1836_v42 = vld [vmem:[%s7028_s16 + $0x40] sm:$0xff] }
 0x9ca   :  { %1951 = vmatpush.msrb.mxu3 %v1853_v25 }
 0x9cc   :  { %1952 = vmatpush.msrb.mxu3 %v1851_v30 }
 0x9cd   :  { %4579 = vrot.lane.b32.xlu2 %v4558_v32, %s5030_s13  ;;  %4564 = vrot.lane.b32.xlu1 %v4563_v46, %s5029_s9  ;;  %v1849_v32 = vld [vmem:[%s7028_s16 + $0xa8] sm:$0xff] }
 0x9ce   :  { %1953 = vmatpush.msrb.mxu3 %v1849_v32 }
 0x9d0   :  { %4569 = vrot.lane.b32.xlu0 %v4553_v31, %s5030_s13  ;;  %v1848_v31 = vld [vmem:[%s7028_s16 + $0xa0] sm:$0xff]  ;;  %1954 = vmatpush.msrb.mxu3 %v1847_v35 }
 0x9d1   :  { %1918 = vmatpush.msra.mxu1 %v1848_v31  ;;  %v1860_v31 = vld [vmem:[%s7031_s26] sm:$0xff] }
 0x9d3   :  { %1919 = vmatpush.msra.mxu1 %v1846_v33 }
 0x9d5   :  { %4584 = vrot.lane.b32.xlu2 %v4563_v46, %s5030_s13  ;;  %4574 = vrot.lane.b32.xlu1 %v4548_v40, %s5030_s13  ;;  %v1838_v40 = vld [vmem:[%s7028_s16 + $0x50] sm:$0xff]  ;;  %v1835_v46 = vld [vmem:[%s7028_s16 + $0x38] sm:$0xff] }
 0x9d8   :  { %1736 = vperm.xlu0 %4455, %v1667_v45   ;;  %v1832_v45 = vld [vmem:[%s7028_s16 + $0x20] sm:$0xff] }
 0x9dd   :  { %1746 = vperm.xlu2 %4457, %v1669_v47   ;;  %1741 = vperm.xlu1 %4456, %v1668_v48   ;;  %v1833_v47 = vld [vmem:[%s7028_s16 + $0x28] sm:$0xff]  ;;  %v1830_v48 = vld [vmem:[%s7028_s16 + $0x10] sm:$0xff] }
 0xa1f   :  { %v4555_v49 = vpop.permute.xlu2 %4554 }
 0xa20   :  { %v4557_v51 = vunpack.i.h.bf16 %v4555_v49  ;;  %v4556_v52 = vunpack.i.l.bf16 %v4555_v49  ;;  %v1831_v49 = vld [vmem:[%s7028_s16 + $0x18] sm:$0xff] }
 0xa22   :  { %v1724_v60 = vsel %vm1469_vm14, %v4556_v52, %v4557_v51 }
 0xa27   :  { %v4580_v57 = vpop.permute.xlu2 %4579 }
 0xa28   :  { %v4582_v63 = vunpack.i.h.bf16 %v4580_v57  ;;  %v4581_v0 = vunpack.i.l.bf16 %v4580_v57 }
 0xa2a   :  { %v1697_v7 = vsel %vm1440_vm15, %v4581_v0, %v4582_v63 }
 0xa2f   :  { %v4585_v8 = vpop.permute.xlu2 %4584 }
 0xa30   :  { %v4587_v15 = vunpack.i.h.bf16 %v4585_v8  ;;  %v4586_v16 = vunpack.i.l.bf16 %v4585_v8 }
 0xa32   :  { %v1694_v26 = vsel %vm1440_vm15, %v4586_v16, %v4587_v15  ;;  %v1821_v16 = vld [vmem:[%s7030_s22 + $0x28] sm:$0xff] }
 0xa37   :  { %v4560_v50 = vpop.permute.xlu1 %4559 }
 0xa38   :  { %v4562_v53 = vunpack.i.h.bf16 %v4560_v50  ;;  %v4561_v54 = vunpack.i.l.bf16 %v4560_v50  ;;  %v1828_v50 = vld [vmem:[%s7028_s16] sm:$0xff] }
 0xa3a   :  { %1788 = vmatpush.msra.mxu0 %v4562_v53  ;;  %v4550_v55 = vpop.permute.xlu0 %4549  ;;  %v1725_v56 = vsel %vm1469_vm14, %v4561_v54, %v4562_v53 }
 0xa3b   :  { %v4552_v58 = vunpack.i.h.bf16 %v4550_v55  ;;  %v4551_v59 = vunpack.i.l.bf16 %v4550_v55  ;;  %1762 = vmatpush.msrb.mxu2 %v1725_v56  ;;  %v1817_v55 = vld [vmem:[%s7030_s22 + $0x8] sm:$0xff] }
 0xa3c   :  { %1789 = vmatpush.msra.mxu0 %v4557_v51  ;;  %v1829_v51 = vld [vmem:[%s7028_s16 + $0x8] sm:$0xff] }
 0xa3d   :  { %1763 = vmatpush.msrb.mxu2 %v1724_v60  ;;  %v1723_v61 = vsel %vm1469_vm14, %v4551_v59, %v4552_v58 }
 0xa3e   :  { %1790 = vmatpush.msra.mxu0 %v4552_v58 }
 0xa3f   :  { %v4565_v62 = vpop.permute.xlu1 %4564  ;;  %1764 = vmatpush.msrb.mxu2 %v1723_v61  ;;  %v1816_v61 = vld [vmem:[%s7030_s22] sm:$0xff] }
 0xa40   :  { %v4567_v1 = vunpack.i.h.bf16 %v4565_v62  ;;  %v4566_v2 = vunpack.i.l.bf16 %v4565_v62 }
 0xa42   :  { %v4570_v3 = vpop.permute.xlu0 %4569  ;;  %1791 = vmatpush.msra.mxu0 %v4567_v1  ;;  %v1722_v4 = vsel %vm1469_vm14, %v4566_v2, %v4567_v1 }
 0xa43   :  { %v4572_v5 = vunpack.i.h.bf16 %v4570_v3  ;;  %v4571_v6 = vunpack.i.l.bf16 %v4570_v3  ;;  %1765 = vmatpush.msrb.mxu2 %v1722_v4 }
 0xa44   :  { %1792 = vmatpush.msra.mxu0 %v4582_v63 }
 0xa45   :  { %1766 = vmatpush.msrb.mxu2 %v1697_v7  ;;  %v1696_v9 = vsel %vm1440_vm15, %v4571_v6, %v4572_v5  ;;  %v1818_v6 = vld [vmem:[%s7030_s22 + $0x10] sm:$0xff] }
 0xa46   :  { %1793 = vmatpush.msra.mxu0 %v4572_v5  ;;  %v1819_v5 = vld [vmem:[%s7030_s22 + $0x18] sm:$0xff] }
 0xa47   :  { %v4575_v13 = vpop.permute.xlu1 %4574  ;;  %1767 = vmatpush.msrb.mxu2 %v1696_v9  ;;  %v1747_v9 = vpop.permute.xlu2 %1746 }
 0xa48   :  { %v4577_v17 = vunpack.i.h.bf16 %v4575_v13  ;;  %v4576_v20 = vunpack.i.l.bf16 %v4575_v13 }
 0xa4a   :  { %1794 = vmatpush.msra.mxu0 %v4577_v17  ;;  %v1695_v23 = vsel %vm1440_vm15, %v4576_v20, %v4577_v17  ;;  %v1737_v52 = vpop.permute.xlu0 %1736  ;;  %v1820_v17 = vld [vmem:[%s7030_s22 + $0x20] sm:$0xff] }
 0xa4b   :  { %1768 = vmatpush.msrb.mxu2 %v1695_v23 }
 0xa4c   :  { %1795 = vmatpush.msra.mxu0 %v4587_v15 }
 0xa4d   :  { %1769 = vmatpush.msrb.mxu2 %v1694_v26 }
 0xa4e   :  { %4257 = vmatpush.msk.msra.mxu0 %vm1659_vm5, %v5727_v19  ;;  %v1664_v19 = vld [vmem:[%s7029_s18] sm:$0xff] }
 0xa4f   :  { %1770 = vmatpush.msrb.mxu2 %v5742_v29  ;;  %v1844_v29 = vld [vmem:[%s7028_s16 + $0x80] sm:$0xff]  ;;  %v1742_v63 = vpop.permute.xlu1 %1741 }
 0xa50   :  { %4258 = vmatpush.msk.msra.mxu0 %vm1659_vm5, %v5724_v18  ;;  %v1845_v18 = vld [vmem:[%s7028_s16 + $0x88] sm:$0xff]  ;;  %1920 = vmatpush.msra.mxu1 %v1844_v29 }
 0xa51   :  { %1771 = vmatpush.msrb.mxu2 %v5739_v28  ;;  %v1842_v28 = vld [vmem:[%s7028_s16 + $0x70] sm:$0xff]  ;;  %1955 = vmatpush.msrb.mxu3 %v1845_v18  ;;  %v1861_v29 = vld [vmem:[%s7031_s26 + $0x8] sm:$0xff] }
 0xa52   :  { %4259 = vmatpush.msk.msra.mxu0 %vm1659_vm5, %v5748_v34  ;;  %v1843_v34 = vld [vmem:[%s7028_s16 + $0x78] sm:$0xff]  ;;  %1921 = vmatpush.msra.mxu1 %v1842_v28 }
 0xa53   :  { %1772 = vmatpush.msrb.mxu2 %v5751_v36  ;;  %1956 = vmatpush.msrb.mxu3 %v1843_v34  ;;  %v1665_v36 = vld [vmem:[%s7029_s18 + $0x8] sm:$0xff] }
 0xa54   :  { %4260 = vmatpush.msk.msra.mxu0 %vm1659_vm5, %v5760_v41  ;;  %1922 = vmatpush.msra.mxu1 %v1840_v38  ;;  %v1839_v41 = vld [vmem:[%s7028_s16 + $0x58] sm:$0xff] }
 0xa55   :  { %1773 = vmatpush.msrb.mxu2 %v5767_v44  ;;  %4261 = vmatmul.msk.f32.vlgmr.msra.gmra.mxu0 %vm1502_vm0, %v1664_v19  ;;  %v1834_v44 = vld [vmem:[%s7028_s16 + $0x30] sm:$0xff] }
 0xa56   :  { %4254 = vmatmul.msk.f32.vlgmr.msrb.gmra.mxu2 %vm1502_vm0, %v1664_v19  ;;  %1957 = vmatpush.msrb.mxu3 %v1841_v39  ;;  %v1864_v39 = vld [vmem:[%s7031_s26 + $0x20] sm:$0xff] }
 0xa57   :  { %1923 = vmatpush.msra.mxu1 %v1838_v40 }
 0xa58   :  { %1958 = vmatpush.msrb.mxu3 %v1839_v41 }
 0xa59   :  { %1924 = vmatpush.msra.mxu1 %v1836_v42 }
 0xa5a   :  { %1959 = vmatpush.msrb.mxu3 %v1837_v43  ;;  %v1863_v43 = vld [vmem:[%s7031_s26 + $0x18] sm:$0xff] }
 0xa5b   :  { %1925 = vmatpush.msra.mxu1 %v1834_v44  ;;  %v1865_v44 = vld [vmem:[%s7031_s26 + $0x28] sm:$0xff] }
 0xa5c   :  { %1960 = vmatpush.msrb.mxu3 %v1835_v46 }
 0xa5d   :  { %4262 = vmatmul.msk.f32.gmra.mxu0 %vm1502_vm0, %v1665_v36  ;;  %1926 = vmatpush.msra.mxu1 %v1832_v45 }
 0xa5e   :  { %4255 = vmatmul.msk.f32.gmra.mxu2 %vm1502_vm0, %v1665_v36  ;;  %1961 = vmatpush.msrb.mxu3 %v1833_v47 }
 0xa5f   :  { %1927 = vmatpush.msra.mxu1 %v1830_v48 }
 0xa60   :  { %1962 = vmatpush.msrb.mxu3 %v1831_v49 }
 0xa61   :  { %1928 = vmatpush.msra.mxu1 %v1828_v50 }
 0xa62   :  { %1963 = vmatpush.msrb.mxu3 %v1829_v51 }
 0xa65   :  { %4263 = vmatmul.msk.f32.gmra.mxu0 %vm1502_vm0, %v1666_v37 }
 0xa66   :  { %4256 = vmatmul.msk.f32.gmra.mxu2 %vm1502_vm0, %v1666_v37  ;;  %v1862_v37 = vld [vmem:[%s7031_s26 + $0x10] sm:$0xff]  ;;  %vm4092_vm0 = vcmask 1040384  }
 0xad2   :  { %v1801_v53 = vpop.f32.mrf.mxu0 }
 0xad3   :  { %v1802_v54 = vadd.f32 %v1801_v53, %v1737_v52  ;;  %v1868_v53 = vld [vmem:[%s7031_s26 + $0x40] sm:$0xff] }
 0xad5   :  { %v1811_v56 = vmax.f32 %v1802_v54, 0.0 }
 0xad7   :  { %v1823_v57 = vmul.f32 %v1817_v55, %v1811_v56  ;;  %v1870_v55 = vld [vmem:[%s7031_s26 + $0x50] sm:$0xff] }
 0xad9   :  { %1880 = vrot.lane.b32.xlu1 %v1823_v57, %s5037_s23  ;;  %v1775_v58 = vpop.f32.mrf.mxu2 }
 0xada   :  { %v1776_v59 = vadd.f32 %v1775_v58, %v1737_v52  ;;  %v1804_v60 = vpop.f32.mrf.mxu0  ;;  %v1869_v52 = vld [vmem:[%s7031_s26 + $0x48] sm:$0xff] }
 0xadb   :  { %v1805_v0 = vadd.f32 %v1804_v60, %v1742_v63 }
 0xadc   :  { %v1810_v62 = vmax.f32 %v1776_v59, 0.0 }
 0xadd   :  { %v1813_v3 = vmax.f32 %v1805_v0, 0.0  ;;  %v1866_v0 = vld [vmem:[%s7031_s26 + $0x30] sm:$0xff] }
 0xade   :  { %v1822_v1 = vmul.f32 %v1816_v61, %v1810_v62  ;;  %v1871_v61 = vld [vmem:[%s7031_s26 + $0x58] sm:$0xff] }
 0xadf   :  { %v1825_v10 = vmul.f32 %v1819_v5, %v1813_v3 }
 0xae0   :  { %1878 = vrot.lane.b32.xlu0 %v1822_v1, %s5037_s23  ;;  %4265 = vmatmul.msk.f32.vlgmr.msra.gmra.mxu1 %vm1399_vm13, %v1822_v1 }
 0xae1   :  { %4272 = vmatmul.msk.f32.vlgmr.msrb.gmra.mxu3 %vm1399_vm13, %v1822_v1  ;;  %v1778_v2 = vpop.f32.mrf.mxu2 }
 0xae2   :  { %v1779_v4 = vadd.f32 %v1778_v2, %v1742_v63  ;;  %v1807_v7 = vpop.f32.mrf.mxu0  ;;  %v1867_v2 = vld [vmem:[%s7031_s26 + $0x38] sm:$0xff] }
 0xae3   :  { %v1808_v12 = vadd.f32 %v1807_v7, %v1747_v9 }
 0xae4   :  { %v1812_v8 = vmax.f32 %v1779_v4, 0.0 }
 0xae5   :  { %v1815_v14 = vmax.f32 %v1808_v12, 0.0 }
 0xae6   :  { %v1824_v11 = vmul.f32 %v1818_v6, %v1812_v8 }
 0xae7   :  { %v1827_v21 = vmul.f32 %v1821_v16, %v1815_v14 }
 0xae8   :  { %1882 = vrot.lane.b32.xlu2 %v1824_v11, %s5037_s23  ;;  %1884 = vrot.lane.b32.xlu0 %v1825_v10, %s5037_s23 }
 0xae9   :  { %4266 = vmatmul.msk.f32.gmra.mxu1 %vm1399_vm13, %v1824_v11  ;;  %4273 = vmatmul.msk.f32.gmra.mxu3 %vm1399_vm13, %v1824_v11  ;;  %v1781_v13 = vpop.f32.mrf.mxu2 }
 0xaea   :  { %v1782_v15 = vadd.f32 %v1781_v13, %v1747_v9 }
 0xaec   :  { %v1814_v20 = vmax.f32 %v1782_v15, 0.0 }
 0xaee   :  { %v1826_v22 = vmul.f32 %v1820_v17, %v1814_v20 }
 0xaf0   :  { %1886 = vrot.lane.b32.xlu1 %v1826_v22, %s5037_s23  ;;  %1888 = vrot.lane.b32.xlu2 %v1827_v21, %s5037_s23 }
 0xaf1   :  { %4267 = vmatmul.msk.f32.gmra.mxu1 %vm1399_vm13, %v1826_v22  ;;  %4274 = vmatmul.msk.f32.gmra.mxu3 %vm1399_vm13, %v1826_v22 }
 0xb42   :  { %v1883_v26 = vpop.permute.xlu2 %1882 }
 0xb4a   :  { %v1889_v35 = vpop.permute.xlu2 %1888 }
 0xb4b   :  { %v1881_v23 = vpop.permute.xlu1 %1880 }
 0xb52   :  { %v1879_v24 = vpop.permute.xlu0 %1878 }
 0xb53   :  { %v1891_v25 = vsel %vm1890_vm8, %v1879_v24, %v1881_v23 }
 0xb54   :  { %4268 = vmatmul.msk.f32.gmra.mxu1 %vm1399_vm13, %v1891_v25  ;;  %4275 = vmatmul.msk.f32.gmra.mxu3 %vm1399_vm13, %v1891_v25 }
 0xb5a   :  { %v1885_v27 = vpop.permute.xlu0 %1884 }
 0xb5b   :  { %v1892_v30 = vsel %vm1890_vm8, %v1883_v26, %v1885_v27 }
 0xb5c   :  { %4269 = vmatmul.msk.f32.gmra.mxu1 %vm1399_vm13, %v1892_v30  ;;  %4276 = vmatmul.msk.f32.gmra.mxu3 %vm1399_vm13, %v1892_v30 }
 0xb5d   :  { %v1930_v32 = vpop.f32.mrf.mxu1 }
 0xb5e   :  { %v1983_v33 = vmul.f32 %v1930_v32, %v1860_v31 }
 0xb60   :  { %2001 = vrot.lane.b32.xlu1 %v1983_v33, %s5027_s0 }
 0xb62   :  { %v1887_v19 = vpop.permute.xlu1 %1886 }
 0xb63   :  { %v1893_v18 = vsel %vm1890_vm8, %v1887_v19, %v1889_v35 }
 0xb64   :  { %v1965_v28 = vpop.f32.mrf.mxu3  ;;  %4270 = vmatmul.msk.f32.gmra.mxu1 %vm1399_vm13, %v1893_v18  ;;  %4277 = vmatmul.msk.f32.gmra.mxu3 %vm1399_vm13, %v1893_v18 }
 0xb65   :  { %v1984_v34 = vmul.f32 %v1965_v28, %v1861_v29 }
 0xb66   :  { %v1933_v36 = vpop.f32.mrf.mxu1 }
 0xb67   :  { %2003 = vrot.lane.b32.xlu2 %v1984_v34, %s5027_s0  ;;  %v1985_v40 = vmul.f32 %v1933_v36, %v1862_v37 }
 0xb6c   :  { %v1968_v38 = vpop.f32.mrf.mxu3 }
 0xb6d   :  { %v1986_v45 = vmul.f32 %v1968_v38, %v1863_v43  ;;  %v2069_v43 = vld [vmem:[%s7032_s1] sm:$0xff] }
 0xb6e   :  { %v1936_v41 = vpop.f32.mrf.mxu1 }
 0xb6f   :  { %v1987_v42 = vmul.f32 %v1936_v41, %v1864_v39  ;;  %2005 = vrot.lane.b32.xlu2 %v1985_v40, %s5027_s0  ;;  %v2071_v41 = vld [vmem:[%s7032_s1 + $0x10] sm:$0xff] }
 0xb71   :  { %2009 = vrot.lane.b32.xlu0 %v1987_v42, %s5027_s0  ;;  %v2070_v42 = vld [vmem:[%s7032_s1 + $0x8] sm:$0xff] }
 0xb74   :  { %v1971_v46 = vpop.f32.mrf.mxu3 }
 0xb75   :  { %v1988_v47 = vmul.f32 %v1971_v46, %v1865_v44 }
 0xb77   :  { %v4588_v48 = vpack.i.bf16 %v1986_v45, %v1988_v47 }
 0xb79   :  { %4589 = vrot.lane.b32.xlu1 %v4588_v48, %s5027_s0 }
 0xbc1   :  { %v2004_v5 = vpop.permute.xlu2 %2003 }
 0xbc9   :  { %v5889_v10 = vpop.permute.xlu2 %2005 }
 0xbca   :  { %v2053_v20 = vsel %vm685_vm3, 0.0, %v5889_v10 }
 0xbd1   :  { %v1939_v49 = vpop.f32.mrf.mxu1 }
 0xbd2   :  { %v1989_v1 = vmul.f32 %v1939_v49, %v1866_v0  ;;  %v5885_v4 = vpop.permute.xlu1 %2001 }
 0xbd3   :  { %v2013_v26 = vsel %vm685_vm3, %v5885_v4, %v2004_v5  ;;  %v2052_v32 = vsel %vm685_vm3, 0.0, %v5885_v4 }
 0xbd4   :  { %v2056_v30 = vsel %vm2055_vm9, %v2013_v26, 0.0 }
 0xbd7   :  { %v1974_v50 = vpop.f32.mrf.mxu3 }
 0xbd8   :  { %v1990_v3 = vmul.f32 %v1974_v50, %v1867_v2 }
 0xbd9   :  { %v1942_v51 = vpop.f32.mrf.mxu1 }
 0xbda   :  { %v1991_v58 = vmul.f32 %v1942_v51, %v1868_v53 }
 0xbdf   :  { %v1977_v54 = vpop.f32.mrf.mxu3 }
 0xbe0   :  { %v1992_v56 = vmul.f32 %v1977_v54, %v1869_v52 }
 0xbe1   :  { %v1945_v57 = vpop.f32.mrf.mxu1 }
 0xbe2   :  { %v1993_v59 = vmul.f32 %v1945_v57, %v1870_v55  ;;  %2034 = vrot.lane.b32.xlu2 %v1992_v56, %s5038_s28 }
 0xbe3   :  { %v5887_v6 = vpop.permute.xlu0 %2009 }
 0xbe4   :  { %v4593_v60 = vpack.i.bf16 %v1991_v58, %v1993_v59  ;;  %v2054_v21 = vsel %vm685_vm3, 0.0, %v5887_v6 }
 0xbe6   :  { %4594 = vrot.lane.b32.xlu0 %v4593_v60, %s5038_s28 }
 0xbe7   :  { %v1980_v62 = vpop.f32.mrf.mxu3 }
 0xbe8   :  { %v1994_v63 = vmul.f32 %v1980_v62, %v1871_v61 }
 0xbea   :  { %2038 = vrot.lane.b32.xlu1 %v1994_v63, %s5038_s28 }
 0xbeb   :  { %v4590_v7 = vpop.permute.xlu1 %4589 }
 0xbec   :  { %v4592_v8 = vunpack.i.h.bf16 %v4590_v7  ;;  %v4591_v9 = vunpack.i.l.bf16 %v4590_v7 }
 0xbee   :  { %2028 = vrot.lane.b32.xlu0 %v1989_v1, %s5038_s28  ;;  %v2014_v11 = vsel %vm685_vm3, %v5889_v10, %v4592_v8  ;;  %v2015_v12 = vsel %vm685_vm3, %v5887_v6, %v4591_v9 }
 0xbef   :  { %v2057_v16 = vsel %vm2055_vm9, %v2014_v11, 0.0  ;;  %v2058_v17 = vsel %vm2055_vm9, %v2015_v12, 0.0 }
 0xbf6   :  { %2030 = vrot.lane.b32.xlu0 %v1990_v3, %s5038_s28 }
 0xc3c   :  { %v5925_v19 = vpop.permute.xlu2 %2034 }
 0xc3d   :  { %v2064_v38 = vsel %vm2062_vm10, %v5925_v19, 0.0 }
 0xc58   :  { %v4595_v13 = vpop.permute.xlu0 %4594 }
 0xc59   :  { %v4597_v14 = vunpack.i.h.bf16 %v4595_v13  ;;  %v4596_v15 = vunpack.i.l.bf16 %v4595_v13 }
 0xc5b   :  { %v5902_v22 = vsel %vm1394_vm12, %v2057_v16, %v4597_v14  ;;  %v5905_v23 = vsel %vm1394_vm12, %v2058_v17, %v4596_v15  ;;  %v5930_v18 = vsel %vm1394_vm12, %v4597_v14, %v5925_v19 }
 0xc5c   :  { %v4603_v24 = vpack.i.bf16 %v5902_v22, %v2053_v20  ;;  %v4613_v25 = vpack.i.bf16 %v5905_v23, %v2054_v21  ;;  %v5911_v27 = vpop.permute.xlu1 %2038 }
 0xc5d   :  { %v5920_v33 = vsel %vm1394_vm12, %v4596_v15, %v5911_v27  ;;  %v2065_v37 = vsel %vm2062_vm10, %v5911_v27, 0.0 }
 0xc5e   :  { %4604 = vrot.lane.b32.xlu2 %v4603_v24, %s5029_s9  ;;  %4614 = vrot.lane.b32.xlu1 %v4613_v25, %s5029_s9  ;;  %v4628_v28 = vpack.i.bf16 %v5930_v18, %v5920_v33  ;;  %v4638_v39 = vpack.i.bf16 %v2064_v38, %v2065_v37  ;;  %v2067_v37 = vld [vmem:[%s7033_s2 + $0x8] sm:$0xff] }
 0xc60   :  { %v2029_v31 = vpop.permute.xlu0 %2028 }
 0xc61   :  { %v5923_v35 = vsel %vm1394_vm12, %v2056_v30, %v2029_v31 }
 0xc62   :  { %v4598_v29 = vpack.i.bf16 %v5923_v35, %v2052_v32 }
 0xc64   :  { %4599 = vrot.lane.b32.xlu0 %v4598_v29, %s5029_s9 }
 0xc66   :  { %4619 = vrot.lane.b32.xlu1 %v4613_v25, %s5030_s13  ;;  %4629 = vrot.lane.b32.xlu2 %v4628_v28, %s5029_s9  ;;  %v2066_v25 = vld [vmem:[%s7033_s2] sm:$0xff] }
 0xc68   :  { %v5937_v34 = vpop.permute.xlu0 %2030 }
 0xc69   :  { %v5942_v36 = vsel %vm1394_vm12, %v2029_v31, %v5937_v34  ;;  %v2063_v40 = vsel %vm2062_vm10, %v5937_v34, 0.0 }
 0xc6c   :  { %4609 = vrot.lane.b32.xlu0 %v4603_v24, %s5030_s13 }
 0xc6e   :  { %4624 = vrot.lane.b32.xlu1 %v4598_v29, %s5030_s13  ;;  %2130 = vrot.lane.b32.xlu2 %v5942_v36, %s5029_s9 }
 0xc74   :  { %4634 = vrot.lane.b32.xlu0 %v4628_v28, %s5030_s13 }
 0xc76   :  { %2085 = vrot.lane.b32.xlu1 %v5942_v36, %s5030_s13  ;;  %4639 = vrot.lane.b32.xlu2 %v4638_v39, %s5029_s9 }
 0xc7c   :  { %2132 = vrot.lane.b32.xlu0 %v2063_v40, %s5029_s9 }
 0xc7e   :  { %4644 = vrot.lane.b32.xlu1 %v4638_v39, %s5030_s13  ;;  %2087 = vrot.lane.b32.xlu2 %v2063_v40, %s5030_s13 }
 0xc84   :  { %2183 = vperm.xlu0 %4455, %v2071_v41  }
 0xc86   :  { %2178 = vperm.xlu1 %4456, %v2070_v42   ;;  %2173 = vperm.xlu2 %4457, %v2069_v43   ;;  %v2068_v43 = vld [vmem:[%s7033_s2 + $0x10] sm:$0xff] }
 0xcb8   :  { %v4605_v44 = vpop.permute.xlu2 %4604 }
 0xcb9   :  { %v4607_v45 = vunpack.i.h.bf16 %v4605_v44  ;;  %v4606_v47 = vunpack.i.l.bf16 %v4605_v44 }
 0xcbb   :  { %v2153_v55 = vsel %vm1469_vm14, %v4606_v47, %v4607_v45 }
 0xcc0   :  { %v4630_v46 = vpop.permute.xlu2 %4629 }
 0xcc1   :  { %v4632_v49 = vunpack.i.h.bf16 %v4630_v46  ;;  %v4631_v50 = vunpack.i.l.bf16 %v4630_v46 }
 0xcc3   :  { %v2154_v56 = vsel %vm1469_vm14, %v4607_v45, %v4632_v49 }
 0xcc8   :  { %v2131_v60 = vpop.permute.xlu2 %2130 }
 0xcd0   :  { %v4615_v48 = vpop.permute.xlu1 %4614  ;;  %v4640_v15 = vpop.permute.xlu2 %4639 }
 0xcd1   :  { %v4617_v51 = vunpack.i.h.bf16 %v4615_v48  ;;  %v4616_v52 = vunpack.i.l.bf16 %v4615_v48  ;;  %v4641_v17 = vunpack.i.l.bf16 %v4640_v15  ;;  %v4642_v26 = vunpack.i.h.bf16 %v4640_v15 }
 0xcd3   :  { %v2156_v53 = vsel %vm1469_vm14, %v4616_v52, %v4617_v51  ;;  %v2157_v54 = vsel %vm1469_vm14, %v4617_v51, %v4631_v50  ;;  %v2316_v52 = vld [vmem:[%s5241_s14 + $0x28] sm:$0xff] }
 0xcd4   :  { %2202 = vmatpush.msra.mxu2 %v2156_v53  ;;  %2228 = vmatpush.msrb.mxu0 %v2157_v54  ;;  %v2320_v53 = vld [vmem:[%s5241_s14 + $0x48] sm:$0xff] }
 0xcd6   :  { %v4600_v57 = vpop.permute.xlu0 %4599  ;;  %2203 = vmatpush.msra.mxu2 %v2153_v55  ;;  %2229 = vmatpush.msrb.mxu0 %v2154_v56 }
 0xcd7   :  { %v4602_v58 = vunpack.i.h.bf16 %v4600_v57  ;;  %v4601_v59 = vunpack.i.l.bf16 %v4600_v57 }
 0xcd8   :  { %v4620_v61 = vpop.permute.xlu1 %4619  ;;  %v2088_v42 = vpop.permute.xlu2 %2087 }
 0xcd9   :  { %v4622_v62 = vunpack.i.h.bf16 %v4620_v61  ;;  %v4621_v63 = vunpack.i.l.bf16 %v4620_v61  ;;  %v2150_v0 = vsel %vm1469_vm14, %v4601_v59, %v4602_v58  ;;  %v2151_v1 = vsel %vm1469_vm14, %v4602_v58, %v2131_v60  ;;  %v2313_v59 = vld [vmem:[%s5241_s14 + $0x10] sm:$0xff] }
 0xcda   :  { %2204 = vmatpush.msra.mxu2 %v2150_v0  ;;  %2230 = vmatpush.msrb.mxu0 %v2151_v1 }
 0xcdb   :  { %v2111_v2 = vsel %vm1440_vm15, %v4621_v63, %v4622_v62 }
 0xcdc   :  { %2205 = vmatpush.msra.mxu2 %v2111_v2  ;;  %v2319_v2 = vld [vmem:[%s5241_s14 + $0x40] sm:$0xff] }
 0xcde   :  { %v4610_v3 = vpop.permute.xlu0 %4609 }
 0xcdf   :  { %v4612_v5 = vunpack.i.h.bf16 %v4610_v3  ;;  %v4611_v7 = vunpack.i.l.bf16 %v4610_v3 }
 0xce0   :  { %v4625_v8 = vpop.permute.xlu1 %4624 }
 0xce1   :  { %v4627_v9 = vunpack.i.h.bf16 %v4625_v8  ;;  %v4626_v11 = vunpack.i.l.bf16 %v4625_v8  ;;  %v2108_v12 = vsel %vm1440_vm15, %v4611_v7, %v4612_v5  ;;  %v2317_v7 = vld [vmem:[%s5241_s14 + $0x30] sm:$0xff] }
 0xce2   :  { %2206 = vmatpush.msra.mxu2 %v2108_v12 }
 0xce3   :  { %v2105_v13 = vsel %vm1440_vm15, %v4626_v11, %v4627_v9 }
 0xce4   :  { %2207 = vmatpush.msra.mxu2 %v2105_v13 }
 0xce6   :  { %4279 = vmatpush.msk.msra.mxu2 %vm5973_vm11, %v5887_v6  ;;  %v4635_v16 = vpop.permute.xlu0 %4634  ;;  %v2158_v6 = vsel %vm1469_vm14, %v4631_v50, %v4641_v17 }
 0xce7   :  { %v4637_v20 = vunpack.i.h.bf16 %v4635_v16  ;;  %v4636_v21 = vunpack.i.l.bf16 %v4635_v16  ;;  %v2318_v16 = vld [vmem:[%s5241_s14 + $0x38] sm:$0xff] }
 0xce8   :  { %v2086_v24 = vpop.permute.xlu1 %2085  ;;  %4281 = vmatpush.msk.msra.mxu2 %vm5973_vm11, %v5889_v10  ;;  %v2155_v10 = vsel %vm1469_vm14, %v4632_v49, %v4642_v26 }
 0xce9   :  { %v2112_v30 = vsel %vm1440_vm15, %v4622_v62, %v4636_v21  ;;  %v2109_v31 = vsel %vm1440_vm15, %v4612_v5, %v4637_v20  ;;  %v2106_v32 = vsel %vm1440_vm15, %v4627_v9, %v2086_v24 }
 0xcea   :  { %4283 = vmatpush.msk.msra.mxu2 %vm5973_vm11, %v5885_v4  ;;  %2231 = vmatpush.msrb.mxu0 %v2112_v30  ;;  %v2321_v30 = vld [vmem:[%s5241_s14 + $0x50] sm:$0xff] }
 0xceb   :  { %4284 = vmatmul.msk.f32.vlgmr.msra.gmra.mxu2 %vm305_vm1, %v2066_v25 }
 0xcec   :  { %2254 = vmatpush.msrb.mxu2 %v2158_v6  ;;  %2232 = vmatpush.msrb.mxu0 %v2109_v31 }
 0xcee   :  { %2255 = vmatpush.msrb.mxu2 %v2155_v10  ;;  %v2133_v29 = vpop.permute.xlu0 %2132  ;;  %2233 = vmatpush.msrb.mxu0 %v2106_v32 }
 0xcef   :  { %v2152_v28 = vsel %vm1469_vm14, %v2131_v60, %v2133_v29 }
 0xcf0   :  { %v4645_v4 = vpop.permute.xlu1 %4644  ;;  %2234 = vmatpush.msrb.mxu0 %v5905_v23  ;;  %2256 = vmatpush.msrb.mxu2 %v2152_v28  ;;  %v2107_v23 = vsel %vm1440_vm15, %v2086_v24, %v2088_v42 }
 0xcf1   :  { %v4647_v38 = vunpack.i.h.bf16 %v4645_v4  ;;  %v4646_v39 = vunpack.i.l.bf16 %v4645_v4  ;;  %v2322_v4 = vld [vmem:[%s5241_s14 + $0x58] sm:$0xff] }
 0xcf2   :  { %2235 = vmatpush.msrb.mxu0 %v5902_v22 }
 0xcf3   :  { %4285 = vmatmul.msk.f32.gmra.mxu2 %vm305_vm1, %v2067_v37  ;;  %v2113_v40 = vsel %vm1440_vm15, %v4636_v21, %v4646_v39  ;;  %v2110_v41 = vsel %vm1440_vm15, %v4637_v20, %v4647_v38  ;;  %v2314_v21 = vld [vmem:[%s5241_s14 + $0x18] sm:$0xff] }
 0xcf4   :  { %2236 = vmatpush.msrb.mxu0 %v5923_v35  ;;  %2257 = vmatpush.msrb.mxu2 %v2113_v40 }
 0xcf5   :  { %4287 = vmatmul.msk.f32.vlgmr.msrb.gmra.mxu0 %vm305_vm1, %v2066_v25 }
 0xcf6   :  { %2280 = vmatpush.msra.mxu0 %v4641_v17  ;;  %2258 = vmatpush.msrb.mxu2 %v2110_v41  ;;  %v2184_v48 = vpop.permute.xlu0 %2183 }
 0xcf8   :  { %2281 = vmatpush.msra.mxu0 %v4642_v26  ;;  %2259 = vmatpush.msrb.mxu2 %v2107_v23  ;;  %v2179_v46 = vpop.permute.xlu1 %2178 }
 0xcfa   :  { %2282 = vmatpush.msra.mxu0 %v2133_v29  ;;  %2260 = vmatpush.msrb.mxu2 %v5920_v33 }
 0xcfb   :  { %4286 = vmatmul.msk.f32.gmra.mxu2 %vm305_vm1, %v2068_v43 }
 0xcfc   :  { %2283 = vmatpush.msra.mxu0 %v4646_v39  ;;  %2261 = vmatpush.msrb.mxu2 %v5930_v18  ;;  %v2311_v39 = vld [vmem:[%s5241_s14] sm:$0xff] }
 0xcfd   :  { %4288 = vmatmul.msk.f32.gmra.mxu0 %vm305_vm1, %v2067_v37 }
 0xcfe   :  { %2284 = vmatpush.msra.mxu0 %v4647_v38  ;;  %2262 = vmatpush.msrb.mxu2 %v5942_v36 }
 0xd00   :  { %2285 = vmatpush.msra.mxu0 %v2088_v42 }
 0xd02   :  { %4293 = vmatpush.msk.msra.mxu0 %vm2062_vm10, %v5911_v27  ;;  %v2174_v27 = vpop.permute.xlu2 %2173 }
 0xd03   :  { %4290 = vmatmul.msk.f32.vlgmr.msrb.gmra.mxu2 %vm305_vm1, %v2066_v25 }
 0xd04   :  { %4294 = vmatpush.msk.msra.mxu0 %vm2062_vm10, %v5925_v19  ;;  %v2312_v19 = vld [vmem:[%s5241_s14 + $0x8] sm:$0xff] }
 0xd05   :  { %4289 = vmatmul.msk.f32.gmra.mxu0 %vm305_vm1, %v2068_v43 }
 0xd06   :  { %4295 = vmatpush.msk.msra.mxu0 %vm2062_vm10, %v5937_v34 }
 0xd0b   :  { %4291 = vmatmul.msk.f32.gmra.mxu2 %vm305_vm1, %v2067_v37 }
 0xd0d   :  { %4296 = vmatmul.msk.f32.vlgmr.msra.gmra.mxu0 %vm305_vm1, %v2066_v25 }
 0xd13   :  { %4292 = vmatmul.msk.f32.gmra.mxu2 %vm305_vm1, %v2068_v43 }
 0xd15   :  { %4297 = vmatmul.msk.f32.gmra.mxu0 %vm305_vm1, %v2067_v37 }
 0xd1d   :  { %4298 = vmatmul.msk.f32.gmra.mxu0 %vm305_vm1, %v2068_v43  ;;  %v2315_v43 = vld [vmem:[%s5241_s14 + $0x20] sm:$0xff]  ;;  %s7036_s14 = sld [smem:[#allocation21_spill]] }
 0xd6e   :  { %v2212_v22 = vpop.f32.mrf.mxu2 }
 0xd6f   :  { %v2213_v6 = vadd.f32 %v2212_v22, %v2174_v27 }
 0xd71   :  { %v2299_v37 = vmax.f32 %v2213_v6, 0.0 }
 0xd72   :  { %v2238_v33 = vpop.f32.mrf.mxu0 }
 0xd73   :  { %v2239_v35 = vadd.f32 %v2238_v33, %v2174_v27  ;;  %v2323_v42 = vmul.f32 %v2311_v39, %v2299_v37 }
 0xd75   :  { %v2300_v18 = vmax.f32 %v2239_v35, 0.0 }
 0xd76   :  { %v2215_v36 = vpop.f32.mrf.mxu2 }
 0xd77   :  { %v6023_v34 = vmul.f32 %v2312_v19, %v2300_v18  ;;  %v2216_v40 = vadd.f32 %v2215_v36, %v2179_v46 }
 0xd79   :  { %2368 = vrot.lane.b32.xlu0 %v6023_v34, %s5036_s11  ;;  %v2303_v23 = vmax.f32 %v2216_v40, 0.0 }
 0xd7a   :  { %v2241_v44 = vpop.f32.mrf.mxu0 }
 0xd7b   :  { %v2242_v47 = vadd.f32 %v2241_v44, %v2179_v46  ;;  %v2327_v22 = vmul.f32 %v2315_v43, %v2303_v23 }
 0xd7d   :  { %v2304_v50 = vmax.f32 %v2242_v47, 0.0 }
 0xd7e   :  { %v2218_v45 = vpop.f32.mrf.mxu2 }
 0xd7f   :  { %v2328_v56 = vmul.f32 %v2316_v52, %v2304_v50  ;;  %v2219_v60 = vadd.f32 %v2218_v45, %v2184_v48 }
 0xd81   :  { %v2307_v1 = vmax.f32 %v2219_v60, 0.0 }
 0xd82   :  { %v2244_v49 = vpop.f32.mrf.mxu0 }
 0xd83   :  { %v2245_v51 = vadd.f32 %v2244_v49, %v2184_v48  ;;  %v2331_v8 = vmul.f32 %v2319_v2, %v2307_v1 }
 0xd85   :  { %v2308_v54 = vmax.f32 %v2245_v51, 0.0 }
 0xd86   :  { %v2264_v55 = vpop.f32.mrf.mxu2 }
 0xd87   :  { %v2332_v57 = vmul.f32 %v2320_v53, %v2308_v54  ;;  %v2265_v58 = vadd.f32 %v2264_v55, %v2174_v27 }
 0xd89   :  { %v2301_v61 = vmax.f32 %v2265_v58, 0.0  ;;  %v4648_v62 = vpack.i.bf16 %v2328_v56, %v2332_v57 }
 0xd8a   :  { %v2290_v63 = vpop.f32.mrf.mxu0 }
 0xd8b   :  { %v2325_v0 = vmul.f32 %v2313_v59, %v2301_v61  ;;  %4649 = vrot.lane.b32.xlu2 %v4648_v62, %s5036_s11  ;;  %4654 = vrot.lane.b32.xlu0 %v4648_v62, %s5027_s0  ;;  %v2291_v9 = vadd.f32 %v2290_v63, %v2174_v27 }
 0xd8d   :  { %2370 = vrot.lane.b32.xlu1 %v2325_v0, %s5036_s11  ;;  %v2302_v17 = vmax.f32 %v2291_v9, 0.0 }
 0xd8e   :  { %v2267_v3 = vpop.f32.mrf.mxu2 }
 0xd8f   :  { %v2268_v5 = vadd.f32 %v2267_v3, %v2179_v46  ;;  %v2326_v31 = vmul.f32 %v2314_v21, %v2302_v17  ;;  %v2415_v21 = vld [vmem:[%s7036_s14] sm:$0xff] }
 0xd91   :  { %v2305_v11 = vmax.f32 %v2268_v5, 0.0 }
 0xd92   :  { %v2293_v12 = vpop.f32.mrf.mxu0 }
 0xd93   :  { %v2329_v13 = vmul.f32 %v2317_v7, %v2305_v11  ;;  %v2294_v15 = vadd.f32 %v2293_v12, %v2179_v46  ;;  %2349 = vrot.lane.b32.xlu2 %v2331_v8, %s5027_s0 }
 0xd95   :  { %v2306_v20 = vmax.f32 %v2294_v15, 0.0  ;;  %2376 = vrot.lane.b32.xlu0 %v2329_v13, %s5036_s11 }
 0xd96   :  { %v2270_v24 = vpop.f32.mrf.mxu2 }
 0xd97   :  { %v2330_v25 = vmul.f32 %v2318_v16, %v2306_v20  ;;  %v2271_v26 = vadd.f32 %v2270_v24, %v2184_v48 }
 0xd99   :  { %v2309_v10 = vmax.f32 %v2271_v26, 0.0  ;;  %2378 = vrot.lane.b32.xlu1 %v2330_v25, %s5036_s11  ;;  %v2416_v25 = vld [vmem:[%s7036_s14 + $0x8] sm:$0xff] }
 0xd9a   :  { %v2296_v32 = vpop.f32.mrf.mxu0 }
 0xd9b   :  { %v2333_v29 = vmul.f32 %v2321_v30, %v2309_v10  ;;  %v2297_v28 = vadd.f32 %v2296_v32, %v2184_v48  ;;  %2372 = vrot.lane.b32.xlu2 %v2326_v31, %s5036_s11 }
 0xd9d   :  { %v2310_v38 = vmax.f32 %v2297_v28, 0.0  ;;  %2382 = vrot.lane.b32.xlu0 %v2333_v29, %s5036_s11 }
 0xd9f   :  { %v2334_v41 = vmul.f32 %v2322_v4, %v2310_v38 }
 0xda1   :  { %2384 = vrot.lane.b32.xlu1 %v2334_v41, %s5036_s11 }
 0xda3   :  { %2341 = vrot.lane.b32.xlu2 %v2323_v42, %s5027_s0 }
 0xda5   :  { %2343 = vrot.lane.b32.xlu0 %v6023_v34, %s5027_s0 }
 0xda9   :  { %2345 = vrot.lane.b32.xlu1 %v2327_v22, %s5027_s0 }
 0xde5   :  { %v4650_v27 = vpop.permute.xlu2 %4649 }
 0xde6   :  { %v4652_v48 = vunpack.i.h.bf16 %v4650_v27  ;;  %v4651_v55 = vunpack.i.l.bf16 %v4650_v27 }
 0xdeb   :  { %v2369_v35 = vpop.permute.xlu0 %2368 }
 0xded   :  { %v6051_v33 = vpop.permute.xlu2 %2349 }
 0xdee   :  { %v2403_v11 = vsel %vm685_vm3, 0.0, %v6051_v33 }
 0xdf5   :  { %v2373_v19 = vpop.permute.xlu2 %2372 }
 0xdfd   :  { %v4655_v36 = vpop.permute.xlu0 %4654  ;;  %v6107_v12 = vpop.permute.xlu2 %2341 }
 0xdfe   :  { %v4656_v57 = vunpack.i.l.bf16 %v4655_v36  ;;  %v4657_v63 = vunpack.i.h.bf16 %v4655_v36  ;;  %v2401_v16 = vsel %vm685_vm3, 0.0, %v6107_v12 }
 0xdff   :  { %v2371_v18 = vpop.permute.xlu1 %2370 }
 0xe00   :  { %v6054_v44 = vsel %vm1633_vm4, %v2369_v35, %v2371_v18  ;;  %v6057_v46 = vsel %vm1633_vm4, %v2371_v18, %v2373_v19  ;;  %v2355_v62 = vsel %vm685_vm3, %v6051_v33, %v4656_v57 }
 0xe01   :  { %v2410_v45 = vsel %vm470_vm2, %v6057_v46, 0.0  ;;  %v2406_v0 = vsel %vm1394_vm12, %v2355_v62, 0.0 }
 0xe02   :  { %v4663_v34 = vpack.i.bf16 %v2410_v45, %v6054_v44  ;;  %v6093_v5 = vsel %vm1399_vm13, %v2406_v0, %v4651_v55 }
 0xe04   :  { %4664 = vrot.lane.b32.xlu0 %v4663_v34, %s5029_s9 }
 0xe07   :  { %v2377_v47 = vpop.permute.xlu0 %2376 }
 0xe08   :  { %v6067_v51 = vsel %vm1633_vm4, %v4652_v48, %v2377_v47 }
 0xe0b   :  { %v2379_v49 = vpop.permute.xlu1 %2378 }
 0xe0c   :  { %v6064_v50 = vsel %vm1633_vm4, %v2377_v47, %v2379_v49 }
 0xe0d   :  { %v2411_v52 = vsel %vm470_vm2, %v6064_v50, 0.0 }
 0xe0e   :  { %v4673_v53 = vpack.i.bf16 %v2411_v52, %v6067_v51 }
 0xe0f   :  { %v2383_v54 = vpop.permute.xlu0 %2382 }
 0xe10   :  { %4674 = vrot.lane.b32.xlu0 %v4673_v53, %s5030_s13  ;;  %4669 = vrot.lane.b32.xlu2 %v4673_v53, %s5029_s9  ;;  %v6078_v59 = vsel %vm1633_vm4, %v4651_v55, %v2383_v54 }
 0xe13   :  { %v2385_v56 = vpop.permute.xlu1 %2384 }
 0xe14   :  { %v6075_v58 = vsel %vm1633_vm4, %v2383_v54, %v2385_v56 }
 0xe15   :  { %v2412_v60 = vsel %vm470_vm2, %v6075_v58, 0.0 }
 0xe16   :  { %v4683_v61 = vpack.i.bf16 %v2412_v60, %v6078_v59 }
 0xe17   :  { %v2344_v15 = vpop.permute.xlu0 %2343 }
 0xe18   :  { %4684 = vrot.lane.b32.xlu2 %v4683_v61, %s5030_s13  ;;  %v2353_v17 = vsel %vm685_vm3, %v6107_v12, %v2344_v15  ;;  %v2413_v15 = vld [vmem:[%s7037_s5] sm:$0xff] }
 0xe19   :  { %v2404_v20 = vsel %vm1394_vm12, %v2353_v17, 0.0  ;;  %v2757_v17 = vld [vmem:[%s7038_s17 + $0x368] sm:$0xff] }
 0xe1a   :  { %v6120_v24 = vsel %vm1399_vm13, %v2404_v20, %v2369_v35 }
 0xe1b   :  { %v6087_v1 = vpop.permute.xlu1 %2345 }
 0xe1c   :  { %v2354_v2 = vsel %vm685_vm3, %v6087_v1, %v4657_v63  ;;  %v2402_v9 = vsel %vm685_vm3, 0.0, %v6087_v1 }
 0xe1d   :  { %v2405_v3 = vsel %vm1394_vm12, %v2354_v2, 0.0  ;;  %v4698_v13 = vpack.i.bf16 %v2402_v9, %v2403_v11 }
 0xe1e   :  { %v6096_v7 = vsel %vm1399_vm13, %v2405_v3, %v4652_v48  ;;  %vm3301_vm13 = vcmask 392192  }
 0xe1f   :  { %v4693_v8 = vpack.i.bf16 %v6096_v7, %v6093_v5 }
 0xe20   :  { %4689 = vrot.lane.b32.xlu2 %v4663_v34, %s5030_s13 }
 0xe21   :  { %4694 = vrot.lane.b32.xlu0 %v4693_v8, %s5030_s13  ;;  %4659 = vrot.lane.b32.xlu1 %v4693_v8, %s5029_s9 }
 0xe28   :  { %4699 = vrot.lane.b32.xlu2 %v4698_v13, %s5029_s9 }
 0xe29   :  { %2471 = vrot.lane.b32.xlu0 %v2401_v16, %s5029_s9  ;;  %4679 = vrot.lane.b32.xlu1 %v4683_v61, %s5029_s9 }
 0xe30   :  { %2426 = vrot.lane.b32.xlu2 %v2401_v16, %s5030_s13  ;;  %v2769_v16 = vld [vmem:[%s7038_s17 + $0x3c8] sm:$0xff] }
 0xe31   :  { %2518 = vperm.xlu0 %4455, %v2415_v21   ;;  %2473 = vrot.lane.b32.xlu1 %v6120_v24, %s5029_s9  ;;  %v2414_v21 = vld [vmem:[%s7037_s5 + $0x8] sm:$0xff] }
 0xe39   :  { %2428 = vrot.lane.b32.xlu1 %v6120_v24, %s5030_s13 }
 0xe41   :  { %4704 = vrot.lane.b32.xlu1 %v4698_v13, %s5030_s13 }
 0xe49   :  { %2523 = vperm.xlu1 %4456, %v2416_v25   ;;  %v2753_v25 = vld [vmem:[%s7038_s17 + $0x348] sm:$0xff] }
 0xe6a   :  { %v4670_v26 = vpop.permute.xlu2 %4669 }
 0xe6b   :  { %v4672_v23 = vunpack.i.h.bf16 %v4670_v26  ;;  %v4671_v43 = vunpack.i.l.bf16 %v4670_v26 }
 0xe6d   :  { %v2500_v34 = vsel %vm1469_vm14, %v4671_v43, %v4672_v23 }
 0xe72   :  { %v4685_v30 = vpop.permute.xlu2 %4684 }
 0xe73   :  { %v4687_v47 = vunpack.i.h.bf16 %v4685_v30  ;;  %v4686_v48 = vunpack.i.l.bf16 %v4685_v30  ;;  %v2701_v30 = vld [vmem:[%s7038_s17 + $0x1a8] sm:$0xff] }
 0xe75   :  { %v2458_v0 = vsel %vm1440_vm15, %v4686_v48, %v4687_v47 }
 0xe76   :  { %v4665_v31 = vpop.permute.xlu0 %4664 }
 0xe77   :  { %v4667_v35 = vunpack.i.h.bf16 %v4665_v31  ;;  %v4666_v19 = vunpack.i.l.bf16 %v4665_v31  ;;  %v2749_v31 = vld [vmem:[%s7038_s17 + $0x328] sm:$0xff] }
 0xe79   :  { %v2497_v52 = vsel %vm1469_vm14, %v4666_v19, %v4667_v35 }
 0xe7a   :  { %v6128_v6 = vpop.permute.xlu2 %4689 }
 0xe7b   :  { %v4692_v62 = vunpack.i.h.bf16 %v6128_v6  ;;  %v4691_v63 = vunpack.i.l.bf16 %v6128_v6 }
 0xe7d   :  { %v2452_v9 = vsel %vm1440_vm15, %v4691_v63, %v4692_v62 }
 0xe82   :  { %v4700_v10 = vpop.permute.xlu2 %4699  ;;  %v4675_v32 = vpop.permute.xlu0 %4674 }
 0xe83   :  { %v4701_v28 = vunpack.i.l.bf16 %v4700_v10  ;;  %v4702_v38 = vunpack.i.h.bf16 %v4700_v10  ;;  %v4677_v53 = vunpack.i.h.bf16 %v4675_v32  ;;  %v4676_v54 = vunpack.i.l.bf16 %v4675_v32 }
 0xe85   :  { %v2455_v3 = vsel %vm1440_vm15, %v4676_v54, %v4677_v53 }
 0xe8a   :  { %v2427_v10 = vpop.permute.xlu2 %2426 }
 0xe93   :  { %v4660_v29 = vpop.permute.xlu1 %4659  ;;  %v6132_v41 = vpop.permute.xlu0 %4694 }
 0xe94   :  { %v4662_v4 = vunpack.i.h.bf16 %v4660_v29  ;;  %v4661_v37 = vunpack.i.l.bf16 %v4660_v29  ;;  %v4696_v49 = vunpack.i.l.bf16 %v6132_v41  ;;  %v4697_v57 = vunpack.i.h.bf16 %v6132_v41  ;;  %v2756_v29 = vld [vmem:[%s7038_s17 + $0x360] sm:$0xff] }
 0xe95   :  { %v2692_v41 = vld [vmem:[%s7038_s17 + $0x160] sm:$0xff] }
 0xe96   :  { %v2501_v39 = vsel %vm1469_vm14, %v4701_v28, %v4661_v37  ;;  %v2498_v40 = vsel %vm1469_vm14, %v4702_v38, %v4662_v4  ;;  %v2499_v45 = vsel %vm1469_vm14, %v4662_v4, %v4671_v43  ;;  %v2457_v2 = vsel %vm1440_vm15, %v4696_v49, %v4686_v48  ;;  %v2752_v28 = vld [vmem:[%s7038_s17 + $0x340] sm:$0xff]  ;;  %v2741_v43 = vld [vmem:[%s7038_s17 + $0x2e8] sm:$0xff] }
 0xe97   :  { %2539 = vmatpush.msrb.mxu1 %v2501_v39  ;;  %v2454_v8 = vsel %vm1440_vm15, %v4697_v57, %v4676_v54  ;;  %v2748_v4 = vld [vmem:[%s7038_s17 + $0x320] sm:$0xff] }
 0xe98   :  { %v2700_v38 = vld [vmem:[%s7038_s17 + $0x1a0] sm:$0xff] }
 0xe99   :  { %2540 = vmatpush.msrb.mxu1 %v2498_v40  ;;  %v2744_v39 = vld [vmem:[%s7038_s17 + $0x300] sm:$0xff]  ;;  %v2697_v40 = vld [vmem:[%s7038_s17 + $0x188] sm:$0xff] }
 0xe9a   :  { %v2728_v48 = vld [vmem:[%s7038_s17 + $0x280] sm:$0xff] }
 0xe9b   :  { %v4680_v42 = vpop.permute.xlu1 %4679  ;;  %v2472_v55 = vpop.permute.xlu0 %2471  ;;  %v2724_v54 = vld [vmem:[%s7038_s17 + $0x260] sm:$0xff] }
 0xe9c   :  { %v4682_v22 = vunpack.i.h.bf16 %v4680_v42  ;;  %v4681_v27 = vunpack.i.l.bf16 %v4680_v42  ;;  %v2740_v42 = vld [vmem:[%s7038_s17 + $0x2e0] sm:$0xff] }
 0xe9e   :  { %2608 = vmatpush.msrb.mxu0 %v4682_v22  ;;  %v2502_v18 = vsel %vm1469_vm14, %v4661_v37, %v4681_v27  ;;  %v2503_v36 = vsel %vm1469_vm14, %v4681_v27, %v4682_v22  ;;  %v2708_v37 = vld [vmem:[%s7038_s17 + $0x1e0] sm:$0xff] }
 0xe9f   :  { %2562 = vmatpush.msra.mxu3 %v2502_v18  ;;  %2585 = vmatpush.msra.mxu2 %v2503_v36  ;;  %v2688_v22 = vld [vmem:[%s7038_s17 + $0x140] sm:$0xff]  ;;  %v2733_v18 = vld [vmem:[%s7038_s17 + $0x2a8] sm:$0xff] }
 0xea0   :  { %2609 = vmatpush.msrb.mxu0 %v4672_v23  ;;  %v2693_v23 = vld [vmem:[%s7038_s17 + $0x168] sm:$0xff]  ;;  %v2736_v27 = vld [vmem:[%s7038_s17 + $0x2c0] sm:$0xff] }
 0xea1   :  { %2563 = vmatpush.msra.mxu3 %v2499_v45  ;;  %2586 = vmatpush.msra.mxu2 %v2500_v34  ;;  %v2684_v36 = vld [vmem:[%s7038_s17 + $0x120] sm:$0xff]  ;;  %v2685_v34 = vld [vmem:[%s7038_s17 + $0x128] sm:$0xff] }
 0xea2   :  { %2610 = vmatpush.msrb.mxu0 %v4667_v35  ;;  %v2689_v35 = vld [vmem:[%s7038_s17 + $0x148] sm:$0xff]  ;;  %v2732_v45 = vld [vmem:[%s7038_s17 + $0x2a0] sm:$0xff] }
 0xea3   :  { %v2474_v56 = vpop.permute.xlu1 %2473  ;;  %2587 = vmatpush.msra.mxu2 %v2497_v52  ;;  %v2729_v52 = vld [vmem:[%s7038_s17 + $0x288] sm:$0xff] }
 0xea4   :  { %2611 = vmatpush.msrb.mxu0 %v4687_v47  ;;  %v2495_v60 = vsel %vm1469_vm14, %v2472_v55, %v2474_v56  ;;  %v2496_v61 = vsel %vm1469_vm14, %v2474_v56, %v4666_v19  ;;  %v2737_v19 = vld [vmem:[%s7038_s17 + $0x2c8] sm:$0xff]  ;;  %v2680_v47 = vld [vmem:[%s7038_s17 + $0x100] sm:$0xff] }
 0xea5   :  { %2541 = vmatpush.msrb.mxu1 %v2495_v60  ;;  %2564 = vmatpush.msra.mxu3 %v2496_v61  ;;  %v2677_v55 = vld [vmem:[%s7038_s17 + $0xe8] sm:$0xff]  ;;  %v2720_v60 = vld [vmem:[%s7038_s17 + $0x240] sm:$0xff] }
 0xea6   :  { %2588 = vmatpush.msra.mxu2 %v2458_v0  ;;  %2612 = vmatpush.msrb.mxu0 %v4677_v53  ;;  %v2676_v53 = vld [vmem:[%s7038_s17 + $0xe0] sm:$0xff]  ;;  %v2725_v56 = vld [vmem:[%s7038_s17 + $0x268] sm:$0xff] }
 0xea7   :  { %2565 = vmatpush.msra.mxu3 %v2457_v2  ;;  %v2673_v61 = vld [vmem:[%s7038_s17 + $0xc8] sm:$0xff]  ;;  %v2668_v0 = vld [vmem:[%s7038_s17 + $0xa0] sm:$0xff] }
 0xea8   :  { %2589 = vmatpush.msra.mxu2 %v2455_v3  ;;  %2613 = vmatpush.msrb.mxu0 %v4692_v62  ;;  %v2721_v62 = vld [vmem:[%s7038_s17 + $0x248] sm:$0xff]  ;;  %v2716_v2 = vld [vmem:[%s7038_s17 + $0x220] sm:$0xff] }
 0xea9   :  { %2566 = vmatpush.msra.mxu3 %v2454_v8  ;;  %v2669_v3 = vld [vmem:[%s7038_s17 + $0xa8] sm:$0xff]  ;;  %v2664_v8 = vld [vmem:[%s7038_s17 + $0x80] sm:$0xff] }
 0xeaa   :  { %2590 = vmatpush.msra.mxu2 %v2452_v9  ;;  %4311 = vmatpush.msk.msrb.mxu0 %vm470_vm2, %v6075_v58  ;;  %v2765_v58 = vld [vmem:[%s7038_s17 + $0x3a8] sm:$0xff]  ;;  %v2712_v9 = vld [vmem:[%s7038_s17 + $0x200] sm:$0xff] }
 0xeab   :  { %v2429_v11 = vpop.permute.xlu1 %2428 }
 0xeac   :  { %2591 = vmatpush.msra.mxu2 %v6078_v59  ;;  %4312 = vmatpush.msk.msrb.mxu0 %vm470_vm2, %v6064_v50  ;;  %v2451_v13 = vsel %vm1440_vm15, %v2429_v11, %v4691_v63  ;;  %v2709_v59 = vld [vmem:[%s7038_s17 + $0x1e8] sm:$0xff]  ;;  %v2450_v32 = vsel %vm1440_vm15, %v2427_v10, %v2429_v11  ;;  %v2634_v10 = vld [vmem:[%s5246_s19 + $0x10] sm:$0xff] }
 0xead   :  { %2567 = vmatpush.msra.mxu3 %v2451_v13  ;;  %v2761_v50 = vld [vmem:[%s7038_s17 + $0x388] sm:$0xff] }
 0xeae   :  { %2592 = vmatpush.msra.mxu2 %v6067_v51  ;;  %4313 = vmatpush.msk.msrb.mxu0 %vm470_vm2, %v6057_v46  ;;  %v2768_v51 = vld [vmem:[%s7038_s17 + $0x3c0] sm:$0xff]  ;;  %v2705_v46 = vld [vmem:[%s7038_s17 + $0x1c8] sm:$0xff]  ;;  %vm3149_vm2 = vcmask 932864  }
 0xeaf   :  { %2568 = vmatpush.msra.mxu3 %v6093_v5  ;;  %4314 = vmatmul.msk.f32.vlgmr.msrb.gmra.mxu0 %vm305_vm1, %v2413_v15  ;;  %v2717_v63 = vld [vmem:[%s7038_s17 + $0x228] sm:$0xff] }
 0xeb0   :  { %2593 = vmatpush.msra.mxu2 %v6054_v44  ;;  %2909 = vmatpush.msra.mxu0 %v2769_v16  ;;  %v2665_v11 = vld [vmem:[%s7038_s17 + $0x88] sm:$0xff] }
 0xeb1   :  { %4309 = vmatmul.msk.f32.vlgmr.msra.gmra.mxu2 %vm305_vm1, %v2413_v15  ;;  %2569 = vmatpush.msra.mxu3 %v6096_v7  ;;  %v2764_v7 = vld [vmem:[%s7038_s17 + $0x3a0] sm:$0xff]  ;;  %v2713_v13 = vld [vmem:[%s7038_s17 + $0x208] sm:$0xff] }
 0xeb2   :  { %2910 = vmatpush.msra.mxu0 %v2765_v58  ;;  %2879 = vmatpush.msrb.mxu2 %v2709_v59  ;;  %v2661_v16 = vld [vmem:[%s7038_s17 + $0x68] sm:$0xff]  ;;  %v2656_v58 = vld [vmem:[%s7038_s17 + $0x40] sm:$0xff] }
 0xeb3   :  { %v4705_v5 = vpop.permute.xlu1 %4704  ;;  %2570 = vmatpush.msra.mxu3 %v6120_v24  ;;  %v2760_v24 = vld [vmem:[%s7038_s17 + $0x380] sm:$0xff]  ;;  %v2657_v59 = vld [vmem:[%s7038_s17 + $0x48] sm:$0xff] }
 0xeb4   :  { %v4707_v20 = vunpack.i.h.bf16 %v4705_v5  ;;  %v4706_v44 = vunpack.i.l.bf16 %v4705_v5  ;;  %4307 = vmatmul.msk.f32.vlgmr.msra.gmra.mxu3 %vm305_vm1, %v2413_v15  ;;  %2911 = vmatpush.msra.mxu0 %v2761_v50  ;;  %v2652_v50 = vld [vmem:[%s7038_s17 + $0x20] sm:$0xff]  ;;  %v2649_v5 = vld [vmem:[%s7038_s17 + $0x8] sm:$0xff] }
 0xeb5   :  { %2851 = vmatpush.msrb.mxu3 %v2768_v51  ;;  %2880 = vmatpush.msrb.mxu2 %v2705_v46  ;;  %v2653_v51 = vld [vmem:[%s7038_s17 + $0x28] sm:$0xff]  ;;  %v2648_v46 = vld [vmem:[%s7038_s17] sm:$0xff] }
 0xeb6   :  { %v2456_v26 = vsel %vm1440_vm15, %v4706_v44, %v4696_v49  ;;  %2912 = vmatpush.msra.mxu0 %v2757_v17  ;;  %v2453_v6 = vsel %vm1440_vm15, %v4707_v20, %v4697_v57  ;;  %v2681_v49 = vld [vmem:[%s7038_s17 + $0x108] sm:$0xff]  ;;  %v2672_v57 = vld [vmem:[%s7038_s17 + $0xc0] sm:$0xff]  ;;  %v2519_v17 = vpop.permute.xlu0 %2518 }
 0xeb7   :  { %2542 = vmatpush.msrb.mxu1 %v2456_v26  ;;  %4315 = vmatmul.msk.f32.gmra.mxu0 %vm305_vm1, %v2414_v21 }
 0xeb8   :  { %2852 = vmatpush.msrb.mxu3 %v2764_v7  ;;  %2913 = vmatpush.msra.mxu0 %v2753_v25 }
 0xeb9   :  { %4310 = vmatmul.msk.f32.gmra.mxu2 %vm305_vm1, %v2414_v21  ;;  %2543 = vmatpush.msrb.mxu1 %v2453_v6 }
 0xeba   :  { %2853 = vmatpush.msrb.mxu3 %v2760_v24  ;;  %2881 = vmatpush.msrb.mxu2 %v2701_v30 }
 0xebb   :  { %2544 = vmatpush.msrb.mxu1 %v2450_v32  ;;  %2914 = vmatpush.msra.mxu0 %v2749_v31  ;;  %v2524_v26 = vpop.permute.xlu1 %2523  ;;  %v2639_v32 = vld [vmem:[%s5246_s19 + $0x38] sm:$0xff] }
 0xebc   :  { %4308 = vmatmul.msk.f32.gmra.mxu3 %vm305_vm1, %v2414_v21  ;;  %2882 = vmatpush.msrb.mxu2 %v2697_v40 }
 0xebd   :  { %4300 = vmatpush.msk.msrb.mxu1 %vm5973_vm11, %v6051_v33  ;;  %2854 = vmatpush.msrb.mxu3 %v2756_v29  ;;  %v2704_v33 = vld [vmem:[%s7038_s17 + $0x1c0] sm:$0xff] }
 0xebe   :  { %2883 = vmatpush.msrb.mxu2 %v2693_v23 }
 0xebf   :  { %4302 = vmatpush.msk.msrb.mxu1 %vm5973_vm11, %v6087_v1  ;;  %2855 = vmatpush.msrb.mxu3 %v2752_v28  ;;  %v2696_v1 = vld [vmem:[%s7038_s17 + $0x180] sm:$0xff] }
 0xec0   :  { %2884 = vmatpush.msrb.mxu2 %v2689_v35 }
 0xec1   :  { %4304 = vmatpush.msk.msrb.mxu1 %vm5973_vm11, %v6107_v12  ;;  %2856 = vmatpush.msrb.mxu3 %v2748_v4  ;;  %v2745_v12 = vld [vmem:[%s7038_s17 + $0x308] sm:$0xff] }
 0xec2   :  { %4305 = vmatmul.msk.f32.vlgmr.msrb.gmra.mxu1 %vm305_vm1, %v2413_v15  ;;  %2915 = vmatpush.msra.mxu0 %v2745_v12  ;;  %v2660_v15 = vld [vmem:[%s7038_s17 + $0x60] sm:$0xff] }
 0xec3   :  { %2821 = vmatpush.msra.mxu1 %v2708_v37  ;;  %2857 = vmatpush.msrb.mxu3 %v2744_v39 }
 0xec4   :  { %2916 = vmatpush.msra.mxu0 %v2741_v43  ;;  %2885 = vmatpush.msrb.mxu2 %v2685_v34 }
 0xec5   :  { %2822 = vmatpush.msra.mxu1 %v2704_v33  ;;  %2858 = vmatpush.msrb.mxu3 %v2740_v42  ;;  %v2638_v42 = vld [vmem:[%s5246_s19 + $0x30] sm:$0xff] }
 0xec6   :  { %2917 = vmatpush.msra.mxu0 %v2737_v19  ;;  %2886 = vmatpush.msrb.mxu2 %v2681_v49 }
 0xec7   :  { %2823 = vmatpush.msra.mxu1 %v2700_v38  ;;  %2859 = vmatpush.msrb.mxu3 %v2736_v27 }
 0xec8   :  { %2918 = vmatpush.msra.mxu0 %v2733_v18  ;;  %2887 = vmatpush.msrb.mxu2 %v2677_v55  ;;  %v2632_v18 = vld [vmem:[%s5246_s19] sm:$0xff] }
 0xec9   :  { %2824 = vmatpush.msra.mxu1 %v2696_v1  ;;  %2860 = vmatpush.msrb.mxu3 %v2732_v45  ;;  %v2633_v1 = vld [vmem:[%s5246_s19 + $0x8] sm:$0xff] }
 0xeca   :  { %4306 = vmatmul.msk.f32.gmra.mxu1 %vm305_vm1, %v2414_v21  ;;  %2919 = vmatpush.msra.mxu0 %v2729_v52  ;;  %v2635_v21 = vld [vmem:[%s5246_s19 + $0x18] sm:$0xff]  ;;  %vm2806_vm1 = vcmask 64512  }
 0xecb   :  { %2825 = vmatpush.msra.mxu1 %v2692_v41  ;;  %2861 = vmatpush.msrb.mxu3 %v2728_v48 }
 0xecc   :  { %2920 = vmatpush.msra.mxu0 %v2725_v56  ;;  %2888 = vmatpush.msrb.mxu2 %v2673_v61  ;;  %v2710_v56 = vld [vmem:[%s7038_s17 + $0x1f0] sm:$0xff]  ;;  %v2767_v61 = vld [vmem:[%s7038_s17 + $0x3b8] sm:$0xff] }
 0xecd   :  { %2826 = vmatpush.msra.mxu1 %v2688_v22  ;;  %2862 = vmatpush.msrb.mxu3 %v2724_v54 }
 0xece   :  { %2921 = vmatpush.msra.mxu0 %v2721_v62  ;;  %2889 = vmatpush.msrb.mxu2 %v2669_v3  ;;  %v2702_v62 = vld [vmem:[%s7038_s17 + $0x1b0] sm:$0xff] }
 0xecf   :  { %2827 = vmatpush.msra.mxu1 %v2684_v36  ;;  %2863 = vmatpush.msrb.mxu3 %v2720_v60  ;;  %v2637_v36 = vld [vmem:[%s5246_s19 + $0x28] sm:$0xff]  ;;  %v2771_v60 = vld [vmem:[%s7038_s17 + $0x3d8] sm:$0xff]  ;;  %v2694_v3 = vld [vmem:[%s7038_s17 + $0x170] sm:$0xff] }
 0xed0   :  { %2922 = vmatpush.msra.mxu0 %v2717_v63  ;;  %2890 = vmatpush.msrb.mxu2 %v2665_v11  ;;  %v2698_v63 = vld [vmem:[%s7038_s17 + $0x190] sm:$0xff] }
 0xed1   :  { %2828 = vmatpush.msra.mxu1 %v2680_v47  ;;  %2864 = vmatpush.msrb.mxu3 %v2716_v2  ;;  %v2759_v2 = vld [vmem:[%s7038_s17 + $0x378] sm:$0xff]  ;;  %v2690_v11 = vld [vmem:[%s7038_s17 + $0x150] sm:$0xff] }
 0xed2   :  { %2923 = vmatpush.msra.mxu0 %v2713_v13  ;;  %2891 = vmatpush.msrb.mxu2 %v2661_v16  ;;  %v2751_v13 = vld [vmem:[%s7038_s17 + $0x338] sm:$0xff]  ;;  %v2770_v16 = vld [vmem:[%s7038_s17 + $0x3d0] sm:$0xff] }
 0xed3   :  { %2829 = vmatpush.msra.mxu1 %v2676_v53  ;;  %2865 = vmatpush.msrb.mxu3 %v2712_v9  ;;  %v2636_v53 = vld [vmem:[%s5246_s19 + $0x20] sm:$0xff]  ;;  %v2711_v9 = vld [vmem:[%s7038_s17 + $0x1f8] sm:$0xff]  ;;  %s7039_s19 = sld [smem:[#allocation11_spill]] }
 0xed4   :  { %2892 = vmatpush.msrb.mxu2 %v2657_v59  ;;  %3025 = vmatpush.msrb.mxu0 %v2771_v60  ;;  %v2682_v59 = vld [vmem:[%s7038_s17 + $0x110] sm:$0xff]  ;;  %v2651_v60 = vld [vmem:[%s7038_s17 + $0x18] sm:$0xff] }
 0xed5   :  { %2830 = vmatpush.msra.mxu1 %v2672_v57  ;;  %v2706_v57 = vld [vmem:[%s7038_s17 + $0x1d0] sm:$0xff]  ;;  %2937 = vmatpush.msra.mxu3 %v2710_v56  ;;  %v2655_v56 = vld [vmem:[%s7038_s17 + $0x38] sm:$0xff] }
 0xed6   :  { %2893 = vmatpush.msrb.mxu2 %v2653_v51  ;;  %3026 = vmatpush.msrb.mxu0 %v2767_v61  ;;  %v2766_v51 = vld [vmem:[%s7038_s17 + $0x3b0] sm:$0xff] }
 0xed7   :  { %2831 = vmatpush.msra.mxu1 %v2668_v0  ;;  %2938 = vmatpush.msra.mxu3 %v2706_v57  ;;  %v2763_v0 = vld [vmem:[%s7038_s17 + $0x398] sm:$0xff]  ;;  %v2714_v57 = vld [vmem:[%s7038_s17 + $0x210] sm:$0xff] }
 0xed8   :  { %2894 = vmatpush.msrb.mxu2 %v2649_v5  ;;  %3027 = vmatpush.msrb.mxu0 %v2763_v0  ;;  %v2678_v5 = vld [vmem:[%s7038_s17 + $0xf0] sm:$0xff] }
 0xed9   :  { %2832 = vmatpush.msra.mxu1 %v2664_v8  ;;  %2939 = vmatpush.msra.mxu3 %v2702_v62  ;;  %v2755_v8 = vld [vmem:[%s7038_s17 + $0x358] sm:$0xff] }
 0xeda   :  { %3028 = vmatpush.msrb.mxu0 %v2759_v2  ;;  %2995 = vmatpush.msra.mxu2 %v2711_v9 }
 0xedb   :  { %2833 = vmatpush.msra.mxu1 %v2660_v15  ;;  %2940 = vmatpush.msra.mxu3 %v2698_v63  ;;  %v2686_v15 = vld [vmem:[%s7038_s17 + $0x130] sm:$0xff] }
 0xedc   :  { %3029 = vmatpush.msrb.mxu0 %v2755_v8 }
 0xedd   :  { %2834 = vmatpush.msra.mxu1 %v2656_v58  ;;  %2941 = vmatpush.msra.mxu3 %v2694_v3  ;;  %v2707_v58 = vld [vmem:[%s7038_s17 + $0x1d8] sm:$0xff] }
 0xede   :  { %3030 = vmatpush.msrb.mxu0 %v2751_v13  ;;  %2996 = vmatpush.msra.mxu2 %v2707_v58 }
 0xedf   :  { %2835 = vmatpush.msra.mxu1 %v2652_v50  ;;  %2942 = vmatpush.msra.mxu3 %v2690_v11  ;;  %v2747_v50 = vld [vmem:[%s7038_s17 + $0x318] sm:$0xff] }
 0xee0   :  { %3031 = vmatpush.msrb.mxu0 %v2747_v50 }
 0xee1   :  { %2836 = vmatpush.msra.mxu1 %v2648_v46  ;;  %2943 = vmatpush.msra.mxu3 %v2686_v15  ;;  %v2703_v46 = vld [vmem:[%s7038_s17 + $0x1b8] sm:$0xff] }
 0xee2   :  { %2997 = vmatpush.msra.mxu2 %v2703_v46 }
 0xee3   :  { %2967 = vmatpush.msrb.mxu1 %v2770_v16  ;;  %2944 = vmatpush.msra.mxu3 %v2682_v59  ;;  %v2772_v16 = vld [vmem:[%s7039_s19] sm:$0xff] }
 0xee5   :  { %2968 = vmatpush.msrb.mxu1 %v2766_v51  ;;  %2945 = vmatpush.msra.mxu3 %v2678_v5 }
 0xf2c   :  { %v2618_v20 = vpop.f32.mrf.mxu0 }
 0xf2d   :  { %v2619_v44 = vadd.f32 %v2618_v20, %v2519_v17  ;;  %v2762_v20 = vld [vmem:[%s7038_s17 + $0x390] sm:$0xff] }
 0xf2e   :  { %2969 = vmatpush.msrb.mxu1 %v2762_v20 }
 0xf2f   :  { %v2627_v7 = vmax.f32 %v2619_v44, 0.0  ;;  %v2699_v44 = vld [vmem:[%s7038_s17 + $0x198] sm:$0xff] }
 0xf30   :  { %2998 = vmatpush.msra.mxu2 %v2699_v44 }
 0xf31   :  { %v2643_v25 = vmul.f32 %v2635_v21, %v2627_v7  ;;  %v2674_v21 = vld [vmem:[%s7038_s17 + $0xd0] sm:$0xff]  ;;  %v2739_v7 = vld [vmem:[%s7038_s17 + $0x2d8] sm:$0xff] }
 0xf32   :  { %2946 = vmatpush.msra.mxu3 %v2674_v21 }
 0xf33   :  { %2798 = vrot.lane.b32.xlu0 %v2643_v25, %s5039_s21  ;;  %v2758_v25 = vld [vmem:[%s7038_s17 + $0x370] sm:$0xff] }
 0xf34   :  { %v2595_v24 = vpop.f32.mrf.mxu2  ;;  %v2621_v30 = vpop.f32.mrf.mxu0  ;;  %2970 = vmatpush.msrb.mxu1 %v2758_v25  ;;  %v2777_v25 = vld [vmem:[%s7039_s19 + $0x28] sm:$0xff] }
 0xf35   :  { %v2596_v6 = vadd.f32 %v2595_v24, %v2519_v17  ;;  %v2622_v31 = vadd.f32 %v2621_v30, %v2524_v26  ;;  %v2670_v24 = vld [vmem:[%s7038_s17 + $0xb0] sm:$0xff]  ;;  %v2735_v30 = vld [vmem:[%s7038_s17 + $0x2b8] sm:$0xff] }
 0xf36   :  { %2947 = vmatpush.msra.mxu3 %v2670_v24 }
 0xf37   :  { %v2626_v29 = vmax.f32 %v2596_v6, 0.0  ;;  %v2631_v28 = vmax.f32 %v2622_v31, 0.0  ;;  %v2572_v4 = vpop.f32.mrf.mxu3  ;;  %v2754_v6 = vld [vmem:[%s7038_s17 + $0x350] sm:$0xff]  ;;  %v2691_v31 = vld [vmem:[%s7038_s17 + $0x158] sm:$0xff] }
 0xf38   :  { %v2573_v37 = vadd.f32 %v2572_v4, %v2519_v17  ;;  %2971 = vmatpush.msrb.mxu1 %v2754_v6  ;;  %v2662_v4 = vld [vmem:[%s7038_s17 + $0x70] sm:$0xff] }
 0xf39   :  { %v2642_v33 = vmul.f32 %v2634_v10, %v2626_v29  ;;  %v2647_v38 = vmul.f32 %v2639_v32, %v2631_v28  ;;  %v2666_v10 = vld [vmem:[%s7038_s17 + $0x90] sm:$0xff]  ;;  %v2731_v32 = vld [vmem:[%s7038_s17 + $0x298] sm:$0xff] }
 0xf3a   :  { %v2625_v39 = vmax.f32 %v2573_v37, 0.0  ;;  %v2750_v29 = vld [vmem:[%s7038_s17 + $0x330] sm:$0xff]  ;;  %v2687_v28 = vld [vmem:[%s7038_s17 + $0x138] sm:$0xff]  ;;  %2948 = vmatpush.msra.mxu3 %v2666_v10 }
 0xf3b   :  { %2796 = vrot.lane.b32.xlu2 %v2642_v33, %s5039_s21  ;;  %2804 = vrot.lane.b32.xlu0 %v2647_v38, %s5039_s21  ;;  %v2727_v37 = vld [vmem:[%s7038_s17 + $0x278] sm:$0xff]  ;;  %v2746_v33 = vld [vmem:[%s7038_s17 + $0x310] sm:$0xff] }
 0xf3c   :  { %v6258_v40 = vmul.f32 %v2633_v1, %v2625_v39  ;;  %v2598_v12 = vpop.f32.mrf.mxu2  ;;  %2972 = vmatpush.msrb.mxu1 %v2750_v29  ;;  %v2683_v38 = vld [vmem:[%s7038_s17 + $0x118] sm:$0xff]  ;;  %2949 = vmatpush.msra.mxu3 %v2662_v4  ;;  %v2658_v1 = vld [vmem:[%s7038_s17 + $0x50] sm:$0xff] }
 0xf3d   :  { %v2599_v41 = vadd.f32 %v2598_v12, %v2524_v26  ;;  %v2723_v39 = vld [vmem:[%s7038_s17 + $0x258] sm:$0xff]  ;;  %v2742_v12 = vld [vmem:[%s7038_s17 + $0x2f0] sm:$0xff] }
 0xf3e   :  { %2794 = vrot.lane.b32.xlu1 %v6258_v40, %s5039_s21  ;;  %4316 = vmatmul.msk.f32.vlgmr.msrb.gmra.mxu3 %vm1394_vm12, %v6258_v40 }
 0xf3f   :  { %v2630_v23 = vmax.f32 %v2599_v41, 0.0  ;;  %4320 = vmatmul.msk.f32.vlgmr.msra.gmra.mxu0 %vm1394_vm12, %v6258_v40  ;;  %v2549_v43 = vpop.f32.mrf.mxu1  ;;  %v2575_v22 = vpop.f32.mrf.mxu3  ;;  %2973 = vmatpush.msrb.mxu1 %v2746_v33  ;;  %v2679_v41 = vld [vmem:[%s7038_s17 + $0xf8] sm:$0xff]  ;;  %v2784_v33 = vld [vmem:[%s7039_s19 + $0x60] sm:$0xff] }
 0xf40   :  { %v2550_v27 = vadd.f32 %v2549_v43, %v2519_v17  ;;  %v2576_v35 = vadd.f32 %v2575_v22, %v2524_v26  ;;  %v2743_v17 = vld [vmem:[%s7038_s17 + $0x2f8] sm:$0xff]  ;;  %2950 = vmatpush.msra.mxu3 %v2658_v1  ;;  %v2738_v43 = vld [vmem:[%s7038_s17 + $0x2d0] sm:$0xff] }
 0xf41   :  { %v2646_v19 = vmul.f32 %v2638_v42, %v2630_v23  ;;  %3032 = vmatpush.msrb.mxu0 %v2743_v17  ;;  %v2654_v42 = vld [vmem:[%s7038_s17 + $0x30] sm:$0xff]  ;;  %v2719_v23 = vld [vmem:[%s7038_s17 + $0x238] sm:$0xff]  ;;  %2974 = vmatpush.msrb.mxu1 %v2742_v12 }
 0xf42   :  { %v2624_v45 = vmax.f32 %v2550_v27, 0.0  ;;  %v2629_v34 = vmax.f32 %v2576_v35, 0.0  ;;  %v2675_v22 = vld [vmem:[%s7038_s17 + $0xd8] sm:$0xff]  ;;  %v2650_v27 = vld [vmem:[%s7038_s17 + $0x10] sm:$0xff]  ;;  %2951 = vmatpush.msra.mxu3 %v2654_v42 }
 0xf43   :  { %2802 = vrot.lane.b32.xlu2 %v2646_v19, %s5039_s21  ;;  %3033 = vmatpush.msrb.mxu0 %v2739_v7  ;;  %v2715_v35 = vld [vmem:[%s7038_s17 + $0x218] sm:$0xff]  ;;  %v2734_v19 = vld [vmem:[%s7038_s17 + $0x2b0] sm:$0xff]  ;;  %v2773_v7 = vld [vmem:[%s7039_s19 + $0x8] sm:$0xff] }
 0xf44   :  { %v6270_v47 = vmul.f32 %v2632_v18, %v2624_v45  ;;  %v6272_v48 = vmul.f32 %v2637_v36, %v2629_v34  ;;  %2975 = vmatpush.msrb.mxu1 %v2738_v43  ;;  %v2671_v18 = vld [vmem:[%s7038_s17 + $0xb8] sm:$0xff]  ;;  %2952 = vmatpush.msra.mxu3 %v2650_v27  ;;  %v2730_v36 = vld [vmem:[%s7038_s17 + $0x290] sm:$0xff] }
 0xf45   :  { %3034 = vmatpush.msrb.mxu0 %v2735_v30  ;;  %v2667_v45 = vld [vmem:[%s7038_s17 + $0x98] sm:$0xff]  ;;  %v2726_v34 = vld [vmem:[%s7038_s17 + $0x270] sm:$0xff] }
 0xf46   :  { %2800 = vrot.lane.b32.xlu1 %v6272_v48, %s5039_s21  ;;  %2837 = vmatmul.f32.vlgmr.msra.gmra.mxu1 %v6270_v47 }
 0xf47   :  { %4317 = vmatmul.msk.f32.gmra.mxu3 %vm1394_vm12, %v6272_v48  ;;  %2895 = vmatmul.f32.vlgmr.msrb.gmra.mxu2 %v6270_v47  ;;  %v2552_v49 = vpop.f32.mrf.mxu1 }
 0xf48   :  { %4321 = vmatmul.msk.f32.gmra.mxu0 %vm1394_vm12, %v6272_v48  ;;  %v2553_v52 = vadd.f32 %v2552_v49, %v2524_v26  ;;  %v2695_v26 = vld [vmem:[%s7038_s17 + $0x178] sm:$0xff]  ;;  %2976 = vmatpush.msrb.mxu1 %v2734_v19  ;;  %v2774_v19 = vld [vmem:[%s7039_s19 + $0x10] sm:$0xff] }
 0xf49   :  { %2999 = vmatpush.msra.mxu2 %v2695_v26  ;;  %3035 = vmatpush.msrb.mxu0 %v2731_v32  ;;  %v2663_v49 = vld [vmem:[%s7038_s17 + $0x78] sm:$0xff] }
 0xf4a   :  { %v2628_v54 = vmax.f32 %v2553_v52, 0.0  ;;  %2977 = vmatpush.msrb.mxu1 %v2730_v36  ;;  %v2722_v52 = vld [vmem:[%s7038_s17 + $0x250] sm:$0xff] }
 0xf4b   :  { %3000 = vmatpush.msra.mxu2 %v2691_v31  ;;  %3036 = vmatpush.msrb.mxu0 %v2727_v37  ;;  %v2780_v37 = vld [vmem:[%s7039_s19 + $0x40] sm:$0xff] }
 0xf4c   :  { %v6283_v55 = vmul.f32 %v2636_v53, %v2628_v54  ;;  %2978 = vmatpush.msrb.mxu1 %v2726_v34  ;;  %v2659_v53 = vld [vmem:[%s7038_s17 + $0x58] sm:$0xff]  ;;  %v2718_v54 = vld [vmem:[%s7038_s17 + $0x230] sm:$0xff] }
 0xf4d   :  { %3001 = vmatpush.msra.mxu2 %v2687_v28  ;;  %3037 = vmatpush.msrb.mxu0 %v2723_v39 }
 0xf4e   :  { %2840 = vmatmul.f32.gmra.mxu1 %v6283_v55 }
 0xf4f   :  { %2898 = vmatmul.f32.gmra.mxu2 %v6283_v55  ;;  %3038 = vmatpush.msrb.mxu0 %v2719_v23 }
 0xf50   :  { %3002 = vmatpush.msra.mxu2 %v2683_v38  ;;  %2979 = vmatpush.msrb.mxu1 %v2722_v52 }
 0xf51   :  { %3039 = vmatpush.msrb.mxu0 %v2715_v35 }
 0xf52   :  { %3003 = vmatpush.msra.mxu2 %v2679_v41  ;;  %2980 = vmatpush.msrb.mxu1 %v2718_v54 }
 0xf54   :  { %3004 = vmatpush.msra.mxu2 %v2675_v22  ;;  %2981 = vmatpush.msrb.mxu1 %v2714_v57  ;;  %v2778_v57 = vld [vmem:[%s7039_s19 + $0x30] sm:$0xff] }
 0xf56   :  { %3005 = vmatpush.msra.mxu2 %v2671_v18  ;;  %v2775_v18 = vld [vmem:[%s7039_s19 + $0x18] sm:$0xff] }
 0xf58   :  { %3006 = vmatpush.msra.mxu2 %v2667_v45 }
 0xf5a   :  { %3007 = vmatpush.msra.mxu2 %v2663_v49 }
 0xf5c   :  { %3008 = vmatpush.msra.mxu2 %v2659_v53 }
 0xf5e   :  { %3009 = vmatpush.msra.mxu2 %v2655_v56 }
 0xf60   :  { %3010 = vmatpush.msra.mxu2 %v2651_v60 }
 0xf95   :  { %v2797_v61 = vpop.permute.xlu2 %2796 }
 0xf9d   :  { %v2803_v0 = vpop.permute.xlu2 %2802 }
 0xfa5   :  { %v2799_v62 = vpop.permute.xlu0 %2798 }
 0xfa6   :  { %v2808_v63 = vsel %vm2806_vm1, %v2797_v61, %v2799_v62 }
 0xfa7   :  { %4318 = vmatmul.msk.f32.gmra.mxu3 %vm1394_vm12, %v2808_v63  ;;  %4322 = vmatmul.msk.f32.gmra.mxu0 %vm1394_vm12, %v2808_v63 }
 0xfad   :  { %v2805_v2 = vpop.permute.xlu0 %2804 }
 0xfae   :  { %v2810_v3 = vsel %vm2806_vm1, %v2803_v0, %v2805_v2 }
 0xfaf   :  { %4319 = vmatmul.msk.f32.gmra.mxu3 %vm1394_vm12, %v2810_v3  ;;  %4323 = vmatmul.msk.f32.gmra.mxu0 %vm1394_vm12, %v2810_v3 }
 0xfb0   :  { %v2795_v8 = vpop.permute.xlu1 %2794 }
 0xfb1   :  { %v2807_v9 = vsel %vm2806_vm1, %v2795_v8, %v2797_v61  ;;  %v2779_v61 = vld [vmem:[%s7039_s19 + $0x38] sm:$0xff] }
 0xfb2   :  { %2843 = vmatmul.f32.gmra.mxu1 %v2807_v9  ;;  %2901 = vmatmul.f32.gmra.mxu2 %v2807_v9 }
 0xfb7   :  { %2953 = vmatmul.f32.vlgmr.msra.gmra.mxu3 %v6270_v47  ;;  %4328 = vmatmul.msk.f32.vlgmr.msrb.gmra.mxu0 %vm1394_vm12, %v6258_v40 }
 0xfb8   :  { %v2801_v11 = vpop.permute.xlu1 %2800 }
 0xfb9   :  { %v2809_v13 = vsel %vm2806_vm1, %v2801_v11, %v2803_v0  ;;  %v2785_v11 = vld [vmem:[%s7039_s19 + $0x68] sm:$0xff] }
 0xfba   :  { %2846 = vmatmul.f32.gmra.mxu1 %v2809_v13  ;;  %2904 = vmatmul.f32.gmra.mxu2 %v2809_v13 }
 0xfbc   :  { %v2925_v51 = vpop.f32.mrf.mxu0 }
 0xfbf   :  { %2956 = vmatmul.f32.gmra.mxu3 %v6283_v55  ;;  %4329 = vmatmul.msk.f32.gmra.mxu0 %vm1394_vm12, %v6272_v48 }
 0xfc1   :  { %v2867_v15 = vpop.f32.mrf.mxu3 }
 0xfc2   :  { %4324 = vmatmul.msk.f32.vlgmr.msrb.gmra.mxu1 %vm1394_vm12, %v6258_v40  ;;  %3011 = vmatmul.f32.vlgmr.msra.gmra.mxu2 %v6270_v47  ;;  %v2776_v47 = vld [vmem:[%s7039_s19 + $0x20] sm:$0xff] }
 0xfc3   :  { %v2838_v58 = vpop.f32.mrf.mxu1 }
 0xfc4   :  { %v2868_v59 = vadd.f32 %v2867_v15, %v2838_v58 }
 0xfc5   :  { %v2928_v21 = vpop.f32.mrf.mxu0 }
 0xfc6   :  { %v3053_v50 = vmul.f32 %v2868_v59, %v2772_v16  ;;  %v2781_v16 = vld [vmem:[%s7039_s19 + $0x48] sm:$0xff] }
 0xfc7   :  { %2959 = vmatmul.f32.gmra.mxu3 %v2807_v9  ;;  %4330 = vmatmul.msk.f32.gmra.mxu0 %vm1394_vm12, %v2808_v63 }
 0xfc8   :  { %3077 = vrot.lane.b32.xlu1 %v3053_v50, %s5027_s0 }
 0xfca   :  { %v2896_v46 = vpop.f32.mrf.mxu2  ;;  %4325 = vmatmul.msk.f32.gmra.mxu1 %vm1394_vm12, %v6272_v48  ;;  %3014 = vmatmul.f32.gmra.mxu2 %v6283_v55  ;;  %v2870_v40 = vpop.f32.mrf.mxu3 }
 0xfcb   :  { %v2841_v5 = vpop.f32.mrf.mxu1  ;;  %v2926_v44 = vadd.f32 %v2925_v51, %v2896_v46  ;;  %v2782_v51 = vld [vmem:[%s7039_s19 + $0x50] sm:$0xff] }
 0xfcc   :  { %v2871_v17 = vadd.f32 %v2870_v40, %v2841_v5  ;;  %v2786_v40 = vld [vmem:[%s7039_s19 + $0x70] sm:$0xff] }
 0xfcd   :  { %v3054_v55 = vmul.f32 %v2926_v44, %v2773_v7 }
 0xfce   :  { %v3057_v20 = vmul.f32 %v2871_v17, %v2776_v47 }
 0xfcf   :  { %2962 = vmatmul.f32.gmra.mxu3 %v2809_v13  ;;  %4331 = vmatmul.msk.f32.gmra.mxu0 %vm1394_vm12, %v2810_v3 }
 0xfd0   :  { %3085 = vrot.lane.b32.xlu2 %v3057_v20, %s5027_s0 }
 0xfd2   :  { %v2899_v26 = vpop.f32.mrf.mxu2  ;;  %4326 = vmatmul.msk.f32.gmra.mxu1 %vm1394_vm12, %v2808_v63  ;;  %3017 = vmatmul.f32.gmra.mxu2 %v2807_v9 }
 0xfd3   :  { %v2929_v48 = vadd.f32 %v2928_v21, %v2899_v26 }
 0xfd5   :  { %v3058_v24 = vmul.f32 %v2929_v48, %v2777_v25 }
 0xfd7   :  { %v4708_v30 = vpack.i.bf16 %v3054_v55, %v3058_v24  ;;  %v2787_v55 = vld [vmem:[%s7039_s19 + $0x78] sm:$0xff] }
 0xfd9   :  { %4709 = vrot.lane.b32.xlu0 %v4708_v30, %s5027_s0 }
 0xfda   :  { %4327 = vmatmul.msk.f32.gmra.mxu1 %vm1394_vm12, %v2810_v3  ;;  %3020 = vmatmul.f32.gmra.mxu2 %v2809_v13  ;;  %vm3154_vm12 = vcmask 818176  }
0x1024   :  { %v2931_v31 = vpop.f32.mrf.mxu0 }
0x102a   :  { %v2873_v6 = vpop.f32.mrf.mxu3 }
0x102c   :  { %v2934_v29 = vpop.f32.mrf.mxu0 }
0x102f   :  { %v2844_v10 = vpop.f32.mrf.mxu1 }
0x1030   :  { %v2874_v4 = vadd.f32 %v2873_v6, %v2844_v10  ;;  %v6397_v10 = vpop.permute.xlu2 %3085 }
0x1032   :  { %v2876_v32 = vpop.f32.mrf.mxu3  ;;  %v3061_v39 = vmul.f32 %v2874_v4, %v2780_v37  ;;  %v3148_v37 = vsel %vm685_vm3, 0.0, %v6397_v10 }
0x1034   :  { %v3041_v43 = vpop.f32.mrf.mxu0 }
0x1035   :  { %v2902_v28 = vpop.f32.mrf.mxu2 }
0x1036   :  { %v2932_v15 = vadd.f32 %v2931_v31, %v2902_v28  ;;  %v2783_v31 = vld [vmem:[%s7039_s19 + $0x58] sm:$0xff] }
0x1037   :  { %v2847_v38 = vpop.f32.mrf.mxu1 }
0x1038   :  { %v2877_v1 = vadd.f32 %v2876_v32, %v2847_v38  ;;  %v3062_v5 = vmul.f32 %v2932_v15, %v2781_v16 }
0x103a   :  { %v3065_v12 = vmul.f32 %v2877_v1, %v2784_v33  ;;  %v2954_v41 = vpop.f32.mrf.mxu3  ;;  %v6406_v33 = vpop.permute.xlu1 %3077 }
0x103c   :  { %v4718_v42 = vpack.i.bf16 %v3061_v39, %v3065_v12  ;;  %v3044_v53 = vpop.f32.mrf.mxu0  ;;  %v3147_v39 = vsel %vm685_vm3, 0.0, %v6406_v33 }
0x103d   :  { %v2905_v23 = vpop.f32.mrf.mxu2 }
0x103e   :  { %4719 = vrot.lane.b32.xlu1 %v4718_v42, %s5040_s25  ;;  %v2935_v8 = vadd.f32 %v2934_v29, %v2905_v23 }
0x103f   :  { %v2983_v22 = vpop.f32.mrf.mxu1 }
0x1040   :  { %v2984_v35 = vadd.f32 %v2983_v22, %v2954_v41  ;;  %v3066_v59 = vmul.f32 %v2935_v8, %v2785_v11 }
0x1042   :  { %v2957_v27 = vpop.f32.mrf.mxu3  ;;  %v3055_v49 = vmul.f32 %v2984_v35, %v2774_v19  ;;  %v4728_v20 = vpack.i.bf16 %v3062_v5, %v3066_v59 }
0x1044   :  { %v3047_v13 = vpop.f32.mrf.mxu0 }
0x1045   :  { %v3012_v36 = vpop.f32.mrf.mxu2 }
0x1046   :  { %v3042_v45 = vadd.f32 %v3041_v43, %v3012_v36 }
0x1047   :  { %v2986_v34 = vpop.f32.mrf.mxu1 }
0x1048   :  { %v3056_v52 = vmul.f32 %v3042_v45, %v2775_v18  ;;  %v2987_v56 = vadd.f32 %v2986_v34, %v2957_v27 }
0x104a   :  { %v4713_v54 = vpack.i.bf16 %v3056_v52, %v3055_v49  ;;  %v2960_v60 = vpop.f32.mrf.mxu3  ;;  %v3059_v2 = vmul.f32 %v2987_v56, %v2778_v57 }
0x104b   :  { %v4710_v44 = vpop.permute.xlu0 %4709 }
0x104c   :  { %4714 = vrot.lane.b32.xlu0 %v4713_v54, %s5027_s0  ;;  %v4711_v26 = vunpack.i.l.bf16 %v4710_v44  ;;  %v3050_v48 = vpop.f32.mrf.mxu0  ;;  %v4712_v29 = vunpack.i.h.bf16 %v4710_v44 }
0x104d   :  { %v3015_v62 = vpop.f32.mrf.mxu2 }
0x104e   :  { %v3045_v63 = vadd.f32 %v3044_v53, %v3015_v62  ;;  %v6401_v28 = vsel %vm685_vm3, %v6397_v10, %v4711_v26  ;;  %v6412_v1 = vsel %vm685_vm3, %v6406_v33, %v4712_v29 }
0x104f   :  { %v2989_v0 = vpop.f32.mrf.mxu1  ;;  %v4738_v38 = vpack.i.bf16 %v6401_v28, %v3148_v37  ;;  %v4743_v12 = vpack.i.bf16 %v6412_v1, %v3147_v39  ;;  %v6497_v39 = vld [vmem:[%s7041_s3] sm:$0xff] }
0x1050   :  { %v3060_v3 = vmul.f32 %v3045_v63, %v2779_v61  ;;  %v2990_v50 = vadd.f32 %v2989_v0, %v2960_v60 }
0x1052   :  { %v4723_v9 = vpack.i.bf16 %v3060_v3, %v3059_v2  ;;  %v2963_v46 = vpop.f32.mrf.mxu3  ;;  %v3063_v21 = vmul.f32 %v2990_v50, %v2782_v51 }
0x1054   :  { %4724 = vrot.lane.b32.xlu2 %v4723_v9, %s5027_s0 }
0x1055   :  { %v3018_v58 = vpop.f32.mrf.mxu2 }
0x1056   :  { %v3048_v30 = vadd.f32 %v3047_v13, %v3018_v58 }
0x1057   :  { %v2992_v47 = vpop.f32.mrf.mxu1 }
0x1058   :  { %v2993_v17 = vadd.f32 %v2992_v47, %v2963_v46  ;;  %v3064_v4 = vmul.f32 %v3048_v30, %v2783_v31 }
0x105a   :  { %v3067_v7 = vmul.f32 %v2993_v17, %v2786_v40 }
0x105c   :  { %v4733_v25 = vpack.i.bf16 %v3063_v21, %v3067_v7  ;;  %4729 = vrot.lane.b32.xlu2 %v4728_v20, %s5040_s25  ;;  %v3160_v7 = vld [vmem:[%s7040_s29 + $0x8] sm:$0xff] }
0x105d   :  { %v3021_v24 = vpop.f32.mrf.mxu2 }
0x105e   :  { %v3051_v6 = vadd.f32 %v3050_v48, %v3021_v24  ;;  %4734 = vrot.lane.b32.xlu0 %v4733_v25, %s5040_s25 }
0x1060   :  { %v3068_v32 = vmul.f32 %v3051_v6, %v2787_v55 }
0x1062   :  { %3129 = vrot.lane.b32.xlu1 %v3068_v32, %s5040_s25 }
0x1064   :  { %3121 = vrot.lane.b32.xlu2 %v3064_v4, %s5040_s25 }
0x1066   :  { %4739 = vrot.lane.b32.xlu0 %v4738_v38, %s5029_s9 }
0x106a   :  { %4744 = vrot.lane.b32.xlu1 %v4743_v12, %s5029_s9 }
0x106c   :  { %4749 = vrot.lane.b32.xlu2 %v4738_v38, %s5030_s13  ;;  %v3159_v38 = vld [vmem:[%s7040_s29] sm:$0xff] }
0x106e   :  { %4754 = vrot.lane.b32.xlu0 %v4743_v12, %s5030_s13  ;;  %v6505_v12 = vld [vmem:[%s7041_s3 + $0x8] sm:$0xff] }
0x10ae   :  { %v4725_v41 = vpop.permute.xlu2 %4724 }
0x10af   :  { %v4727_v42 = vunpack.i.h.bf16 %v4725_v41  ;;  %v4726_v23 = vunpack.i.l.bf16 %v4725_v41 }
0x10b0   :  { %v4720_v43 = vpop.permute.xlu1 %4719 }
0x10b1   :  { %v3098_v22 = vsel %vm685_vm3, %v4726_v23, %v4727_v42  ;;  %v4721_v27 = vunpack.i.l.bf16 %v4720_v43  ;;  %v6424_v19 = vsel %vm685_vm3, %v4711_v26, %v4726_v23  ;;  %v4722_v52 = vunpack.i.h.bf16 %v4720_v43 }
0x10b2   :  { %v3151_v35 = vsel %vm3149_vm2, %v3098_v22, 0.0 }
0x10b3   :  { %v6427_v18 = vsel %vm1659_vm5, %v3151_v35, %v4721_v27 }
0x10b4   :  { %v4783_v36 = vpack.i.bf16 %v6427_v18, %v6424_v19 }
0x10b6   :  { %4784 = vrot.lane.b32.xlu0 %v4783_v36, %s5030_s13  ;;  %4764 = vrot.lane.b32.xlu1 %v4783_v36, %s5029_s9  ;;  %v4730_v54 = vpop.permute.xlu2 %4729 }
0x10b7   :  { %v4732_v62 = vunpack.i.h.bf16 %v4730_v54  ;;  %v4731_v63 = vunpack.i.l.bf16 %v4730_v54 }
0x10b9   :  { %v6446_v0 = vsel %vm1659_vm5, %v4722_v52, %v4732_v62  ;;  %v6449_v2 = vsel %vm1659_vm5, %v4721_v27, %v4731_v63 }
0x10ba   :  { %v4778_v3 = vpack.i.bf16 %v6446_v0, %v6449_v2 }
0x10be   :  { %v4715_v45 = vpop.permute.xlu0 %4714  ;;  %v6455_v8 = vpop.permute.xlu2 %3121 }
0x10bf   :  { %v4717_v34 = vunpack.i.h.bf16 %v4715_v45  ;;  %v4716_v49 = vunpack.i.l.bf16 %v4715_v45  ;;  %v3155_v15 = vsel %vm3154_vm12, %v6455_v8, 0.0 }
0x10c1   :  { %v3095_v53 = vsel %vm685_vm3, %v4716_v49, %v4717_v34  ;;  %v6436_v57 = vsel %vm685_vm3, %v4712_v29, %v4716_v49 }
0x10c2   :  { %v3150_v56 = vsel %vm3149_vm2, %v3095_v53, 0.0 }
0x10c3   :  { %v6439_v60 = vsel %vm1659_vm5, %v3150_v56, %v4722_v52 }
0x10c4   :  { %v4758_v61 = vpack.i.bf16 %v6439_v60, %v6436_v57 }
0x10c6   :  { %4759 = vrot.lane.b32.xlu2 %v4758_v61, %s5029_s9  ;;  %4769 = vrot.lane.b32.xlu1 %v4758_v61, %s5030_s13  ;;  %v4750_v47 = vpop.permute.xlu2 %4749 }
0x10c7   :  { %v4752_v25 = vunpack.i.h.bf16 %v4750_v47  ;;  %v4751_v55 = vunpack.i.l.bf16 %v4750_v47 }
0x10c9   :  { %v3206_v4 = vsel %vm1440_vm15, %v4751_v55, %v4752_v25 }
0x10ce   :  { %4779 = vrot.lane.b32.xlu1 %v4778_v3, %s5030_s13  ;;  %4774 = vrot.lane.b32.xlu2 %v4778_v3, %s5029_s9 }
0x10d0   :  { %v4735_v9 = vpop.permute.xlu0 %4734 }
0x10d1   :  { %v4737_v11 = vunpack.i.h.bf16 %v4735_v9  ;;  %v4736_v13 = vunpack.i.l.bf16 %v4735_v9 }
0x10d3   :  { %v6460_v16 = vsel %vm1659_vm5, %v4732_v62, %v4737_v11  ;;  %v6464_v58 = vsel %vm1659_vm5, %v4737_v11, %v6455_v8  ;;  %v6467_v59 = vsel %vm1659_vm5, %v4731_v63, %v4736_v13 }
0x10d4   :  { %v6469_v50 = vpop.permute.xlu1 %3129  ;;  %v4793_v51 = vpack.i.bf16 %v6460_v16, %v6467_v59  ;;  %v4788_v46 = vpack.i.bf16 %v3155_v15, %v6464_v58 }
0x10d5   :  { %v6479_v5 = vsel %vm1659_vm5, %v4736_v13, %v6469_v50  ;;  %v3156_v17 = vsel %vm3154_vm12, %v6469_v50, 0.0 }
0x10d6   :  { %4794 = vrot.lane.b32.xlu0 %v4793_v51, %s5029_s9  ;;  %4789 = vrot.lane.b32.xlu1 %v4788_v46, %s5029_s9  ;;  %v4803_v26 = vpack.i.bf16 %v3156_v17, %v6479_v5 }
0x10d7   :  { %4799 = vrot.lane.b32.xlu2 %v4793_v51, %s5030_s13 }
0x10d8   :  { %v4740_v40 = vpop.permute.xlu0 %4739 }
0x10d9   :  { %v4742_v20 = vunpack.i.h.bf16 %v4740_v40  ;;  %v4741_v44 = vunpack.i.l.bf16 %v4740_v40 }
0x10db   :  { %v3268_v21 = vsel %vm1469_vm14, %v4741_v44, %v4742_v20 }
0x10dc   :  { %3318 = vmatpush.msrb.mxu3 %v3268_v21  ;;  %v4745_v48 = vpop.permute.xlu1 %4744 }
0x10dd   :  { %v4747_v24 = vunpack.i.h.bf16 %v4745_v48  ;;  %v4746_v30 = vunpack.i.l.bf16 %v4745_v48 }
0x10de   :  { %4804 = vrot.lane.b32.xlu0 %v4803_v26, %s5029_s9  ;;  %3298 = vperm.xlu1 %4456, %v3160_v7  }
0x10df   :  { %4809 = vrot.lane.b32.xlu2 %v4803_v26, %s5030_s13  ;;  %v3261_v6 = vsel %vm1469_vm14, %v4746_v30, %v4747_v24 }
0x10e0   :  { %v4755_v31 = vpop.permute.xlu0 %4754  ;;  %3319 = vmatpush.msrb.mxu3 %v3261_v6 }
0x10e1   :  { %v4757_v32 = vunpack.i.h.bf16 %v4755_v31  ;;  %v4756_v29 = vunpack.i.l.bf16 %v4755_v31 }
0x10e2   :  { %3320 = vmatpush.msrb.mxu3 %v3206_v4 }
0x10e3   :  { %v3199_v37 = vsel %vm1440_vm15, %v4756_v29, %v4757_v32 }
0x10e4   :  { %3321 = vmatpush.msrb.mxu3 %v3199_v37 }
0x10e6   :  { %4333 = vmatpush.msk.msrb.mxu3 %vm5973_vm11, %v6397_v10  ;;  %4814 = vrot.lane.b32.xlu0 %v4788_v46, %s5030_s13 }
0x10e7   :  { %3293 = vperm.xlu2 %4457, %v3159_v38  }
0x10e8   :  { %4335 = vmatpush.msk.msrb.mxu3 %vm5973_vm11, %v6406_v33 }
0x10e9   :  { %4336 = vmatmul.msk.f32.vlgmr.msrb.gmra.mxu3 %vm3301_vm13, %v6497_v39 }
0x10f1   :  { %4337 = vmatmul.msk.f32.gmra.mxu3 %vm3301_vm13, %v6505_v12 }
0x1120   :  { %v4760_v41 = vpop.permute.xlu2 %4759 }
0x1121   :  { %v4762_v23 = vunpack.i.h.bf16 %v4760_v41  ;;  %v4761_v43 = vunpack.i.l.bf16 %v4760_v41 }
0x1123   :  { %v3262_v54 = vsel %vm1469_vm14, %v4747_v24, %v4761_v43  ;;  %v3263_v56 = vsel %vm1469_vm14, %v4761_v43, %v4762_v23 }
0x1128   :  { %v4785_v10 = vpop.permute.xlu0 %4784  ;;  %v4765_v42 = vpop.permute.xlu1 %4764 }
0x1129   :  { %v4767_v22 = vunpack.i.h.bf16 %v4765_v42  ;;  %v4766_v27 = vunpack.i.l.bf16 %v4765_v42  ;;  %v4775_v35 = vpop.permute.xlu2 %4774  ;;  %v4787_v34 = vunpack.i.h.bf16 %v4785_v10  ;;  %v4786_v33 = vunpack.i.l.bf16 %v4785_v10 }
0x112a   :  { %v4777_v36 = vunpack.i.h.bf16 %v4775_v35  ;;  %v4776_v45 = vunpack.i.l.bf16 %v4775_v35  ;;  %v3516_v35 = vld [vmem:[%s5251_s12 + $0x40] sm:$0xff] }
0x112b   :  { %v3269_v49 = vsel %vm1469_vm14, %v4742_v20, %v4766_v27  ;;  %v3270_v52 = vsel %vm1469_vm14, %v4766_v27, %v4767_v22  ;;  %v3207_v62 = vsel %vm1440_vm15, %v4752_v25, %v4786_v33  ;;  %v3208_v63 = vsel %vm1440_vm15, %v4786_v33, %v4787_v34 }
0x112c   :  { %3341 = vmatpush.msra.mxu1 %v3269_v49  ;;  %3364 = vmatpush.msrb.mxu2 %v3270_v52  ;;  %v3271_v53 = vsel %vm1469_vm14, %v4767_v22, %v4776_v45  ;;  %v3264_v61 = vsel %vm1469_vm14, %v4762_v23, %v4777_v36 }
0x112d   :  { %3387 = vmatpush.msra.mxu0 %v3271_v53 }
0x112e   :  { %3342 = vmatpush.msra.mxu1 %v3262_v54  ;;  %3365 = vmatpush.msrb.mxu2 %v3263_v56  ;;  %v3509_v54 = vld [vmem:[%s5251_s12 + $0x8] sm:$0xff] }
0x112f   :  { %3388 = vmatpush.msra.mxu0 %v3264_v61  ;;  %v3517_v56 = vld [vmem:[%s5251_s12 + $0x48] sm:$0xff] }
0x1130   :  { %3343 = vmatpush.msra.mxu1 %v3207_v62  ;;  %3366 = vmatpush.msrb.mxu2 %v3208_v63 }
0x1138   :  { %v4770_v3 = vpop.permute.xlu1 %4769 }
0x1139   :  { %v4772_v9 = vunpack.i.h.bf16 %v4770_v3  ;;  %v4771_v11 = vunpack.i.l.bf16 %v4770_v3 }
0x113b   :  { %v3200_v13 = vsel %vm1440_vm15, %v4757_v32, %v4771_v11  ;;  %v3201_v15 = vsel %vm1440_vm15, %v4771_v11, %v4772_v9 }
0x113c   :  { %3344 = vmatpush.msra.mxu1 %v3200_v13  ;;  %3367 = vmatpush.msrb.mxu2 %v3201_v15 }
0x113e   :  { %3345 = vmatpush.msra.mxu1 %v6401_v28  ;;  %3368 = vmatpush.msrb.mxu2 %v6424_v19  ;;  %v4800_v19 = vpop.permute.xlu2 %4799 }
0x113f   :  { %v4801_v44 = vunpack.i.l.bf16 %v4800_v19 }
0x1140   :  { %3346 = vmatpush.msra.mxu1 %v6412_v1  ;;  %3369 = vmatpush.msrb.mxu2 %v6436_v57  ;;  %v4780_v51 = vpop.permute.xlu1 %4779 }
0x1141   :  { %v4782_v46 = vunpack.i.h.bf16 %v4780_v51  ;;  %v4781_v40 = vunpack.i.l.bf16 %v4780_v51  ;;  %4338 = vmatmul.msk.f32.vlgmr.msra.gmra.mxu1 %vm3301_vm13, %v6497_v39  ;;  %4340 = vmatmul.msk.f32.vlgmr.msrb.gmra.mxu2 %vm3301_vm13, %v6497_v39 }
0x1143   :  { %v3209_v47 = vsel %vm1440_vm15, %v4787_v34, %v4781_v40  ;;  %v3202_v28 = vsel %vm1440_vm15, %v4772_v9, %v4782_v46  ;;  %v3210_v25 = vsel %vm1440_vm15, %v4781_v40, %v4801_v44  ;;  %v3511_v40 = vld [vmem:[%s5251_s12 + $0x18] sm:$0xff] }
0x1144   :  { %3389 = vmatpush.msra.mxu0 %v3209_v47 }
0x1146   :  { %3390 = vmatpush.msra.mxu0 %v3202_v28  ;;  %v4810_v48 = vpop.permute.xlu2 %4809  ;;  %v3510_v28 = vld [vmem:[%s5251_s12 + $0x10] sm:$0xff] }
0x1147   :  { %v4812_v29 = vunpack.i.h.bf16 %v4810_v48  ;;  %v4811_v4 = vunpack.i.l.bf16 %v4810_v48 }
0x1148   :  { %v4795_v17 = vpop.permute.xlu0 %4794  ;;  %3391 = vmatpush.msra.mxu0 %v6427_v18  ;;  %v4802_v18 = vunpack.i.h.bf16 %v4800_v19  ;;  %v4790_v7 = vpop.permute.xlu1 %4789 }
0x1149   :  { %v4797_v1 = vunpack.i.h.bf16 %v4795_v17  ;;  %v4796_v57 = vunpack.i.l.bf16 %v4795_v17  ;;  %4339 = vmatmul.msk.f32.gmra.mxu1 %vm3301_vm13, %v6505_v12  ;;  %4341 = vmatmul.msk.f32.gmra.mxu2 %vm3301_vm13, %v6505_v12  ;;  %v4792_v30 = vunpack.i.h.bf16 %v4790_v7  ;;  %v4791_v6 = vunpack.i.l.bf16 %v4790_v7 }
0x114a   :  { %3392 = vmatpush.msra.mxu0 %v6439_v60  ;;  %v3203_v60 = vsel %vm1440_vm15, %v4782_v46, %v4802_v18  ;;  %v3211_v10 = vsel %vm1440_vm15, %v4801_v44, %v4811_v4  ;;  %v3519_v44 = vld [vmem:[%s5251_s12 + $0x58] sm:$0xff] }
0x114b   :  { %4342 = vmatmul.msk.f32.vlgmr.msra.gmra.mxu0 %vm3301_vm13, %v6497_v39  ;;  %v3272_v20 = vsel %vm1469_vm14, %v4776_v45, %v4796_v57  ;;  %v3265_v21 = vsel %vm1469_vm14, %v4777_v36, %v4797_v1  ;;  %v3266_v37 = vsel %vm1469_vm14, %v4797_v1, %v4791_v6  ;;  %v3267_v38 = vsel %vm1469_vm14, %v4791_v6, %v4792_v30 }
0x114c   :  { %3410 = vmatpush.msra.mxu3 %v3272_v20  ;;  %v3518_v20 = vld [vmem:[%s5251_s12 + $0x50] sm:$0xff] }
0x114e   :  { %3411 = vmatpush.msra.mxu3 %v3265_v21 }
0x1150   :  { %v4805_v26 = vpop.permute.xlu0 %4804  ;;  %3412 = vmatpush.msra.mxu3 %v3210_v25 }
0x1151   :  { %v4807_v55 = vunpack.i.h.bf16 %v4805_v26  ;;  %v4806_v24 = vunpack.i.l.bf16 %v4805_v26 }
0x1152   :  { %3413 = vmatpush.msra.mxu3 %v3203_v60  ;;  %v3512_v60 = vld [vmem:[%s5251_s12 + $0x20] sm:$0xff] }
0x1153   :  { %4343 = vmatmul.msk.f32.gmra.mxu0 %vm3301_vm13, %v6505_v12  ;;  %v3273_v31 = vsel %vm1469_vm14, %v4796_v57, %v4806_v24  ;;  %v3274_v32 = vsel %vm1469_vm14, %v4806_v24, %v4807_v55 }
0x1154   :  { %3479 = vmatpush.msrb.mxu0 %v4807_v55  ;;  %3414 = vmatpush.msra.mxu3 %v6449_v2  ;;  %v3212_v2 = vsel %vm1440_vm15, %v4811_v4, %v4812_v29 }
0x1155   :  { %3433 = vmatpush.msrb.mxu1 %v3273_v31  ;;  %3456 = vmatpush.msra.mxu2 %v3274_v32 }
0x1156   :  { %3480 = vmatpush.msrb.mxu0 %v4792_v30  ;;  %3415 = vmatpush.msra.mxu3 %v6446_v0 }
0x1157   :  { %3434 = vmatpush.msrb.mxu1 %v3266_v37  ;;  %3457 = vmatpush.msra.mxu2 %v3267_v38 }
0x1158   :  { %4344 = vmatmul.msk.f32.vlgmr.msra.gmra.mxu3 %vm3301_vm13, %v6497_v39  ;;  %3481 = vmatpush.msrb.mxu0 %v4812_v29  ;;  %v4815_v41 = vpop.permute.xlu0 %4814 }
0x1159   :  { %v4817_v42 = vunpack.i.h.bf16 %v4815_v41  ;;  %v4816_v23 = vunpack.i.l.bf16 %v4815_v41  ;;  %3435 = vmatpush.msrb.mxu1 %v3211_v10  ;;  %3458 = vmatpush.msra.mxu2 %v3212_v2  ;;  %v3520_v41 = vld [vmem:[%s5251_s12 + $0x60] sm:$0xff] }
0x115b   :  { %3482 = vmatpush.msrb.mxu0 %v4817_v42  ;;  %v3204_v0 = vsel %vm1440_vm15, %v4802_v18, %v4816_v23  ;;  %v3205_v43 = vsel %vm1440_vm15, %v4816_v23, %v4817_v42 }
0x115c   :  { %3436 = vmatpush.msrb.mxu1 %v3204_v0  ;;  %3459 = vmatpush.msra.mxu2 %v3205_v43 }
0x115d   :  { %4350 = vmatpush.msk.msrb.mxu0 %vm3154_vm12, %v6469_v50 }
0x115e   :  { %3437 = vmatpush.msrb.mxu1 %v6467_v59  ;;  %3460 = vmatpush.msra.mxu2 %v6479_v5  ;;  %v3508_v59 = vld [vmem:[%s5251_s12] sm:$0xff] }
0x115f   :  { %4351 = vmatpush.msk.msrb.mxu0 %vm3154_vm12, %v6455_v8  ;;  %v6577_v8 = vpop.permute.xlu2 %3293 }
0x1160   :  { %4345 = vmatmul.msk.f32.gmra.mxu3 %vm3301_vm13, %v6505_v12  ;;  %3438 = vmatpush.msrb.mxu1 %v6460_v16 }
0x1161   :  { %3461 = vmatpush.msra.mxu2 %v6464_v58  ;;  %4352 = vmatmul.msk.f32.vlgmr.msrb.gmra.mxu0 %vm3301_vm13, %v6497_v39 }
0x1162   :  { %4346 = vmatmul.msk.f32.vlgmr.msrb.gmra.mxu1 %vm3301_vm13, %v6497_v39  ;;  %4348 = vmatmul.msk.f32.vlgmr.msra.gmra.mxu2 %vm3301_vm13, %v6497_v39  ;;  %v6582_v39 = vpop.permute.xlu1 %3298 }
0x1169   :  { %4353 = vmatmul.msk.f32.gmra.mxu0 %vm3301_vm13, %v6505_v12 }
0x116a   :  { %4347 = vmatmul.msk.f32.gmra.mxu1 %vm3301_vm13, %v6505_v12  ;;  %4349 = vmatmul.msk.f32.gmra.mxu2 %vm3301_vm13, %v6505_v12 }
0x116c   :  { %v3325_v16 = vpop.f32.mrf.mxu3 }
0x116d   :  { %v3326_v58 = vadd.f32 %v3325_v16, %v6577_v8 }
0x116f   :  { %v3492_v50 = vmax.f32 %v3326_v58, 0.0  ;;  %v3513_v58 = vld [vmem:[%s5251_s12 + $0x28] sm:$0xff] }
0x1171   :  { %v3524_v5 = vmul.f32 %v3508_v59, %v3492_v50  ;;  %v3521_v59 = vld [vmem:[%s5251_s12 + $0x68] sm:$0xff] }
0x1173   :  { %3548 = vrot.lane.b32.xlu2 %v3524_v5, %s5027_s0 }
0x1174   :  { %v3328_v22 = vpop.f32.mrf.mxu3 }
0x1175   :  { %v3329_v27 = vadd.f32 %v3328_v22, %v6582_v39 }
0x1177   :  { %v3500_v36 = vmax.f32 %v3329_v27, 0.0 }
0x1179   :  { %v3532_v12 = vmul.f32 %v3516_v35, %v3500_v36 }
0x117b   :  { %3556 = vrot.lane.b32.xlu0 %v3532_v12, %s5027_s0 }
0x11be   :  { %v3348_v45 = vpop.f32.mrf.mxu1 }
0x11bf   :  { %v3349_v34 = vadd.f32 %v3348_v45, %v6577_v8 }
0x11c1   :  { %v3493_v52 = vmax.f32 %v3349_v34, 0.0 }
0x11c3   :  { %v3525_v3 = vmul.f32 %v3509_v54, %v3493_v52 }
0x11c4   :  { %v3371_v33 = vpop.f32.mrf.mxu2 }
0x11c5   :  { %v3372_v9 = vadd.f32 %v3371_v33, %v6577_v8  ;;  %v3523_v33 = vld [vmem:[%s5251_s12 + $0x78] sm:$0xff] }
0x11c6   :  { %v3351_v49 = vpop.f32.mrf.mxu1 }
0x11c7   :  { %v3352_v53 = vadd.f32 %v3351_v49, %v6582_v39  ;;  %v3494_v47 = vmax.f32 %v3372_v9, 0.0  ;;  %v3522_v49 = vld [vmem:[%s5251_s12 + $0x70] sm:$0xff] }
0x11c8   :  { %v3394_v61 = vpop.f32.mrf.mxu0  ;;  %v3514_v9 = vld [vmem:[%s5251_s12 + $0x30] sm:$0xff] }
0x11c9   :  { %v3501_v62 = vmax.f32 %v3352_v53, 0.0  ;;  %v3395_v63 = vadd.f32 %v3394_v61, %v6577_v8  ;;  %v3526_v21 = vmul.f32 %v3510_v28, %v3494_v47 }
0x11cb   :  { %v3533_v11 = vmul.f32 %v3517_v56, %v3501_v62  ;;  %v3495_v51 = vmax.f32 %v3395_v63, 0.0 }
0x11cc   :  { %v3374_v13 = vpop.f32.mrf.mxu2 }
0x11cd   :  { %v4818_v15 = vpack.i.bf16 %v3525_v3, %v3533_v11  ;;  %v3375_v46 = vadd.f32 %v3374_v13, %v6582_v39  ;;  %v3527_v17 = vmul.f32 %v3511_v40, %v3495_v51  ;;  %v3515_v3 = vld [vmem:[%s5251_s12 + $0x38] sm:$0xff]  ;;  %v6625_v13 = vpop.permute.xlu2 %3548  ;;  %s7042_s12 = sld [smem:[#allocation25_spill]] }
0x11ce   :  { %v3624_v40 = vsel %vm685_vm3, 0.0, %v6625_v13 }
0x11cf   :  { %4819 = vrot.lane.b32.xlu1 %v4818_v15, %s5027_s0  ;;  %v3502_v1 = vmax.f32 %v3375_v46, 0.0  ;;  %v4823_v7 = vpack.i.bf16 %v3527_v17, %v3526_v21 }
0x11d0   :  { %v3397_v19 = vpop.f32.mrf.mxu0 }
0x11d1   :  { %v3398_v57 = vadd.f32 %v3397_v19, %v6582_v39  ;;  %v3534_v25 = vmul.f32 %v3518_v20, %v3502_v1 }
0x11d3   :  { %v3503_v18 = vmax.f32 %v3398_v57, 0.0 }
0x11d5   :  { %v3535_v26 = vmul.f32 %v3519_v44, %v3503_v18 }
0x11d7   :  { %v4828_v48 = vpack.i.bf16 %v3535_v26, %v3534_v25  ;;  %4824 = vrot.lane.b32.xlu1 %v4823_v7, %s5027_s0 }
0x11d9   :  { %4829 = vrot.lane.b32.xlu0 %v4828_v48, %s5027_s0  ;;  %s7043_s0 = sld [smem:[#allocation24_spill]] }
0x11db   :  { %v3417_v55 = vpop.f32.mrf.mxu3 }
0x11dc   :  { %v3418_v24 = vadd.f32 %v3417_v55, %v6577_v8 }
0x11de   :  { %v3496_v30 = vmax.f32 %v3418_v24, 0.0  ;;  %v3486_v6 = vpop.f32.mrf.mxu0 }
0x11df   :  { %v3440_v31 = vpop.f32.mrf.mxu1  ;;  %v3487_v53 = vadd.f32 %v3486_v6, %v6577_v8 }
0x11e0   :  { %v3528_v32 = vmul.f32 %v3512_v60, %v3496_v30  ;;  %v3441_v37 = vadd.f32 %v3440_v31, %v6577_v8 }
0x11e1   :  { %v3499_v62 = vmax.f32 %v3487_v53, 0.0 }
0x11e2   :  { %v4833_v29 = vpack.i.bf16 %v3528_v32, %v3527_v17  ;;  %v3497_v0 = vmax.f32 %v3441_v37, 0.0 }
0x11e3   :  { %v3420_v4 = vpop.f32.mrf.mxu3 }
0x11e4   :  { %v3421_v38 = vadd.f32 %v3420_v4, %v6582_v39  ;;  %4834 = vrot.lane.b32.xlu0 %v4833_v29, %s5036_s11  ;;  %v3529_v27 = vmul.f32 %v3513_v58, %v3497_v0 }
0x11e5   :  { %v3463_v10 = vpop.f32.mrf.mxu2 }
0x11e6   :  { %v3504_v2 = vmax.f32 %v3421_v38, 0.0  ;;  %v3489_v42 = vpop.f32.mrf.mxu0  ;;  %v3464_v54 = vadd.f32 %v3463_v10, %v6577_v8 }
0x11e7   :  { %v3443_v23 = vpop.f32.mrf.mxu1  ;;  %v3490_v5 = vadd.f32 %v3489_v42, %v6582_v39 }
0x11e8   :  { %v3536_v43 = vmul.f32 %v3520_v41, %v3504_v2  ;;  %v3444_v16 = vadd.f32 %v3443_v23, %v6582_v39  ;;  %v3498_v63 = vmax.f32 %v3464_v54, 0.0  ;;  %v3634_v54 = vld [vmem:[%s7042_s12] sm:$0xff] }
0x11e9   :  { %v3507_v12 = vmax.f32 %v3490_v5, 0.0 }
0x11ea   :  { %v4838_v50 = vpack.i.bf16 %v3536_v43, %v3535_v26  ;;  %v3505_v22 = vmax.f32 %v3444_v16, 0.0  ;;  %v3530_v11 = vmul.f32 %v3514_v9, %v3498_v63 }
0x11eb   :  { %v3539_v56 = vmul.f32 %v3523_v33, %v3507_v12 }
0x11ec   :  { %v3537_v35 = vmul.f32 %v3521_v59, %v3505_v22  ;;  %4839 = vrot.lane.b32.xlu2 %v4838_v50, %s5036_s11 }
0x11ed   :  { %v3466_v36 = vpop.f32.mrf.mxu2  ;;  %v6627_v15 = vpop.permute.xlu0 %3556 }
0x11ee   :  { %v4843_v45 = vpack.i.bf16 %v3529_v27, %v3537_v35  ;;  %v3467_v34 = vadd.f32 %v3466_v36, %v6582_v39  ;;  %v3531_v39 = vmul.f32 %v3515_v3, %v3499_v62  ;;  %v3625_v47 = vsel %vm685_vm3, 0.0, %v6627_v15 }
0x11f0   :  { %v3506_v52 = vmax.f32 %v3467_v34, 0.0  ;;  %4844 = vrot.lane.b32.xlu0 %v4843_v45, %s5036_s11 }
0x11f2   :  { %v3538_v61 = vmul.f32 %v3522_v49, %v3506_v52 }
0x11f4   :  { %3604 = vrot.lane.b32.xlu2 %v3539_v56, %s5036_s11  ;;  %3602 = vrot.lane.b32.xlu1 %v3538_v61, %s5036_s11 }
0x11fc   :  { %3594 = vrot.lane.b32.xlu2 %v3531_v39, %s5036_s11  ;;  %3592 = vrot.lane.b32.xlu1 %v3530_v11, %s5036_s11 }
0x1241   :  { %v4820_v8 = vpop.permute.xlu1 %4819 }
0x1242   :  { %v4822_v51 = vunpack.i.h.bf16 %v4820_v8  ;;  %v4821_v46 = vunpack.i.l.bf16 %v4820_v8 }
0x1244   :  { %v6635_v28 = vsel %vm685_vm3, %v6625_v13, %v4822_v51  ;;  %v6639_v19 = vsel %vm685_vm3, %v6627_v15, %v4821_v46 }
0x1245   :  { %v4863_v17 = vpack.i.bf16 %v6639_v19, %v3625_v47  ;;  %v4853_v1 = vpack.i.bf16 %v6635_v28, %v3624_v40 }
0x1246   :  { %v4840_v57 = vpop.permute.xlu2 %4839 }
0x1247   :  { %4864 = vrot.lane.b32.xlu2 %v4863_v17, %s5030_s13  ;;  %4854 = vrot.lane.b32.xlu0 %v4853_v1, %s5030_s13  ;;  %v4842_v20 = vunpack.i.h.bf16 %v4840_v57  ;;  %v4841_v44 = vunpack.i.l.bf16 %v4840_v57 }
0x1248   :  { %4849 = vrot.lane.b32.xlu1 %v4853_v1, %s5029_s9 }
0x1249   :  { %v4825_v21 = vpop.permute.xlu1 %4824  ;;  %v6647_v25 = vsel %vm1633_vm4, %v4841_v44, %v4842_v20 }
0x124a   :  { %v4826_v18 = vunpack.i.l.bf16 %v4825_v21  ;;  %v4827_v32 = vunpack.i.h.bf16 %v4825_v21 }
0x124b   :  { %v4830_v7 = vpop.permute.xlu0 %4829 }
0x124c   :  { %v6650_v26 = vsel %vm685_vm3, %v4822_v51, %v4826_v18  ;;  %v4832_v48 = vunpack.i.h.bf16 %v4830_v7  ;;  %v4831_v55 = vunpack.i.l.bf16 %v4830_v7  ;;  %v3566_v4 = vsel %vm685_vm3, %v4826_v18, %v4827_v32  ;;  %v6730_v32 = vld [vmem:[%s7043_s0] sm:$0xff] }
0x124d   :  { %v4888_v24 = vpack.i.bf16 %v6650_v26, %v6647_v25  ;;  %v3626_v10 = vsel %vm1659_vm5, %v3566_v4, 0.0 }
0x124e   :  { %v3569_v60 = vsel %vm685_vm3, %v4831_v55, %v4832_v48  ;;  %v6659_v6 = vsel %vm685_vm3, %v4821_v46, %v4831_v55  ;;  %v3605_v43 = vpop.permute.xlu2 %3604  ;;  %vm3630_vm3 = vcmask 850944  }
0x124f   :  { %v3627_v30 = vsel %vm1659_vm5, %v3569_v60, 0.0  ;;  %4859 = vrot.lane.b32.xlu0 %v4863_v17, %s5029_s9  ;;  %4889 = vrot.lane.b32.xlu2 %v4888_v24, %s5029_s9 }
0x1250   :  { %v6662_v31 = vsel %vm2055_vm9, %v3627_v30, %v4841_v44 }
0x1251   :  { %v4868_v29 = vpack.i.bf16 %v6662_v31, %v6659_v6 }
0x1253   :  { %4869 = vrot.lane.b32.xlu1 %v4868_v29, %s5029_s9 }
0x1256   :  { %v4835_v37 = vpop.permute.xlu0 %4834  ;;  %v3595_v35 = vpop.permute.xlu2 %3594 }
0x1257   :  { %v4837_v38 = vunpack.i.h.bf16 %v4835_v37  ;;  %v4836_v41 = vunpack.i.l.bf16 %v4835_v37  ;;  %4894 = vrot.lane.b32.xlu2 %v4888_v24, %s5030_s13 }
0x1259   :  { %v6671_v2 = vsel %vm1633_vm4, %v4836_v41, %v4837_v38  ;;  %v6674_v42 = vsel %vm2055_vm9, %v3626_v10, %v4836_v41 }
0x125a   :  { %v4878_v23 = vpack.i.bf16 %v6671_v2, %v6674_v42 }
0x125b   :  { %4874 = vrot.lane.b32.xlu1 %v4868_v29, %s5030_s13 }
0x125c   :  { %4879 = vrot.lane.b32.xlu0 %v4878_v23, %s5029_s9 }
0x1262   :  { %v4845_v0 = vpop.permute.xlu0 %4844 }
0x1263   :  { %v4846_v16 = vunpack.i.l.bf16 %v4845_v0  ;;  %v4847_v27 = vunpack.i.h.bf16 %v4845_v0 }
0x1264   :  { %4884 = vrot.lane.b32.xlu0 %v4878_v23, %s5030_s13 }
0x1265   :  { %v6693_v36 = vsel %vm1633_vm4, %v4837_v38, %v4847_v27  ;;  %v6696_v12 = vsel %vm1633_vm4, %v4842_v20, %v4846_v16 }
0x1266   :  { %v3603_v58 = vpop.permute.xlu1 %3602  ;;  %v4908_v53 = vpack.i.bf16 %v6693_v36, %v6696_v12 }
0x1267   :  { %v6682_v59 = vsel %vm1633_vm4, %v4846_v16, %v3603_v58  ;;  %v6685_v50 = vsel %vm1633_vm4, %v3603_v58, %v3605_v43 }
0x1268   :  { %v3632_v5 = vsel %vm3630_vm3, %v6685_v50, 0.0 }
0x1269   :  { %v4918_v22 = vpack.i.bf16 %v3632_v5, %v6682_v59 }
0x126b   :  { %4904 = vrot.lane.b32.xlu1 %v4918_v22, %s5029_s9 }
0x126c   :  { %4919 = vrot.lane.b32.xlu0 %v4918_v22, %s5030_s13 }
0x126e   :  { %v3593_v45 = vpop.permute.xlu1 %3592 }
0x126f   :  { %v6699_v34 = vsel %vm1633_vm4, %v4847_v27, %v3593_v45  ;;  %v6702_v33 = vsel %vm1633_vm4, %v3593_v45, %v3595_v35 }
0x1270   :  { %v3631_v49 = vsel %vm3630_vm3, %v6702_v33, 0.0 }
0x1271   :  { %v4898_v52 = vpack.i.bf16 %v3631_v49, %v6699_v34 }
0x1273   :  { %4909 = vrot.lane.b32.xlu1 %v4908_v53, %s5029_s9  ;;  %4899 = vrot.lane.b32.xlu2 %v4898_v52, %s5029_s9  ;;  %s5041_s9 = smov 12  }
0x1274   :  { %4924 = vrot.lane.b32.xlu0 %v4908_v53, %s5030_s13 }
0x127b   :  { %3767 = vperm.xlu1 %4456, %v3634_v54   ;;  %4914 = vrot.lane.b32.xlu2 %v4898_v52, %s5030_s13  ;;  %s5042_s13 = smov [#allocation2]  }
0x127c   :  { %s4130_s8 = sshll.u32 %s5042_s13, 4  ;;  %s4131_s8 = int_to_ptr.vmem [resolvable:$true] %s4130_s8 }
0x12a1   :  { %v4865_v56 = vpop.permute.xlu2 %4864 }
0x12a2   :  { %v4867_v51 = vunpack.i.h.bf16 %v4865_v56  ;;  %v4866_v46 = vunpack.i.l.bf16 %v4865_v56 }
0x12a4   :  { %v3680_v18 = vsel %vm1440_vm15, %v4866_v46, %v4867_v51 }
0x12a9   :  { %v6714_v8 = vpop.permute.xlu2 %4889 }
0x12aa   :  { %v4892_v21 = vunpack.i.h.bf16 %v6714_v8  ;;  %v4891_v29 = vunpack.i.l.bf16 %v6714_v8 }
0x12b1   :  { %v6724_v60 = vpop.permute.xlu2 %4894 }
0x12b2   :  { %v4897_v23 = vunpack.i.h.bf16 %v6724_v60 }
0x12b9   :  { %v4855_v61 = vpop.permute.xlu0 %4854 }
0x12ba   :  { %v4850_v62 = vpop.permute.xlu1 %4849  ;;  %v4857_v47 = vunpack.i.h.bf16 %v4855_v61  ;;  %v4856_v1 = vunpack.i.l.bf16 %v4855_v61 }
0x12bb   :  { %v4852_v3 = vunpack.i.h.bf16 %v4850_v62  ;;  %v4851_v9 = vunpack.i.l.bf16 %v4850_v62 }
0x12bc   :  { %v3673_v55 = vsel %vm1440_vm15, %v4856_v1, %v4857_v47  ;;  %v3674_v16 = vsel %vm1440_vm15, %v4857_v47, %v4897_v23 }
0x12bd   :  { %v3735_v44 = vsel %vm1469_vm14, %v4851_v9, %v4852_v3  ;;  %v3736_v24 = vsel %vm1469_vm14, %v4852_v3, %v4892_v21 }
0x12c1   :  { %v4860_v63 = vpop.permute.xlu0 %4859 }
0x12c2   :  { %v4862_v39 = vunpack.i.h.bf16 %v4860_v63  ;;  %v4861_v11 = vunpack.i.l.bf16 %v4860_v63 }
0x12c4   :  { %v3742_v40 = vsel %vm1469_vm14, %v4861_v11, %v4862_v39 }
0x12c5   :  { %3783 = vmatpush.msrb.mxu3 %v3742_v40  ;;  %v4870_v17 = vpop.permute.xlu1 %4869 }
0x12c6   :  { %v4872_v57 = vunpack.i.h.bf16 %v4870_v17  ;;  %v4871_v20 = vunpack.i.l.bf16 %v4870_v17 }
0x12c7   :  { %3784 = vmatpush.msrb.mxu3 %v3735_v44 }
0x12c8   :  { %v3743_v7 = vsel %vm1469_vm14, %v4862_v39, %v4871_v20  ;;  %v3744_v48 = vsel %vm1469_vm14, %v4871_v20, %v4872_v57 }
0x12c9   :  { %3785 = vmatpush.msrb.mxu3 %v3680_v18  ;;  %3803 = vmatpush.msra.mxu1 %v3743_v7 }
0x12ca   :  { %3823 = vmatpush.msrb.mxu2 %v3744_v48 }
0x12cb   :  { %3786 = vmatpush.msrb.mxu3 %v3673_v55  ;;  %3804 = vmatpush.msra.mxu1 %v3736_v24 }
0x12cd   :  { %v4875_v30 = vpop.permute.xlu1 %4874  ;;  %4355 = vmatpush.msk.msrb.mxu3 %vm5973_vm11, %v6627_v15  ;;  %v3745_v15 = vsel %vm1469_vm14, %v4872_v57, %v4891_v29  ;;  %v4900_v22 = vpop.permute.xlu2 %4899 }
0x12ce   :  { %v4876_v4 = vunpack.i.l.bf16 %v4875_v30  ;;  %v6733_v37 = vpop.permute.xlu0 %4879  ;;  %v4877_v38 = vunpack.i.h.bf16 %v4875_v30  ;;  %v4902_v53 = vunpack.i.h.bf16 %v4900_v22  ;;  %v4901_v54 = vunpack.i.l.bf16 %v4900_v22 }
0x12cf   :  { %v4882_v41 = vunpack.i.h.bf16 %v6733_v37  ;;  %v4881_v10 = vunpack.i.l.bf16 %v6733_v37  ;;  %4357 = vmatpush.msk.msrb.mxu3 %vm5973_vm11, %v6625_v13  ;;  %v4896_v13 = vunpack.i.l.bf16 %v6724_v60 }
0x12d0   :  { %4358 = vmatmul.msk.f32.vlgmr.msrb.gmra.mxu3 %vm3301_vm13, %v6730_v32  ;;  %v3681_v0 = vsel %vm1440_vm15, %v4867_v51, %v4876_v4  ;;  %v3682_v58 = vsel %vm1440_vm15, %v4876_v4, %v4877_v38 }
0x12d1   :  { %3843 = vmatpush.msra.mxu3 %v3745_v15  ;;  %3805 = vmatpush.msra.mxu1 %v3681_v0  ;;  %v3737_v43 = vsel %vm1469_vm14, %v4892_v21, %v4881_v10  ;;  %v3738_v14 = vsel %vm1469_vm14, %v4881_v10, %v4882_v41  ;;  %v3683_v5 = vsel %vm1440_vm15, %v4877_v38, %v4896_v13 }
0x12d2   :  { %3824 = vmatpush.msrb.mxu2 %v3737_v43 }
0x12d3   :  { %3844 = vmatpush.msra.mxu3 %v3738_v14  ;;  %3806 = vmatpush.msra.mxu1 %v3674_v16 }
0x12d4   :  { %3825 = vmatpush.msrb.mxu2 %v3682_v58 }
0x12d5   :  { %3845 = vmatpush.msra.mxu3 %v3683_v5  ;;  %3807 = vmatpush.msra.mxu1 %v6639_v19 }
0x12d6   :  { %v6758_v27 = vpop.permute.xlu0 %4884 }
0x12d7   :  { %v4887_v35 = vunpack.i.h.bf16 %v6758_v27  ;;  %v4886_v45 = vunpack.i.l.bf16 %v6758_v27  ;;  %3808 = vmatpush.msra.mxu1 %v6635_v28  ;;  %v4915_v28 = vpop.permute.xlu2 %4914 }
0x12d8   :  { %4359 = vmatmul.msk.f32.vlgmr.msra.gmra.mxu1 %vm3301_vm13, %v6730_v32  ;;  %v4917_v3 = vunpack.i.h.bf16 %v4915_v28  ;;  %v4916_v9 = vunpack.i.l.bf16 %v4915_v28 }
0x12d9   :  { %v3675_v49 = vsel %vm1440_vm15, %v4897_v23, %v4886_v45  ;;  %v3676_v52 = vsel %vm1440_vm15, %v4886_v45, %v4887_v35 }
0x12da   :  { %3826 = vmatpush.msrb.mxu2 %v3675_v49  ;;  %3846 = vmatpush.msra.mxu3 %v3676_v52  ;;  %v3679_v40 = vsel %vm1440_vm15, %v4916_v9, %v4917_v3 }
0x12dc   :  { %3827 = vmatpush.msrb.mxu2 %v6659_v6  ;;  %3847 = vmatpush.msra.mxu3 %v6662_v31 }
0x12dd   :  { %v4905_v19 = vpop.permute.xlu1 %4904 }
0x12de   :  { %v4907_v56 = vunpack.i.h.bf16 %v4905_v19  ;;  %v4906_v61 = vunpack.i.l.bf16 %v4905_v19  ;;  %v4920_v62 = vpop.permute.xlu0 %4919  ;;  %3828 = vmatpush.msrb.mxu2 %v6650_v26  ;;  %3848 = vmatpush.msra.mxu3 %v6674_v42  ;;  %v3741_v26 = vsel %vm1469_vm14, %v4901_v54, %v4902_v53 }
0x12df   :  { %4360 = vmatmul.msk.f32.vlgmr.msrb.gmra.mxu2 %vm3301_vm13, %v6730_v32  ;;  %4361 = vmatmul.msk.f32.vlgmr.msra.gmra.mxu3 %vm3301_vm13, %v6730_v32  ;;  %v4922_v6 = vunpack.i.h.bf16 %v4920_v62  ;;  %v4921_v63 = vunpack.i.l.bf16 %v4920_v62 }
0x12e0   :  { %3923 = vmatpush.msrb.mxu3 %v4907_v56  ;;  %v3748_v31 = vsel %vm1469_vm14, %v4906_v61, %v4907_v56 }
0x12e1   :  { %3903 = vmatpush.msra.mxu2 %v3748_v31  ;;  %v3686_v42 = vsel %vm1440_vm15, %v4921_v63, %v4922_v6 }
0x12e2   :  { %3924 = vmatpush.msrb.mxu3 %v4902_v53 }
0x12e3   :  { %3904 = vmatpush.msra.mxu2 %v3741_v26 }
0x12e4   :  { %3925 = vmatpush.msrb.mxu3 %v4922_v6 }
0x12e5   :  { %v4910_v39 = vpop.permute.xlu1 %4909  ;;  %3905 = vmatpush.msra.mxu2 %v3686_v42 }
0x12e6   :  { %v4912_v11 = vunpack.i.h.bf16 %v4910_v39  ;;  %v4911_v51 = vunpack.i.l.bf16 %v4910_v39  ;;  %v4925_v46 = vpop.permute.xlu0 %4924  ;;  %3926 = vmatpush.msrb.mxu3 %v4917_v3 }
0x12e7   :  { %3906 = vmatpush.msra.mxu2 %v3679_v40  ;;  %v4926_v47 = vunpack.i.l.bf16 %v4925_v46  ;;  %v4927_v57 = vunpack.i.h.bf16 %v4925_v46 }
0x12e8   :  { %4365 = vmatpush.msk.msrb.mxu3 %vm3630_vm3, %v6685_v50  ;;  %v3746_v17 = vsel %vm1469_vm14, %v4891_v29, %v4911_v51  ;;  %v3747_v1 = vsel %vm1469_vm14, %v4911_v51, %v4906_v61  ;;  %v3739_v20 = vsel %vm1469_vm14, %v4882_v41, %v4912_v11  ;;  %v3740_v50 = vsel %vm1469_vm14, %v4912_v11, %v4901_v54 }
0x12e9   :  { %3863 = vmatpush.msra.mxu0 %v3746_v17  ;;  %3883 = vmatpush.msrb.mxu1 %v3747_v1  ;;  %v3677_v8 = vsel %vm1440_vm15, %v4887_v35, %v4927_v57  ;;  %v3678_v44 = vsel %vm1440_vm15, %v4927_v57, %v4916_v9 }
0x12ea   :  { %3907 = vmatpush.msra.mxu2 %v6682_v59  ;;  %4366 = vmatpush.msk.msrb.mxu3 %vm3630_vm3, %v6702_v33  ;;  %v3684_v59 = vsel %vm1440_vm15, %v4896_v13, %v4926_v47  ;;  %v3685_v33 = vsel %vm1440_vm15, %v4926_v47, %v4921_v63  ;;  %vm4094_vm3 = vcmask 1042434  }
0x12eb   :  { %3864 = vmatpush.msra.mxu0 %v3739_v20  ;;  %3884 = vmatpush.msrb.mxu1 %v3740_v50 }
0x12ec   :  { %3908 = vmatpush.msra.mxu2 %v6699_v34  ;;  %4367 = vmatmul.msk.f32.vlgmr.msrb.gmra.mxu3 %vm3301_vm13, %v6730_v32 }
0x12ed   :  { %4364 = vmatmul.msk.f32.vlgmr.msra.gmra.mxu2 %vm3301_vm13, %v6730_v32  ;;  %3865 = vmatpush.msra.mxu0 %v3684_v59  ;;  %v3768_v34 = vpop.permute.xlu1 %3767 }
0x12ee   :  { %3885 = vmatpush.msrb.mxu1 %v3685_v33 }
0x12ef   :  { %3866 = vmatpush.msra.mxu0 %v3677_v8 }
0x12f0   :  { %3886 = vmatpush.msrb.mxu1 %v3678_v44 }
0x12f1   :  { %3867 = vmatpush.msra.mxu0 %v6647_v25 }
0x12f2   :  { %3887 = vmatpush.msrb.mxu1 %v6696_v12 }
0x12f3   :  { %3868 = vmatpush.msra.mxu0 %v6671_v2 }
0x12f4   :  { %3888 = vmatpush.msrb.mxu1 %v6693_v36  ;;  %4362 = vmatmul.msk.f32.vlgmr.msra.gmra.mxu0 %vm3301_vm13, %v6730_v32 }
0x12f5   :  { %4363 = vmatmul.msk.f32.vlgmr.msrb.gmra.mxu1 %vm3301_vm13, %v6730_v32 }
0x1353   :  { %v3790_v21 = vpop.f32.mrf.mxu3 }
0x1354   :  { %v3791_v18 = vadd.f32 %v3790_v21, %v3768_v34  ;;  %v4098_v21 = vlaneseq }
0x1355   :  { %v3810_v7 = vpop.f32.mrf.mxu1 }
0x1356   :  { %v3933_v48 = vsub.f32 0.0, %v3791_v18  ;;  %v3811_v55 = vadd.f32 %v3810_v7, %v3768_v34 }
0x1358   :  { %v3941_v24 = vmul.f32 1.442695, %v3933_v48  ;;  %v3934_v25 = vsub.f32 0.0, %v3811_v55 }
0x135a   :  { %4928 = vpow2.f32 %v3941_v24  ;;  %v3943_v12 = vmul.f32 1.442695, %v3934_v25 }
0x135c   :  { %4930 = vpow2.f32 %v3943_v12 }
0x1360   :  { %v4929_v2 = vpop.eup %4928 }
0x1361   :  { %v6811_v60 = vadd.f32 1.0, %v4929_v2 }
0x1362   :  { %v4931_v36 = vpop.eup %4930  ;;  %v3830_v30 = vpop.f32.mrf.mxu2 }
0x1363   :  { %v3850_v29 = vpop.f32.mrf.mxu3  ;;  %v6813_v4 = vadd.f32 1.0, %v4931_v36  ;;  %v3831_v32 = vadd.f32 %v3830_v30, %v3768_v34  ;;  %4932 = vrcp.f32 %v6811_v60  ;;  %v3974_v51 = vand.u32 2147483647, %v6811_v60 }
0x1364   :  { %v3851_v37 = vadd.f32 %v3850_v29, %v3768_v34  ;;  %vm3970_vm6 = vweird.f32 %v6811_v60  ;;  %v3976_v33 = vand.u32 2147483648, %v6811_v60 }
0x1365   :  { %4934 = vrcp.f32 %v6813_v4  ;;  %v3935_v38 = vsub.f32 0.0, %v3831_v32  ;;  %v3991_v26 = vand.u32 2147483648, %v6813_v4  ;;  %vm3985_vm15 = vweird.f32 %v6813_v4 }
0x1366   :  { %v3936_v41 = vsub.f32 0.0, %v3851_v37  ;;  %v3989_v40 = vand.u32 2147483647, %v6813_v4  ;;  %vm6858_vm8 = vcmp.eq.f32.partialorder %v3974_v51, 8.507059e+37 }
0x1367   :  { %v3945_v10 = vmul.f32 1.442695, %v3935_v38  ;;  %v3992_v50 = vor.u32 1.1754944e-38, %v3991_v26 }
0x1368   :  { %v3947_v23 = vmul.f32 1.442695, %v3936_v41  ;;  %vm3990_vm9 = vcmp.eq.f32.partialorder %v3989_v40, 8.507059e+37 }
0x1369   :  { %4936 = vpow2.f32 %v3945_v10  ;;  %v6817_v15 = vpop.eup %4932 }
0x136a   :  { %4938 = vpow2.f32 %v3947_v23  ;;  %v3966_v14 = vmul.f32 %v6817_v15, %v6811_v60  ;;  %vm3971_vm4 = vweird.f32 %v6817_v15  ;;  %v3977_v23 = vor.u32 1.1754944e-38, %v3976_v33 }
0x136b   :  { %v6819_v0 = vpop.eup %4934  ;;  %vm6868_vm10 = vmor %vm3970_vm6, %vm3971_vm4  ;;  %vm6913_vm4 = vcmp.lt.s32.totalorder %v4098_v21, 500 }
0x136c   :  { %v3981_v43 = vmul.f32 %v6819_v0, %v6813_v4  ;;  %v3967_v19 = vsub.f32 1.0, %v3966_v14  ;;  %vm3986_vm14 = vweird.f32 %v6819_v0 }
0x136d   :  { %vm6844_vm5 = vmor %vm3985_vm15, %vm3986_vm14 }
0x136e   :  { %v3982_v5 = vsub.f32 1.0, %v3981_v43  ;;  %v3968_v9 = vmul.f32 %v6817_v15, %v3967_v19 }
0x136f   :  { %v4937_v13 = vpop.eup %4936  ;;  %v3930_v16 = vpop.f32.mrf.mxu3 }
0x1370   :  { %v4939_v58 = vpop.eup %4938  ;;  %v6825_v22 = vadd.f32 1.0, %v4937_v13  ;;  %v3931_v27 = vadd.f32 %v3930_v16, %v3768_v34  ;;  %v3910_v35 = vpop.f32.mrf.mxu2  ;;  %v3983_v28 = vmul.f32 %v6819_v0, %v3982_v5  ;;  %v3969_v57 = vadd.f32 %v6817_v15, %v3968_v9 }
0x1371   :  { %v6827_v45 = vadd.f32 1.0, %v4939_v58  ;;  %v3911_v49 = vadd.f32 %v3910_v35, %v3768_v34  ;;  %v3870_v52 = vpop.f32.mrf.mxu0 }
0x1372   :  { %4940 = vrcp.f32 %v6825_v22  ;;  %v3940_v53 = vsub.f32 0.0, %v3931_v27  ;;  %v3890_v54 = vpop.f32.mrf.mxu1  ;;  %v3871_v61 = vadd.f32 %v3870_v52, %v3768_v34  ;;  %v3984_v46 = vadd.f32 %v6819_v0, %v3983_v28 }
0x1373   :  { %4942 = vrcp.f32 %v6827_v45  ;;  %v3939_v56 = vsub.f32 0.0, %v3911_v49  ;;  %v3891_v62 = vadd.f32 %v3890_v54, %v3768_v34  ;;  %v4006_v7 = vand.u32 2147483648, %v6825_v22 }
0x1374   :  { %v3955_v6 = vmul.f32 1.442695, %v3940_v53  ;;  %v3937_v31 = vsub.f32 0.0, %v3871_v61  ;;  %v3988_v20 = vsel %vm6844_vm5, %v6819_v0, %v3984_v46  ;;  %v4019_v55 = vand.u32 2147483647, %v6827_v45 }
0x1375   :  { %v3953_v63 = vmul.f32 1.442695, %v3939_v56  ;;  %v3938_v3 = vsub.f32 0.0, %v3891_v62  ;;  %v3993_v25 = vsel %vm3990_vm9, %v3992_v50, %v3988_v20  ;;  %v4021_v60 = vand.u32 2147483648, %v6827_v45 }
0x1376   :  { %4944 = vpow2.f32 %v3955_v6  ;;  %v3949_v42 = vmul.f32 1.442695, %v3937_v31  ;;  %v3973_v36 = vsel %vm6868_vm10, %v6817_v15, %v3969_v57  ;;  %v4004_v4 = vand.u32 2147483647, %v6825_v22 }
0x1377   :  { %4946 = vpow2.f32 %v3953_v63  ;;  %v3951_v39 = vmul.f32 1.442695, %v3938_v3  ;;  %v4089_v41 = vrot.slane %v3993_v25, 7  ;;  %vm4000_vm1 = vweird.f32 %v6825_v22 }
0x1378   :  { %v6835_v11 = vpop.eup %4940  ;;  %4948 = vpow2.f32 %v3949_v42  ;;  %vm4015_vm2 = vweird.f32 %v6827_v45  ;;  %v4007_v15 = vor.u32 1.1754944e-38, %v4006_v7  ;;  %vm6895_vm13 = vcmp.eq.f32.partialorder %v4019_v55, 8.507059e+37 }
0x1379   :  { %v6841_v47 = vpop.eup %4942  ;;  %4950 = vpow2.f32 %v3951_v39  ;;  %v3996_v59 = vmul.f32 %v6835_v11, %v6825_v22  ;;  %v3978_v58 = vsel %vm6858_vm8, %v3977_v23, %v3973_v36  ;;  %v4022_v5 = vor.u32 1.1754944e-38, %v4021_v60 }
0x137a   :  { %v4011_v1 = vmul.f32 %v6841_v47, %v6827_v45  ;;  %vm4016_vm11 = vweird.f32 %v6841_v47  ;;  %vm4001_vm14 = vweird.f32 %v6835_v11  ;;  %vm6908_vm15 = vcmp.eq.f32.partialorder %v4004_v4, 8.507059e+37 }
0x137b   :  { %v3997_v29 = vsub.f32 1.0, %v3996_v59  ;;  %vm6891_vm12 = vmor %vm4015_vm2, %vm4016_vm11  ;;  %v4093_v35 = vsel %vm4092_vm0, %v3978_v58, %v4089_v41 }
0x137c   :  { %v4945_v8 = vpop.eup %4944  ;;  %v4012_v44 = vsub.f32 1.0, %v4011_v1  ;;  %vm4002_vm10 = vmor %vm4000_vm1, %vm4001_vm14 }
0x137d   :  { %v4947_v18 = vpop.eup %4946  ;;  %v6863_v48 = vadd.f32 1.0, %v4945_v8  ;;  %v3998_v13 = vmul.f32 %v6835_v11, %v3997_v29 }
0x137e   :  { %v4013_v12 = vmul.f32 %v6841_v47, %v4012_v44  ;;  %v6873_v2 = vadd.f32 1.0, %v4947_v18  ;;  %v4949_v30 = vpop.eup %4948 }
0x137f   :  { %4952 = vrcp.f32 %v6863_v48  ;;  %v4951_v32 = vpop.eup %4950  ;;  %v6883_v37 = vadd.f32 1.0, %v4949_v30  ;;  %v4079_v14 = vand.u32 2147483647, %v6863_v48  ;;  %vm4075_vm6 = vweird.f32 %v6863_v48 }
0x1380   :  { %4954 = vrcp.f32 %v6873_v2  ;;  %v4014_v38 = vadd.f32 %v6841_v47, %v4013_v12  ;;  %v6887_v10 = vadd.f32 1.0, %v4951_v32  ;;  %vm4060_vm5 = vweird.f32 %v6873_v2 }
0x1381   :  { %4956 = vrcp.f32 %v6883_v37  ;;  %v4064_v52 = vand.u32 2147483647, %v6873_v2  ;;  %v4081_v19 = vand.u32 2147483648, %v6863_v48  ;;  %v4066_v61 = vand.u32 2147483648, %v6873_v2 }
0x1382   :  { %4958 = vrcp.f32 %v6887_v10  ;;  %v4018_v16 = vsel %vm6891_vm12, %v6841_v47, %v4014_v38  ;;  %vm6927_vm8 = vcmp.eq.f32.partialorder %v4079_v14, 8.507059e+37  ;;  %vm4030_vm9 = vweird.f32 %v6883_v37 }
0x1383   :  { %v6924_v56 = vsel %vm6895_vm13, %v4022_v5, %v4018_v16  ;;  %v4036_v6 = vand.u32 2147483648, %v6883_v37  ;;  %v3999_v63 = vadd.f32 %v6835_v11, %v3998_v13  ;;  %v4034_v9 = vand.u32 2147483647, %v6883_v37 }
0x1384   :  { %v4049_v26 = vand.u32 2147483647, %v6887_v10  ;;  %v4051_v42 = vand.u32 2147483648, %v6887_v10  ;;  %v4091_v40 = vrot.slane %v6924_v56, 5  ;;  %v4067_v33 = vor.u32 1.1754944e-38, %v4066_v61 }
0x1385   :  { %v4953_v49 = vpop.eup %4952  ;;  %v4003_v47 = vsel %vm4002_vm10, %v6835_v11, %v3999_v63  ;;  %v4082_v44 = vor.u32 1.1754944e-38, %v4081_v19 }
0x1386   :  { %v4955_v53 = vpop.eup %4954  ;;  %v4071_v54 = vmul.f32 %v4953_v49, %v6863_v48  ;;  %vm4076_vm11 = vweird.f32 %v4953_v49  ;;  %v4008_v57 = vsel %vm6908_vm15, %v4007_v15, %v4003_v47  ;;  %vm4065_vm15 = vcmp.eq.f32.partialorder %v4064_v52, 8.507059e+37 }
0x1387   :  { %v4056_v28 = vmul.f32 %v4955_v53, %v6873_v2  ;;  %v4957_v31 = vpop.eup %4956  ;;  %vm4061_vm2 = vweird.f32 %v4955_v53  ;;  %v4090_v22 = vrot.slane %v4008_v57, 6  ;;  %vm4077_vm12 = vmor %vm4075_vm6, %vm4076_vm11  ;;  %v4037_v48 = vor.u32 1.1754944e-38, %v4036_v6 }
0x1388   :  { %v4072_v3 = vsub.f32 1.0, %v4071_v54  ;;  %v4959_v39 = vpop.eup %4958  ;;  %v4026_v46 = vmul.f32 %v4957_v31, %v6883_v37  ;;  %vm4031_vm1 = vweird.f32 %v4957_v31  ;;  %vm4062_vm14 = vmor %vm4060_vm5, %vm4061_vm2  ;;  %vm4045_vm5 = vweird.f32 %v6887_v10 }
0x1389   :  { %v4057_v51 = vsub.f32 1.0, %v4056_v28  ;;  %v4041_v1 = vmul.f32 %v4959_v39, %v6887_v10  ;;  %v4095_v11 = vsel %vm4094_vm3, %v4090_v22, %v4091_v40  ;;  %vm4046_vm13 = vweird.f32 %v4959_v39  ;;  %vm4032_vm3 = vmor %vm4030_vm9, %vm4031_vm1 }
0x138a   :  { %v4073_v17 = vmul.f32 %v4953_v49, %v4072_v3  ;;  %v4027_v50 = vsub.f32 1.0, %v4026_v46  ;;  %v4096_v55 = vsel %vm1906_vm7, %v4093_v35, %v4095_v11  ;;  %vm4035_vm6 = vcmp.eq.f32.partialorder %v4034_v9, 8.507059e+37  ;;  %vm4047_vm10 = vmor %vm4045_vm5, %vm4046_vm13 }
0x138b   :  { %v4058_v20 = vmul.f32 %v4955_v53, %v4057_v51  ;;  %v4042_v59 = vsub.f32 1.0, %v4041_v1  ;;  %4102 = vst.msk [vmem:[#allocation2] ss:$2 sm:$0xf] %vm6913_vm4, %v4096_v55  ;;  %vm4050_vm11 = vcmp.eq.f32.partialorder %v4049_v26, 8.507059e+37  ;;  %v4052_v30 = vor.u32 1.1754944e-38, %v4051_v42 }
0x138c   :  { %v4074_v8 = vadd.f32 %v4953_v49, %v4073_v17  ;;  %v4028_v34 = vmul.f32 %v4957_v31, %v4027_v50  ;;  %vm4115_vm9 = vcmask 1042432   ;;  %vm4120_vm2 = vcmask 97280  }
0x138d   :  { %v4059_v21 = vadd.f32 %v4955_v53, %v4058_v20  ;;  %v4043_v18 = vmul.f32 %v4959_v39, %v4042_v59 }
0x138e   :  { %v4078_v7 = vsel %vm4077_vm12, %v4953_v49, %v4074_v8  ;;  %v4029_v24 = vadd.f32 %v4957_v31, %v4028_v34 }
0x138f   :  { %v4063_v25 = vsel %vm4062_vm14, %v4955_v53, %v4059_v21  ;;  %v4083_v12 = vsel %vm6927_vm8, %v4082_v44, %v4078_v7  ;;  %v4044_v60 = vadd.f32 %v4959_v39, %v4043_v18  ;;  %vm4113_vm8 = vcmask 1043459  }
0x1390   :  { %v4068_v2 = vsel %vm4065_vm15, %v4067_v33, %v4063_v25  ;;  %v4033_v36 = vsel %vm4032_vm3, %v4957_v31, %v4029_v24  ;;  %v4110_v38 = vrot.slane %v4083_v12, 4 }
0x1391   :  { %v4038_v29 = vsel %vm4035_vm6, %v4037_v48, %v4033_v36  ;;  %v4048_v4 = vsel %vm4047_vm10, %v4959_v39, %v4044_v60  ;;  %v4109_v32 = vrot.slane %v4068_v2, 5 }
0x1392   :  { %v4053_v41 = vsel %vm4050_vm11, %v4052_v30, %v4048_v4  ;;  %v4107_v23 = vrot.slane %v4038_v29, 7 }
0x1393   :  { %v4108_v37 = vrot.slane %v4053_v41, 6  ;;  %v4114_v0 = vsel %vm4113_vm8, %v4109_v32, %v4110_v38 }
0x1394   :  { %v4111_v10 = vsel %vm4092_vm0, %v6924_v56, %v4107_v23 }
0x1395   :  { %v4112_v15 = vsel %vm1906_vm7, %v4111_v10, %v4108_v37 }
0x1396   :  { %v4116_v43 = vsel %vm4115_vm9, %v4112_v15, %v4114_v0 }
0x1397   :  { %4117 = vrot.lane.b32.xlu2 %v4116_v43, %s5041_s9 }
0x13f1   :  { %v4118_v14 = vpop.permute.xlu2 %4117 }
0x13f2   :  { %v4119_v13 = vrot.slane %v4118_v14, 1 }
0x13f4   :  { %v4121_v16 = vsel %vm4120_vm2, %v4118_v14, %v4119_v13 }
0x13f5   :  { %4124 = vst.msk [vmem:[#allocation2 + $0x1] ss:$2 sm:$0xf] %vm6913_vm4, %v4121_v16 }
0x13f6   :  { %4983 = shalt.err (!%p4980_p4)
}
0x13f7   :  { %4135 = dma.vmem_to_hbm [thread:$0]  %s4131_s8, 128, %s4133_s24, [#allocation3]  }
0x13f8   :  { %4984 = dma.done.wait [#allocation3], 128  }
0x13f9   :  { %4985 = vsyncadd [#allocation3], 4294967168 }
0x13fa   :  { %4140 = vsyncpa [#allocation3], 1 }

</bundles_post_ra>
